<compile_context>
chip_gen: v7x
topology: tpu7x:2x2x1
jax: 0.10.0
libtpu: 0.0.40
codegen_flags: <defaults>
</compile_context>

<pallas_src>
import jax
import jax.numpy as jnp
from jax import lax
from jax.experimental import pallas as pl
from jax.experimental.pallas import tpu as pltpu


# ----------------------------- Pallas kernel ------------------------------- #
def _make_bgru_kernel(Tc, Bp, Hp, fused, unroll):
    """Kernel closure for static chunk length Tc, padded batch Bp, padded hidden Hp."""
    three_h = 3 * Hp

    def kernel(xf_ref, xb_ref,                      # (Tc*Bp, D) fwd / bwd chunks
               wih_f_ref, wih_b_ref,                # (D, 3Hp)
               whh_ref,                             # (2Hp, 6Hp) blockdiag or (2Hp, 3Hp)
               bi_f_ref, bi_b_ref,                  # (1, 3Hp)  bih + bhh(r,z) folded
               bhh_ref,                             # (1, 6Hp) or (2, 3Hp)  n-gate bhh
               out_f_ref, out_b_ref,                # (Tc, Bp, Hp) streamed outputs
               hn_f_ref, hn_b_ref,                  # (Bp, Hp) resident carry / final h_n
               gi_f_s, gi_b_s):                     # (Tc*Bp, 3Hp) VMEM scratch
        # Initialize the resident carry on the first chunk.
        @pl.when(pl.program_id(0) == 0)
        def _():
            hn_f_ref[...] = jnp.zeros_like(hn_f_ref)
            hn_b_ref[...] = jnp.zeros_like(hn_b_ref)

        whh = whh_ref[...]

        # Whole-chunk input projections: one large MXU matmul per direction.
        gi_f_s[...] = jnp.dot(xf_ref[...], wih_f_ref[...],
                              preferred_element_type=jnp.float32) + bi_f_ref[...]
        gi_b_s[...] = jnp.dot(xb_ref[...], wih_b_ref[...],
                              preferred_element_type=jnp.float32) + bi_b_ref[...]

        # Hoisted per-step bias broadcasts (JAX does not CSE broadcast_in_dim).
        if fused:
            bhh_bc = jnp.broadcast_to(bhh_ref[...], (Bp, 6 * Hp))
        else:
            whh_f = whh[:Hp]
            whh_b = whh[Hp:]
            bhh_f_bc = jnp.broadcast_to(bhh_ref[0:1], (Bp, three_h))
            bhh_b_bc = jnp.broadcast_to(bhh_ref[1:2], (Bp, three_h))

        def gates(gi, gh, h_prev):
            # PyTorch GRU cell (gate order r | z | n), lane-aligned Hp slices:
            #   r = sigmoid(gi_r + gh_r); z = sigmoid(gi_z + gh_z)
            #   n = tanh(gi_n + r * gh_n);  h' = (1 - z) * n + z * h
            r = jax.nn.sigmoid(gi[:, :Hp] + gh[:, :Hp])
            z = jax.nn.sigmoid(gi[:, Hp:2 * Hp] + gh[:, Hp:2 * Hp])
            n = jnp.tanh(gi[:, 2 * Hp:] + r * gh[:, 2 * Hp:])
            return (1.0 - z) * n + z * h_prev

        def body(t, carry):
            h_f, h_b = carry
            tb = Tc - 1 - t
            # Sublane-aligned dynamic slices (Bp % 8 == 0 by construction).
            gi_f = gi_f_s[pl.ds(pl.multiple_of(t * Bp, 8), Bp), :]
            gi_b = gi_b_s[pl.ds(pl.multiple_of(tb * Bp, 8), Bp), :]
            if fused:
                # Single block-diagonal (Bp, 2Hp) @ (2Hp, 6Hp) matmul for both dirs.
                gh = jnp.dot(jnp.concatenate([h_f, h_b], axis=-1), whh,
                             preferred_element_type=jnp.float32) + bhh_bc
                gh_f = gh[:, :three_h]
                gh_b = gh[:, three_h:]
            else:
                gh_f = jnp.dot(h_f, whh_f,
                               preferred_element_type=jnp.float32) + bhh_f_bc
                gh_b = jnp.dot(h_b, whh_b,
                               preferred_element_type=jnp.float32) + bhh_b_bc
            h_f = gates(gi_f, gh_f, h_f)
            h_b = gates(gi_b, gh_b, h_b)
            out_f_ref[t] = h_f          # lane-dense (Hp % 128 == 0) aligned stores
            out_b_ref[tb] = h_b
            return h_f, h_b

        h_f_fin, h_b_fin = lax.fori_loop(
            0, Tc, body, (hn_f_ref[...], hn_b_ref[...]), unroll=unroll)

        # Carry to the next chunk; on the last chunk these ARE the final states.
        hn_f_ref[...] = h_f_fin
        hn_b_ref[...] = h_b_fin

    return kernel


# ------------------------------- helpers ------------------------------------ #
def _round_up(v, m):
    return ((v + m - 1) // m) * m


def _tpu_kind():
    try:
        return jax.devices()[0].device_kind.lower()
    except Exception:  # pragma: no cover
        return ""


def _pad_gate_cols(w, H, Hp):
    """(rows, 3H) [r|z|n] -> (rows, 3Hp) with each gate starting at a 128-lane boundary."""
    rows = w.shape[0]
    out = jnp.zeros((rows, 3 * Hp), jnp.float32)
    for g in range(3):
        out = out.at[:, g * Hp:g * Hp + H].set(w[:, g * H:(g + 1) * H])
    return out


def _pad_whh(whh, H, Hp):
    return jnp.zeros((Hp, 3 * Hp), jnp.float32).at[:H].set(_pad_gate_cols(whh, H, Hp))


def _est_vmem_bytes(Tc, Bp, D, Hp, whh_cols):
    rows = Tc * Bp
    return 4 * (2 * 2 * rows * D            # fwd/bwd x chunks, double-buffered
                + 2 * 2 * rows * Hp         # fwd/bwd out chunks, double-buffered
                + 2 * rows * 3 * Hp         # gi scratches
                + 2 * 2 * D * 3 * Hp        # input weights (2 bufs each)
                + 2 * 2 * Hp * whh_cols     # recurrent weights
                + 4 * Bp * Hp               # hn carries
                + 8 * 6 * Hp)               # biases


def _choose_time_chunk(T, Bp, D, Hp, cap_steps, vmem_budget, whh_cols):
    for c in range(min(max(cap_steps, 1), T), 0, -1):
        if T % c == 0 and _est_vmem_bytes(c, Bp, D, Hp, whh_cols) <= vmem_budget:
            return c
    return 1


# ------------------------------- wrapper ----------------------------------- #
def bgru_cell_forward(x, params, *, time_chunk=64, unroll=4):
    """x: (B, T, in_chan) float32 (batch_first, like the PyTorch module).

    Returns (output, h_n) matching nn.GRU(in_chan, H, batch_first=True,
    bidirectional=True) with zero initial hidden state:
      output: (B, T, 2H), h_n: (2, B, H).
    """
    B, T, D = x.shape
    H = params["whh_f"].shape[0]
    f32 = jnp.float32

    Bp = _round_up(B, 8)      # sublane alignment for per-step slices / stores
    Hp = _round_up(H, 128)    # lane alignment for gate slices / lane-dense writeback

    kind = _tpu_kind()
    wide_mxu = not any(v in kind for v in ("v2", "v3", "v4", "v5"))
    mxu_lanes = 256 if wide_mxu else 128
    vmem_cap = (48 << 20) if "v7" in kind else (100 << 20)   # v7x: 64 MiB VMEM/TC

    fused = (2 * Hp) <= mxu_lanes
    whh_cols = 6 * Hp if fused else 3 * Hp

    Tc = _choose_time_chunk(T, Bp, D, Hp, time_chunk, int(0.45 * vmem_cap), whh_cols)
    N = T // Tc
    chunk_rows = Tc * Bp

    # ---- pack / pad parameters (pad columns are zero so pad lanes of h stay 0) ----
    wih_f = _pad_gate_cols(params["wih_f"].astype(f32), H, Hp)   # (D, 3Hp)
    wih_b = _pad_gate_cols(params["wih_b"].astype(f32), H, Hp)
    whh_f_p = _pad_whh(params["whh_f"].astype(f32), H, Hp)       # (Hp, 3Hp)
    whh_b_p = _pad_whh(params["whh_b"].astype(f32), H, Hp)

    def fold_bi(bih, bhh):
        # bih + bhh for r,z folded; n gate keeps bih only (bhh_n rides with gh).
        folded = jnp.concatenate([bih[:, :2 * H] + bhh[:, :2 * H], bih[:, 2 * H:]],
                                 axis=1)
        return _pad_gate_cols(folded, H, Hp)                     # (1, 3Hp)

    bih_f = params["bih_f"].astype(f32); bhh_f = params["bhh_f"].astype(f32)
    bih_b = params["bih_b"].astype(f32); bhh_b = params["bhh_b"].astype(f32)
    bi_f = fold_bi(bih_f, bhh_f)
    bi_b = fold_bi(bih_b, bhh_b)
    bhh_f_n = jnp.zeros((1, Hp), f32).at[:, :H].set(bhh_f[:, 2 * H:])
    bhh_b_n = jnp.zeros((1, Hp), f32).at[:, :H].set(bhh_b[:, 2 * H:])
    zeros_rz = jnp.zeros((1, 2 * Hp), f32)

    if fused:
        whh_pack = jnp.zeros((2 * Hp, 6 * Hp), f32)
        whh_pack = whh_pack.at[:Hp, :3 * Hp].set(whh_f_p)
        whh_pack = whh_pack.at[Hp:, 3 * Hp:].set(whh_b_p)
        bhh_pack = jnp.concatenate([zeros_rz, bhh_f_n, zeros_rz, bhh_b_n], axis=1)
    else:
        whh_pack = jnp.concatenate([whh_f_p, whh_b_p], axis=0)            # (2Hp, 3Hp)
        bhh_pack = jnp.concatenate(
            [jnp.concatenate([zeros_rz, bhh_f_n], axis=1),
             jnp.concatenate([zeros_rz, bhh_b_n], axis=1)], axis=0)        # (2, 3Hp)

    # ---- input: time-major, batch padded to Bp, flattened to (T*Bp, D) ----
    # TODO(synk): feed x batch-first and fix the layout in-kernel to drop this HBM pass.
    x_tm = jnp.transpose(x, (1, 0, 2)).astype(f32)
    if Bp != B:
        x_tm = jnp.pad(x_tm, ((0, 0), (0, Bp - B), (0, 0)))
    x_tm = x_tm.reshape(T * Bp, D)

    def full_spec(shape):
        nd = len(shape)
        return pl.BlockSpec(shape, lambda i, _nd=nd: (0,) * _nd)

    in_arrays = (x_tm, x_tm, wih_f, wih_b, whh_pack, bi_f, bi_b, bhh_pack)
    in_specs = [
        pl.BlockSpec((chunk_rows, D), lambda i: (i, 0)),              # fwd x chunk
        pl.BlockSpec((chunk_rows, D), lambda i: (N - 1 - i, 0)),      # bwd x chunk
        full_spec(wih_f.shape),
        full_spec(wih_b.shape),
        full_spec(whh_pack.shape),
        full_spec(bi_f.shape),
        full_spec(bi_b.shape),
        full_spec(bhh_pack.shape),
    ]

    out_shape = (
        jax.ShapeDtypeStruct((T, Bp, Hp), f32),   # forward hiddens (time-major)
        jax.ShapeDtypeStruct((T, Bp, Hp), f32),   # backward hiddens (time-major)
        jax.ShapeDtypeStruct((Bp, Hp), f32),      # h_n forward
        jax.ShapeDtypeStruct((Bp, Hp), f32),      # h_n backward
    )
    out_specs = (
        pl.BlockSpec((Tc, Bp, Hp), lambda i: (i, 0, 0)),
        pl.BlockSpec((Tc, Bp, Hp), lambda i: (N - 1 - i, 0, 0)),
        pl.BlockSpec((Bp, Hp), lambda i: (0, 0)),   # resident: doubles as fwd carry
        pl.BlockSpec((Bp, Hp), lambda i: (0, 0)),   # resident: doubles as bwd carry
    )

    scratch_shapes = [
        pltpu.VMEM((chunk_rows, 3 * Hp), f32),   # precomputed gi, forward chunk
        pltpu.VMEM((chunk_rows, 3 * Hp), f32),   # precomputed gi, backward chunk
    ]

    est = _est_vmem_bytes(Tc, Bp, D, Hp, whh_cols)
    vmem_limit = int(min(vmem_cap, max(4 * est, 32 << 20)))

    kernel = _make_bgru_kernel(Tc, Bp, Hp, fused, unroll)
    out_f, out_b, hn_f, hn_b = pl.pallas_call(
        kernel,
        grid=(N,),
        in_specs=in_specs,
        out_specs=out_specs,
        out_shape=out_shape,
        scratch_shapes=scratch_shapes,
        compiler_params=pltpu.CompilerParams(
            dimension_semantics=("arbitrary",),   # chunk axis carries recurrent state
            vmem_limit_bytes=vmem_limit),
    )(*in_arrays)

    # Single fused XLA pass: drop pads, concat directions, back to batch-first.
    output = jnp.concatenate([out_f[:, :B, :H], out_b[:, :B, :H]], axis=-1)
    output = jnp.transpose(output, (1, 0, 2))
    h_n = jnp.stack([hn_f[:B, :H], hn_b[:B, :H]], axis=0)
    return output, h_n


# ---------------------------- params / reference --------------------------- #
def init_bgru_params(key, in_chan, out_chan):
    """Deterministic init mirroring nn.GRU's U(-1/sqrt(H), 1/sqrt(H)).

    Weights stored pre-transposed for right-multiplication:
      wih: (in, 3H), whh: (H, 3H); gate order [r | z | n]; biases (1, 3H).
    """
    H = out_chan
    k = 1.0 / jnp.sqrt(jnp.float32(H))
    keys = jax.random.split(key, 8)
    u = lambda kk, shape: jax.random.uniform(kk, shape, jnp.float32, -k, k)
    return {
        "wih_f": u(keys[0], (in_chan, 3 * H)),
        "whh_f": u(keys[1], (H, 3 * H)),
        "bih_f": u(keys[2], (1, 3 * H)),
        "bhh_f": u(keys[3], (1, 3 * H)),
        "wih_b": u(keys[4], (in_chan, 3 * H)),
        "whh_b": u(keys[5], (H, 3 * H)),
        "bih_b": u(keys[6], (1, 3 * H)),
        "bhh_b": u(keys[7], (1, 3 * H)),
    }


def _gru_dir_ref(x_tm, wih, whh, bih, bhh):
    """Pure-JAX single-direction GRU reference (time-major input)."""
    H = whh.shape[0]

    def step(h, x_t):
        gi = x_t @ wih + bih
        gh = h @ whh + bhh
        r = jax.nn.sigmoid(gi[:, :H] + gh[:, :H])
        z = jax.nn.sigmoid(gi[:, H:2 * H] + gh[:, H:2 * H])
        n = jnp.tanh(gi[:, 2 * H:] + r * gh[:, 2 * H:])
        h_new = (1.0 - z) * n + z * h
        return h_new, h_new

    h0 = jnp.zeros((x_tm.shape[1], H), jnp.float32)
    h_fin, outs = lax.scan(step, h0, x_tm)
    return outs, h_fin


def bgru_reference(x, params):
    x_tm = jnp.transpose(x, (1, 0, 2)).astype(jnp.float32)
    out_f, hn_f = _gru_dir_ref(x_tm, params["wih_f"], params["whh_f"],
                               params["bih_f"], params["bhh_f"])
    out_b_rev, hn_b = _gru_dir_ref(x_tm[::-1], params["wih_b"], params["whh_b"],
                                   params["bih_b"], params["bhh_b"])
    out_b = out_b_rev[::-1]
    output = jnp.transpose(jnp.concatenate([out_f, out_b], -1), (1, 0, 2))
    h_n = jnp.stack([hn_f, hn_b], axis=0)
    return output, h_n


# ---------------------------------- main ------------------------------------ #
if __name__ == "__main__":
    B, T, IN_CHAN, HIDDEN = 2, 8, 16, 32

    key = jax.random.PRNGKey(0)
    kx, kp = jax.random.split(key)
    x = jax.random.normal(kx, (B, T, IN_CHAN), dtype=jnp.float32)
    params = init_bgru_params(kp, IN_CHAN, HIDDEN)

    # time_chunk=4 -> grid=(2,): exercises the cross-chunk carry path.
    output, h_n = bgru_cell_forward(x, params, time_chunk=4, unroll=4)
    output = jax.block_until_ready(output)
    h_n = jax.block_until_ready(h_n)

    assert output.shape == (B, T, 2 * HIDDEN)
    assert h_n.shape == (2, B, HIDDEN)

    ref_out, ref_hn = bgru_reference(x, params)
    assert jnp.allclose(output, ref_out, atol=1e-3, rtol=1e-3), \
        float(jnp.max(jnp.abs(output - ref_out)))
    assert jnp.allclose(h_n, ref_hn, atol=1e-3, rtol=1e-3), \
        float(jnp.max(jnp.abs(h_n - ref_hn)))

    print("KERNEL_OK")
</pallas_src>

<mosaic_0001>
module attributes {stable_mosaic.version = 11 : i64} {
  func.func @kernel(%arg0: i32, %arg1: memref<32x16xf32, #tpu.memory_space<vmem>>, %arg2: memref<32x16xf32, #tpu.memory_space<vmem>>, %arg3: memref<16x384xf32, #tpu.memory_space<vmem>>, %arg4: memref<16x384xf32, #tpu.memory_space<vmem>>, %arg5: memref<256x768xf32, #tpu.memory_space<vmem>>, %arg6: memref<1x384xf32, #tpu.memory_space<vmem>>, %arg7: memref<1x384xf32, #tpu.memory_space<vmem>>, %arg8: memref<1x768xf32, #tpu.memory_space<vmem>>, %arg9: memref<4x8x128xf32, #tpu.memory_space<vmem>>, %arg10: memref<4x8x128xf32, #tpu.memory_space<vmem>>, %arg11: memref<8x128xf32, #tpu.memory_space<vmem>>, %arg12: memref<8x128xf32, #tpu.memory_space<vmem>>, %arg13: memref<32x384xf32, #tpu.memory_space<vmem>>, %arg14: memref<32x384xf32, #tpu.memory_space<vmem>>) attributes {dimension_semantics = [#tpu.dimension_semantics<arbitrary>], iteration_bounds = array<i64: 2>, scalar_prefetch = 0 : i64, scratch_operands = 2 : i64, tpu.core_type = #tpu.core_type<tc>, window_params = [{transform_indices = @transform_0, window_bounds = array<i64: 32, 16>}, {transform_indices = @transform_1, window_bounds = array<i64: 32, 16>}, {pipeline_mode = #tpu.pipeline_mode<synchronous>, transform_indices = @transform_2, window_bounds = array<i64: 16, 384>}, {pipeline_mode = #tpu.pipeline_mode<synchronous>, transform_indices = @transform_3, window_bounds = array<i64: 16, 384>}, {pipeline_mode = #tpu.pipeline_mode<synchronous>, transform_indices = @transform_4, window_bounds = array<i64: 256, 768>}, {pipeline_mode = #tpu.pipeline_mode<synchronous>, transform_indices = @transform_5, window_bounds = array<i64: 1, 384>}, {pipeline_mode = #tpu.pipeline_mode<synchronous>, transform_indices = @transform_6, window_bounds = array<i64: 1, 384>}, {pipeline_mode = #tpu.pipeline_mode<synchronous>, transform_indices = @transform_7, window_bounds = array<i64: 1, 768>}, {transform_indices = @transform_8, window_bounds = array<i64: 4, 8, 128>}, {transform_indices = @transform_9, window_bounds = array<i64: 4, 8, 128>}, {pipeline_mode = #tpu.pipeline_mode<synchronous>, transform_indices = @transform_10, window_bounds = array<i64: 8, 128>}, {pipeline_mode = #tpu.pipeline_mode<synchronous>, transform_indices = @transform_11, window_bounds = array<i64: 8, 128>}]} {
    %c0_i32 = arith.constant 0 : i32
    %0 = arith.cmpi eq, %arg0, %c0_i32 : i32
    %1 = arith.extui %0 : i1 to i32
    %c0_i32_0 = arith.constant 0 : i32
    %2 = arith.cmpi ne, %1, %c0_i32_0 : i32
    scf.if %2 {
      %cst_93 = arith.constant 0.000000e+00 : f32
      %321 = vector.broadcast %cst_93 : f32 to vector<8x128xf32>
      %c0_94 = arith.constant 0 : index
      %c0_95 = arith.constant 0 : index
      %322 = vector.load %arg11[%c0_94, %c0_95] : memref<8x128xf32, #tpu.memory_space<vmem>>, vector<8x128xf32>
      tpu.vector_store %arg11[%c0_94, %c0_95], %321 {strides = array<i32>} : memref<8x128xf32, #tpu.memory_space<vmem>>, vector<8x128xf32>,
      %cst_96 = arith.constant 0.000000e+00 : f32
      %323 = vector.broadcast %cst_96 : f32 to vector<8x128xf32>
      %c0_97 = arith.constant 0 : index
      %c0_98 = arith.constant 0 : index
      %324 = vector.load %arg12[%c0_97, %c0_98] : memref<8x128xf32, #tpu.memory_space<vmem>>, vector<8x128xf32>
      tpu.vector_store %arg12[%c0_97, %c0_98], %323 {strides = array<i32>} : memref<8x128xf32, #tpu.memory_space<vmem>>, vector<8x128xf32>,
    } else {
    }
    %c0 = arith.constant 0 : index
    %c0_1 = arith.constant 0 : index
    %3 = vector.load %arg5[%c0, %c0_1] : memref<256x768xf32, #tpu.memory_space<vmem>>, vector<256x768xf32>
    %c0_2 = arith.constant 0 : index
    %c0_3 = arith.constant 0 : index
    %4 = vector.load %arg1[%c0_2, %c0_3] : memref<32x16xf32, #tpu.memory_space<vmem>>, vector<32x16xf32>
    %c0_4 = arith.constant 0 : index
    %c0_5 = arith.constant 0 : index
    %5 = vector.load %arg3[%c0_4, %c0_5] : memref<16x384xf32, #tpu.memory_space<vmem>>, vector<16x384xf32>
    %cst = arith.constant dense<0.000000e+00> : vector<32x384xf32>
    %6 = tpu.matmul %4, %5, %cst {dimension_numbers = #tpu.dot_dimension_numbers<[1], [0], [0], [1], [0, 0, 1, 1], [], []>} : vector<32x16xf32>, vector<16x384xf32>, vector<32x384xf32> -> vector<32x384xf32>
    %c0_6 = arith.constant 0 : index
    %c0_7 = arith.constant 0 : index
    %7 = vector.load %arg6[%c0_6, %c0_7] : memref<1x384xf32, #tpu.memory_space<vmem>>, vector<1x384xf32>
    %8 = vector.broadcast %7 : vector<1x384xf32> to vector<32x384xf32>
    %9 = arith.addf %6, %8 : vector<32x384xf32>
    %c0_8 = arith.constant 0 : index
    %c0_9 = arith.constant 0 : index
    %10 = vector.load %arg13[%c0_8, %c0_9] : memref<32x384xf32, #tpu.memory_space<vmem>>, vector<32x384xf32>
    tpu.vector_store %arg13[%c0_8, %c0_9], %9 {strides = array<i32>} : memref<32x384xf32, #tpu.memory_space<vmem>>, vector<32x384xf32>,
    %c0_10 = arith.constant 0 : index
    %c0_11 = arith.constant 0 : index
    %11 = vector.load %arg2[%c0_10, %c0_11] : memref<32x16xf32, #tpu.memory_space<vmem>>, vector<32x16xf32>
    %c0_12 = arith.constant 0 : index
    %c0_13 = arith.constant 0 : index
    %12 = vector.load %arg4[%c0_12, %c0_13] : memref<16x384xf32, #tpu.memory_space<vmem>>, vector<16x384xf32>
    %cst_14 = arith.constant dense<0.000000e+00> : vector<32x384xf32>
    %13 = tpu.matmul %11, %12, %cst_14 {dimension_numbers = #tpu.dot_dimension_numbers<[1], [0], [0], [1], [0, 0, 1, 1], [], []>} : vector<32x16xf32>, vector<16x384xf32>, vector<32x384xf32> -> vector<32x384xf32>
    %c0_15 = arith.constant 0 : index
    %c0_16 = arith.constant 0 : index
    %14 = vector.load %arg7[%c0_15, %c0_16] : memref<1x384xf32, #tpu.memory_space<vmem>>, vector<1x384xf32>
    %15 = vector.broadcast %14 : vector<1x384xf32> to vector<32x384xf32>
    %16 = arith.addf %13, %15 : vector<32x384xf32>
    %c0_17 = arith.constant 0 : index
    %c0_18 = arith.constant 0 : index
    %17 = vector.load %arg14[%c0_17, %c0_18] : memref<32x384xf32, #tpu.memory_space<vmem>>, vector<32x384xf32>
    tpu.vector_store %arg14[%c0_17, %c0_18], %16 {strides = array<i32>} : memref<32x384xf32, #tpu.memory_space<vmem>>, vector<32x384xf32>,
    %c0_19 = arith.constant 0 : index
    %c0_20 = arith.constant 0 : index
    %18 = vector.load %arg8[%c0_19, %c0_20] : memref<1x768xf32, #tpu.memory_space<vmem>>, vector<1x768xf32>
    %19 = vector.shape_cast %18 : vector<1x768xf32> to vector<1x768xf32>
    %20 = vector.broadcast %19 : vector<1x768xf32> to vector<8x768xf32>
    %c0_21 = arith.constant 0 : index
    %c0_22 = arith.constant 0 : index
    %21 = vector.load %arg11[%c0_21, %c0_22] : memref<8x128xf32, #tpu.memory_space<vmem>>, vector<8x128xf32>
    %c0_23 = arith.constant 0 : index
    %c0_24 = arith.constant 0 : index
    %22 = vector.load %arg12[%c0_23, %c0_24] : memref<8x128xf32, #tpu.memory_space<vmem>>, vector<8x128xf32>
    %c0_i32_25 = arith.constant 0 : i32
    %c3_i32 = arith.constant 3 : i32
    %23 = arith.subi %c3_i32, %c0_i32_25 : i32
    %c8_i32 = arith.constant 8 : i32
    %24 = arith.muli %c0_i32_25, %c8_i32 : i32
    %25 = tpu.assume_multiple %24, 8 : i32
    %26 = arith.index_cast %25 : i32 to index
    %c0_26 = arith.constant 0 : index
    %27 = vector.load %arg13[%26, %c0_26] : memref<32x384xf32, #tpu.memory_space<vmem>>, vector<8x384xf32>
    %c8_i32_27 = arith.constant 8 : i32
    %28 = arith.muli %23, %c8_i32_27 : i32
    %29 = tpu.assume_multiple %28, 8 : i32
    %30 = arith.index_cast %29 : i32 to index
    %c0_28 = arith.constant 0 : index
    %31 = vector.load %arg14[%30, %c0_28] : memref<32x384xf32, #tpu.memory_space<vmem>>, vector<8x384xf32>
    %32 = tpu.concatenate %21, %22 in 1 : vector<8x128xf32>, vector<8x128xf32> -> vector<8x256xf32>
    %cst_29 = arith.constant dense<0.000000e+00> : vector<8x768xf32>
    %33 = tpu.matmul %32, %3, %cst_29 {dimension_numbers = #tpu.dot_dimension_numbers<[1], [0], [0], [1], [0, 0, 1, 1], [], []>} : vector<8x256xf32>, vector<256x768xf32>, vector<8x768xf32> -> vector<8x768xf32>
    %34 = arith.addf %33, %20 : vector<8x768xf32>
    %35 = vector.extract_strided_slice %34 {offsets = [0, 0], sizes = [8, 384], strides = [1, 1]} : vector<8x768xf32> to vector<8x384xf32>
    %36 = vector.extract_strided_slice %34 {offsets = [0, 384], sizes = [8, 384], strides = [1, 1]} : vector<8x768xf32> to vector<8x384xf32>
    %37 = vector.extract_strided_slice %27 {offsets = [0, 0], sizes = [8, 128], strides = [1, 1]} : vector<8x384xf32> to vector<8x128xf32>
    %38 = vector.extract_strided_slice %35 {offsets = [0, 0], sizes = [8, 128], strides = [1, 1]} : vector<8x384xf32> to vector<8x128xf32>
    %39 = arith.addf %37, %38 : vector<8x128xf32>
    %40 = arith.negf %39 : vector<8x128xf32>
    %41 = math.exp %40 : vector<8x128xf32>
    %cst_30 = arith.constant 1.000000e+00 : f32
    %42 = vector.broadcast %cst_30 : f32 to vector<8x128xf32>
    %43 = arith.addf %42, %41 : vector<8x128xf32>
    %44 = arith.divf %42, %43 : vector<8x128xf32>
    %45 = vector.extract_strided_slice %27 {offsets = [0, 128], sizes = [8, 128], strides = [1, 1]} : vector<8x384xf32> to vector<8x128xf32>
    %46 = vector.extract_strided_slice %35 {offsets = [0, 128], sizes = [8, 128], strides = [1, 1]} : vector<8x384xf32> to vector<8x128xf32>
    %47 = arith.addf %45, %46 : vector<8x128xf32>
    %48 = arith.negf %47 : vector<8x128xf32>
    %49 = math.exp %48 : vector<8x128xf32>
    %cst_31 = arith.constant 1.000000e+00 : f32
    %50 = vector.broadcast %cst_31 : f32 to vector<8x128xf32>
    %51 = arith.addf %50, %49 : vector<8x128xf32>
    %52 = arith.divf %50, %51 : vector<8x128xf32>
    %53 = vector.extract_strided_slice %27 {offsets = [0, 256], sizes = [8, 128], strides = [1, 1]} : vector<8x384xf32> to vector<8x128xf32>
    %54 = vector.extract_strided_slice %35 {offsets = [0, 256], sizes = [8, 128], strides = [1, 1]} : vector<8x384xf32> to vector<8x128xf32>
    %55 = arith.mulf %44, %54 : vector<8x128xf32>
    %56 = arith.addf %53, %55 : vector<8x128xf32>
    %57 = math.tanh %56 : vector<8x128xf32>
    %cst_32 = arith.constant 1.000000e+00 : f32
    %58 = vector.broadcast %cst_32 : f32 to vector<8x128xf32>
    %59 = arith.subf %58, %52 : vector<8x128xf32>
    %60 = arith.mulf %59, %57 : vector<8x128xf32>
    %61 = arith.mulf %52, %21 : vector<8x128xf32>
    %62 = arith.addf %60, %61 : vector<8x128xf32>
    %63 = vector.extract_strided_slice %31 {offsets = [0, 0], sizes = [8, 128], strides = [1, 1]} : vector<8x384xf32> to vector<8x128xf32>
    %64 = vector.extract_strided_slice %36 {offsets = [0, 0], sizes = [8, 128], strides = [1, 1]} : vector<8x384xf32> to vector<8x128xf32>
    %65 = arith.addf %63, %64 : vector<8x128xf32>
    %66 = arith.negf %65 : vector<8x128xf32>
    %67 = math.exp %66 : vector<8x128xf32>
    %cst_33 = arith.constant 1.000000e+00 : f32
    %68 = vector.broadcast %cst_33 : f32 to vector<8x128xf32>
    %69 = arith.addf %68, %67 : vector<8x128xf32>
    %70 = arith.divf %68, %69 : vector<8x128xf32>
    %71 = vector.extract_strided_slice %31 {offsets = [0, 128], sizes = [8, 128], strides = [1, 1]} : vector<8x384xf32> to vector<8x128xf32>
    %72 = vector.extract_strided_slice %36 {offsets = [0, 128], sizes = [8, 128], strides = [1, 1]} : vector<8x384xf32> to vector<8x128xf32>
    %73 = arith.addf %71, %72 : vector<8x128xf32>
    %74 = arith.negf %73 : vector<8x128xf32>
    %75 = math.exp %74 : vector<8x128xf32>
    %cst_34 = arith.constant 1.000000e+00 : f32
    %76 = vector.broadcast %cst_34 : f32 to vector<8x128xf32>
    %77 = arith.addf %76, %75 : vector<8x128xf32>
    %78 = arith.divf %76, %77 : vector<8x128xf32>
    %79 = vector.extract_strided_slice %31 {offsets = [0, 256], sizes = [8, 128], strides = [1, 1]} : vector<8x384xf32> to vector<8x128xf32>
    %80 = vector.extract_strided_slice %36 {offsets = [0, 256], sizes = [8, 128], strides = [1, 1]} : vector<8x384xf32> to vector<8x128xf32>
    %81 = arith.mulf %70, %80 : vector<8x128xf32>
    %82 = arith.addf %79, %81 : vector<8x128xf32>
    %83 = math.tanh %82 : vector<8x128xf32>
    %cst_35 = arith.constant 1.000000e+00 : f32
    %84 = vector.broadcast %cst_35 : f32 to vector<8x128xf32>
    %85 = arith.subf %84, %78 : vector<8x128xf32>
    %86 = arith.mulf %85, %83 : vector<8x128xf32>
    %87 = arith.mulf %78, %22 : vector<8x128xf32>
    %88 = arith.addf %86, %87 : vector<8x128xf32>
    %89 = arith.index_cast %c0_i32_25 : i32 to index
    %c0_36 = arith.constant 0 : index
    %c0_37 = arith.constant 0 : index
    %90 = vector.load %arg9[%89, %c0_36, %c0_37] : memref<4x8x128xf32, #tpu.memory_space<vmem>>, vector<1x8x128xf32>
    %91 = vector.shape_cast %90 : vector<1x8x128xf32> to vector<8x128xf32>
    %92 = vector.shape_cast %62 : vector<8x128xf32> to vector<1x8x128xf32>
    tpu.vector_store %arg9[%89, %c0_36, %c0_37], %92 {strides = array<i32>} : memref<4x8x128xf32, #tpu.memory_space<vmem>>, vector<1x8x128xf32>,
    %93 = arith.index_cast %23 : i32 to index
    %c0_38 = arith.constant 0 : index
    %c0_39 = arith.constant 0 : index
    %94 = vector.load %arg10[%93, %c0_38, %c0_39] : memref<4x8x128xf32, #tpu.memory_space<vmem>>, vector<1x8x128xf32>
    %95 = vector.shape_cast %94 : vector<1x8x128xf32> to vector<8x128xf32>
    %96 = vector.shape_cast %88 : vector<8x128xf32> to vector<1x8x128xf32>
    tpu.vector_store %arg10[%93, %c0_38, %c0_39], %96 {strides = array<i32>} : memref<4x8x128xf32, #tpu.memory_space<vmem>>, vector<1x8x128xf32>,
    %c1_i32 = arith.constant 1 : i32
    %c3_i32_40 = arith.constant 3 : i32
    %97 = arith.subi %c3_i32_40, %c1_i32 : i32
    %c8_i32_41 = arith.constant 8 : i32
    %98 = arith.muli %c1_i32, %c8_i32_41 : i32
    %99 = tpu.assume_multiple %98, 8 : i32
    %100 = arith.index_cast %99 : i32 to index
    %c0_42 = arith.constant 0 : index
    %101 = vector.load %arg13[%100, %c0_42] : memref<32x384xf32, #tpu.memory_space<vmem>>, vector<8x384xf32>
    %c8_i32_43 = arith.constant 8 : i32
    %102 = arith.muli %97, %c8_i32_43 : i32
    %103 = tpu.assume_multiple %102, 8 : i32
    %104 = arith.index_cast %103 : i32 to index
    %c0_44 = arith.constant 0 : index
    %105 = vector.load %arg14[%104, %c0_44] : memref<32x384xf32, #tpu.memory_space<vmem>>, vector<8x384xf32>
    %106 = tpu.concatenate %62, %88 in 1 : vector<8x128xf32>, vector<8x128xf32> -> vector<8x256xf32>
    %cst_45 = arith.constant dense<0.000000e+00> : vector<8x768xf32>
    %107 = tpu.matmul %106, %3, %cst_45 {dimension_numbers = #tpu.dot_dimension_numbers<[1], [0], [0], [1], [0, 0, 1, 1], [], []>} : vector<8x256xf32>, vector<256x768xf32>, vector<8x768xf32> -> vector<8x768xf32>
    %108 = arith.addf %107, %20 : vector<8x768xf32>
    %109 = vector.extract_strided_slice %108 {offsets = [0, 0], sizes = [8, 384], strides = [1, 1]} : vector<8x768xf32> to vector<8x384xf32>
    %110 = vector.extract_strided_slice %108 {offsets = [0, 384], sizes = [8, 384], strides = [1, 1]} : vector<8x768xf32> to vector<8x384xf32>
    %111 = vector.extract_strided_slice %101 {offsets = [0, 0], sizes = [8, 128], strides = [1, 1]} : vector<8x384xf32> to vector<8x128xf32>
    %112 = vector.extract_strided_slice %109 {offsets = [0, 0], sizes = [8, 128], strides = [1, 1]} : vector<8x384xf32> to vector<8x128xf32>
    %113 = arith.addf %111, %112 : vector<8x128xf32>
    %114 = arith.negf %113 : vector<8x128xf32>
    %115 = math.exp %114 : vector<8x128xf32>
    %cst_46 = arith.constant 1.000000e+00 : f32
    %116 = vector.broadcast %cst_46 : f32 to vector<8x128xf32>
    %117 = arith.addf %116, %115 : vector<8x128xf32>
    %118 = arith.divf %116, %117 : vector<8x128xf32>
    %119 = vector.extract_strided_slice %101 {offsets = [0, 128], sizes = [8, 128], strides = [1, 1]} : vector<8x384xf32> to vector<8x128xf32>
    %120 = vector.extract_strided_slice %109 {offsets = [0, 128], sizes = [8, 128], strides = [1, 1]} : vector<8x384xf32> to vector<8x128xf32>
    %121 = arith.addf %119, %120 : vector<8x128xf32>
    %122 = arith.negf %121 : vector<8x128xf32>
    %123 = math.exp %122 : vector<8x128xf32>
    %cst_47 = arith.constant 1.000000e+00 : f32
    %124 = vector.broadcast %cst_47 : f32 to vector<8x128xf32>
    %125 = arith.addf %124, %123 : vector<8x128xf32>
    %126 = arith.divf %124, %125 : vector<8x128xf32>
    %127 = vector.extract_strided_slice %101 {offsets = [0, 256], sizes = [8, 128], strides = [1, 1]} : vector<8x384xf32> to vector<8x128xf32>
    %128 = vector.extract_strided_slice %109 {offsets = [0, 256], sizes = [8, 128], strides = [1, 1]} : vector<8x384xf32> to vector<8x128xf32>
    %129 = arith.mulf %118, %128 : vector<8x128xf32>
    %130 = arith.addf %127, %129 : vector<8x128xf32>
    %131 = math.tanh %130 : vector<8x128xf32>
    %cst_48 = arith.constant 1.000000e+00 : f32
    %132 = vector.broadcast %cst_48 : f32 to vector<8x128xf32>
    %133 = arith.subf %132, %126 : vector<8x128xf32>
    %134 = arith.mulf %133, %131 : vector<8x128xf32>
    %135 = arith.mulf %126, %62 : vector<8x128xf32>
    %136 = arith.addf %134, %135 : vector<8x128xf32>
    %137 = vector.extract_strided_slice %105 {offsets = [0, 0], sizes = [8, 128], strides = [1, 1]} : vector<8x384xf32> to vector<8x128xf32>
    %138 = vector.extract_strided_slice %110 {offsets = [0, 0], sizes = [8, 128], strides = [1, 1]} : vector<8x384xf32> to vector<8x128xf32>
    %139 = arith.addf %137, %138 : vector<8x128xf32>
    %140 = arith.negf %139 : vector<8x128xf32>
    %141 = math.exp %140 : vector<8x128xf32>
    %cst_49 = arith.constant 1.000000e+00 : f32
    %142 = vector.broadcast %cst_49 : f32 to vector<8x128xf32>
    %143 = arith.addf %142, %141 : vector<8x128xf32>
    %144 = arith.divf %142, %143 : vector<8x128xf32>
    %145 = vector.extract_strided_slice %105 {offsets = [0, 128], sizes = [8, 128], strides = [1, 1]} : vector<8x384xf32> to vector<8x128xf32>
    %146 = vector.extract_strided_slice %110 {offsets = [0, 128], sizes = [8, 128], strides = [1, 1]} : vector<8x384xf32> to vector<8x128xf32>
    %147 = arith.addf %145, %146 : vector<8x128xf32>
    %148 = arith.negf %147 : vector<8x128xf32>
    %149 = math.exp %148 : vector<8x128xf32>
    %cst_50 = arith.constant 1.000000e+00 : f32
    %150 = vector.broadcast %cst_50 : f32 to vector<8x128xf32>
    %151 = arith.addf %150, %149 : vector<8x128xf32>
    %152 = arith.divf %150, %151 : vector<8x128xf32>
    %153 = vector.extract_strided_slice %105 {offsets = [0, 256], sizes = [8, 128], strides = [1, 1]} : vector<8x384xf32> to vector<8x128xf32>
    %154 = vector.extract_strided_slice %110 {offsets = [0, 256], sizes = [8, 128], strides = [1, 1]} : vector<8x384xf32> to vector<8x128xf32>
    %155 = arith.mulf %144, %154 : vector<8x128xf32>
    %156 = arith.addf %153, %155 : vector<8x128xf32>
    %157 = math.tanh %156 : vector<8x128xf32>
    %cst_51 = arith.constant 1.000000e+00 : f32
    %158 = vector.broadcast %cst_51 : f32 to vector<8x128xf32>
    %159 = arith.subf %158, %152 : vector<8x128xf32>
    %160 = arith.mulf %159, %157 : vector<8x128xf32>
    %161 = arith.mulf %152, %88 : vector<8x128xf32>
    %162 = arith.addf %160, %161 : vector<8x128xf32>
    %163 = arith.index_cast %c1_i32 : i32 to index
    %c0_52 = arith.constant 0 : index
    %c0_53 = arith.constant 0 : index
    %164 = vector.load %arg9[%163, %c0_52, %c0_53] : memref<4x8x128xf32, #tpu.memory_space<vmem>>, vector<1x8x128xf32>
    %165 = vector.shape_cast %164 : vector<1x8x128xf32> to vector<8x128xf32>
    %166 = vector.shape_cast %136 : vector<8x128xf32> to vector<1x8x128xf32>
    tpu.vector_store %arg9[%163, %c0_52, %c0_53], %166 {strides = array<i32>} : memref<4x8x128xf32, #tpu.memory_space<vmem>>, vector<1x8x128xf32>,
    %167 = arith.index_cast %97 : i32 to index
    %c0_54 = arith.constant 0 : index
    %c0_55 = arith.constant 0 : index
    %168 = vector.load %arg10[%167, %c0_54, %c0_55] : memref<4x8x128xf32, #tpu.memory_space<vmem>>, vector<1x8x128xf32>
    %169 = vector.shape_cast %168 : vector<1x8x128xf32> to vector<8x128xf32>
    %170 = vector.shape_cast %162 : vector<8x128xf32> to vector<1x8x128xf32>
    tpu.vector_store %arg10[%167, %c0_54, %c0_55], %170 {strides = array<i32>} : memref<4x8x128xf32, #tpu.memory_space<vmem>>, vector<1x8x128xf32>,
    %c2_i32 = arith.constant 2 : i32
    %c3_i32_56 = arith.constant 3 : i32
    %171 = arith.subi %c3_i32_56, %c2_i32 : i32
    %c8_i32_57 = arith.constant 8 : i32
    %172 = arith.muli %c2_i32, %c8_i32_57 : i32
    %173 = tpu.assume_multiple %172, 8 : i32
    %174 = arith.index_cast %173 : i32 to index
    %c0_58 = arith.constant 0 : index
    %175 = vector.load %arg13[%174, %c0_58] : memref<32x384xf32, #tpu.memory_space<vmem>>, vector<8x384xf32>
    %c8_i32_59 = arith.constant 8 : i32
    %176 = arith.muli %171, %c8_i32_59 : i32
    %177 = tpu.assume_multiple %176, 8 : i32
    %178 = arith.index_cast %177 : i32 to index
    %c0_60 = arith.constant 0 : index
    %179 = vector.load %arg14[%178, %c0_60] : memref<32x384xf32, #tpu.memory_space<vmem>>, vector<8x384xf32>
    %180 = tpu.concatenate %136, %162 in 1 : vector<8x128xf32>, vector<8x128xf32> -> vector<8x256xf32>
    %cst_61 = arith.constant dense<0.000000e+00> : vector<8x768xf32>
    %181 = tpu.matmul %180, %3, %cst_61 {dimension_numbers = #tpu.dot_dimension_numbers<[1], [0], [0], [1], [0, 0, 1, 1], [], []>} : vector<8x256xf32>, vector<256x768xf32>, vector<8x768xf32> -> vector<8x768xf32>
    %182 = arith.addf %181, %20 : vector<8x768xf32>
    %183 = vector.extract_strided_slice %182 {offsets = [0, 0], sizes = [8, 384], strides = [1, 1]} : vector<8x768xf32> to vector<8x384xf32>
    %184 = vector.extract_strided_slice %182 {offsets = [0, 384], sizes = [8, 384], strides = [1, 1]} : vector<8x768xf32> to vector<8x384xf32>
    %185 = vector.extract_strided_slice %175 {offsets = [0, 0], sizes = [8, 128], strides = [1, 1]} : vector<8x384xf32> to vector<8x128xf32>
    %186 = vector.extract_strided_slice %183 {offsets = [0, 0], sizes = [8, 128], strides = [1, 1]} : vector<8x384xf32> to vector<8x128xf32>
    %187 = arith.addf %185, %186 : vector<8x128xf32>
    %188 = arith.negf %187 : vector<8x128xf32>
    %189 = math.exp %188 : vector<8x128xf32>
    %cst_62 = arith.constant 1.000000e+00 : f32
    %190 = vector.broadcast %cst_62 : f32 to vector<8x128xf32>
    %191 = arith.addf %190, %189 : vector<8x128xf32>
    %192 = arith.divf %190, %191 : vector<8x128xf32>
    %193 = vector.extract_strided_slice %175 {offsets = [0, 128], sizes = [8, 128], strides = [1, 1]} : vector<8x384xf32> to vector<8x128xf32>
    %194 = vector.extract_strided_slice %183 {offsets = [0, 128], sizes = [8, 128], strides = [1, 1]} : vector<8x384xf32> to vector<8x128xf32>
    %195 = arith.addf %193, %194 : vector<8x128xf32>
    %196 = arith.negf %195 : vector<8x128xf32>
    %197 = math.exp %196 : vector<8x128xf32>
    %cst_63 = arith.constant 1.000000e+00 : f32
    %198 = vector.broadcast %cst_63 : f32 to vector<8x128xf32>
    %199 = arith.addf %198, %197 : vector<8x128xf32>
    %200 = arith.divf %198, %199 : vector<8x128xf32>
    %201 = vector.extract_strided_slice %175 {offsets = [0, 256], sizes = [8, 128], strides = [1, 1]} : vector<8x384xf32> to vector<8x128xf32>
    %202 = vector.extract_strided_slice %183 {offsets = [0, 256], sizes = [8, 128], strides = [1, 1]} : vector<8x384xf32> to vector<8x128xf32>
    %203 = arith.mulf %192, %202 : vector<8x128xf32>
    %204 = arith.addf %201, %203 : vector<8x128xf32>
    %205 = math.tanh %204 : vector<8x128xf32>
    %cst_64 = arith.constant 1.000000e+00 : f32
    %206 = vector.broadcast %cst_64 : f32 to vector<8x128xf32>
    %207 = arith.subf %206, %200 : vector<8x128xf32>
    %208 = arith.mulf %207, %205 : vector<8x128xf32>
    %209 = arith.mulf %200, %136 : vector<8x128xf32>
    %210 = arith.addf %208, %209 : vector<8x128xf32>
    %211 = vector.extract_strided_slice %179 {offsets = [0, 0], sizes = [8, 128], strides = [1, 1]} : vector<8x384xf32> to vector<8x128xf32>
    %212 = vector.extract_strided_slice %184 {offsets = [0, 0], sizes = [8, 128], strides = [1, 1]} : vector<8x384xf32> to vector<8x128xf32>
    %213 = arith.addf %211, %212 : vector<8x128xf32>
    %214 = arith.negf %213 : vector<8x128xf32>
    %215 = math.exp %214 : vector<8x128xf32>
    %cst_65 = arith.constant 1.000000e+00 : f32
    %216 = vector.broadcast %cst_65 : f32 to vector<8x128xf32>
    %217 = arith.addf %216, %215 : vector<8x128xf32>
    %218 = arith.divf %216, %217 : vector<8x128xf32>
    %219 = vector.extract_strided_slice %179 {offsets = [0, 128], sizes = [8, 128], strides = [1, 1]} : vector<8x384xf32> to vector<8x128xf32>
    %220 = vector.extract_strided_slice %184 {offsets = [0, 128], sizes = [8, 128], strides = [1, 1]} : vector<8x384xf32> to vector<8x128xf32>
    %221 = arith.addf %219, %220 : vector<8x128xf32>
    %222 = arith.negf %221 : vector<8x128xf32>
    %223 = math.exp %222 : vector<8x128xf32>
    %cst_66 = arith.constant 1.000000e+00 : f32
    %224 = vector.broadcast %cst_66 : f32 to vector<8x128xf32>
    %225 = arith.addf %224, %223 : vector<8x128xf32>
    %226 = arith.divf %224, %225 : vector<8x128xf32>
    %227 = vector.extract_strided_slice %179 {offsets = [0, 256], sizes = [8, 128], strides = [1, 1]} : vector<8x384xf32> to vector<8x128xf32>
    %228 = vector.extract_strided_slice %184 {offsets = [0, 256], sizes = [8, 128], strides = [1, 1]} : vector<8x384xf32> to vector<8x128xf32>
    %229 = arith.mulf %218, %228 : vector<8x128xf32>
    %230 = arith.addf %227, %229 : vector<8x128xf32>
    %231 = math.tanh %230 : vector<8x128xf32>
    %cst_67 = arith.constant 1.000000e+00 : f32
    %232 = vector.broadcast %cst_67 : f32 to vector<8x128xf32>
    %233 = arith.subf %232, %226 : vector<8x128xf32>
    %234 = arith.mulf %233, %231 : vector<8x128xf32>
    %235 = arith.mulf %226, %162 : vector<8x128xf32>
    %236 = arith.addf %234, %235 : vector<8x128xf32>
    %237 = arith.index_cast %c2_i32 : i32 to index
    %c0_68 = arith.constant 0 : index
    %c0_69 = arith.constant 0 : index
    %238 = vector.load %arg9[%237, %c0_68, %c0_69] : memref<4x8x128xf32, #tpu.memory_space<vmem>>, vector<1x8x128xf32>
    %239 = vector.shape_cast %238 : vector<1x8x128xf32> to vector<8x128xf32>
    %240 = vector.shape_cast %210 : vector<8x128xf32> to vector<1x8x128xf32>
    tpu.vector_store %arg9[%237, %c0_68, %c0_69], %240 {strides = array<i32>} : memref<4x8x128xf32, #tpu.memory_space<vmem>>, vector<1x8x128xf32>,
    %241 = arith.index_cast %171 : i32 to index
    %c0_70 = arith.constant 0 : index
    %c0_71 = arith.constant 0 : index
    %242 = vector.load %arg10[%241, %c0_70, %c0_71] : memref<4x8x128xf32, #tpu.memory_space<vmem>>, vector<1x8x128xf32>
    %243 = vector.shape_cast %242 : vector<1x8x128xf32> to vector<8x128xf32>
    %244 = vector.shape_cast %236 : vector<8x128xf32> to vector<1x8x128xf32>
    tpu.vector_store %arg10[%241, %c0_70, %c0_71], %244 {strides = array<i32>} : memref<4x8x128xf32, #tpu.memory_space<vmem>>, vector<1x8x128xf32>,
    %c3_i32_72 = arith.constant 3 : i32
    %c3_i32_73 = arith.constant 3 : i32
    %245 = arith.subi %c3_i32_73, %c3_i32_72 : i32
    %c8_i32_74 = arith.constant 8 : i32
    %246 = arith.muli %c3_i32_72, %c8_i32_74 : i32
    %247 = tpu.assume_multiple %246, 8 : i32
    %248 = arith.index_cast %247 : i32 to index
    %c0_75 = arith.constant 0 : index
    %249 = vector.load %arg13[%248, %c0_75] : memref<32x384xf32, #tpu.memory_space<vmem>>, vector<8x384xf32>
    %c8_i32_76 = arith.constant 8 : i32
    %250 = arith.muli %245, %c8_i32_76 : i32
    %251 = tpu.assume_multiple %250, 8 : i32
    %252 = arith.index_cast %251 : i32 to index
    %c0_77 = arith.constant 0 : index
    %253 = vector.load %arg14[%252, %c0_77] : memref<32x384xf32, #tpu.memory_space<vmem>>, vector<8x384xf32>
    %254 = tpu.concatenate %210, %236 in 1 : vector<8x128xf32>, vector<8x128xf32> -> vector<8x256xf32>
    %cst_78 = arith.constant dense<0.000000e+00> : vector<8x768xf32>
    %255 = tpu.matmul %254, %3, %cst_78 {dimension_numbers = #tpu.dot_dimension_numbers<[1], [0], [0], [1], [0, 0, 1, 1], [], []>} : vector<8x256xf32>, vector<256x768xf32>, vector<8x768xf32> -> vector<8x768xf32>
    %256 = arith.addf %255, %20 : vector<8x768xf32>
    %257 = vector.extract_strided_slice %256 {offsets = [0, 0], sizes = [8, 384], strides = [1, 1]} : vector<8x768xf32> to vector<8x384xf32>
    %258 = vector.extract_strided_slice %256 {offsets = [0, 384], sizes = [8, 384], strides = [1, 1]} : vector<8x768xf32> to vector<8x384xf32>
    %259 = vector.extract_strided_slice %249 {offsets = [0, 0], sizes = [8, 128], strides = [1, 1]} : vector<8x384xf32> to vector<8x128xf32>
    %260 = vector.extract_strided_slice %257 {offsets = [0, 0], sizes = [8, 128], strides = [1, 1]} : vector<8x384xf32> to vector<8x128xf32>
    %261 = arith.addf %259, %260 : vector<8x128xf32>
    %262 = arith.negf %261 : vector<8x128xf32>
    %263 = math.exp %262 : vector<8x128xf32>
    %cst_79 = arith.constant 1.000000e+00 : f32
    %264 = vector.broadcast %cst_79 : f32 to vector<8x128xf32>
    %265 = arith.addf %264, %263 : vector<8x128xf32>
    %266 = arith.divf %264, %265 : vector<8x128xf32>
    %267 = vector.extract_strided_slice %249 {offsets = [0, 128], sizes = [8, 128], strides = [1, 1]} : vector<8x384xf32> to vector<8x128xf32>
    %268 = vector.extract_strided_slice %257 {offsets = [0, 128], sizes = [8, 128], strides = [1, 1]} : vector<8x384xf32> to vector<8x128xf32>
    %269 = arith.addf %267, %268 : vector<8x128xf32>
    %270 = arith.negf %269 : vector<8x128xf32>
    %271 = math.exp %270 : vector<8x128xf32>
    %cst_80 = arith.constant 1.000000e+00 : f32
    %272 = vector.broadcast %cst_80 : f32 to vector<8x128xf32>
    %273 = arith.addf %272, %271 : vector<8x128xf32>
    %274 = arith.divf %272, %273 : vector<8x128xf32>
    %275 = vector.extract_strided_slice %249 {offsets = [0, 256], sizes = [8, 128], strides = [1, 1]} : vector<8x384xf32> to vector<8x128xf32>
    %276 = vector.extract_strided_slice %257 {offsets = [0, 256], sizes = [8, 128], strides = [1, 1]} : vector<8x384xf32> to vector<8x128xf32>
    %277 = arith.mulf %266, %276 : vector<8x128xf32>
    %278 = arith.addf %275, %277 : vector<8x128xf32>
    %279 = math.tanh %278 : vector<8x128xf32>
    %cst_81 = arith.constant 1.000000e+00 : f32
    %280 = vector.broadcast %cst_81 : f32 to vector<8x128xf32>
    %281 = arith.subf %280, %274 : vector<8x128xf32>
    %282 = arith.mulf %281, %279 : vector<8x128xf32>
    %283 = arith.mulf %274, %210 : vector<8x128xf32>
    %284 = arith.addf %282, %283 : vector<8x128xf32>
    %285 = vector.extract_strided_slice %253 {offsets = [0, 0], sizes = [8, 128], strides = [1, 1]} : vector<8x384xf32> to vector<8x128xf32>
    %286 = vector.extract_strided_slice %258 {offsets = [0, 0], sizes = [8, 128], strides = [1, 1]} : vector<8x384xf32> to vector<8x128xf32>
    %287 = arith.addf %285, %286 : vector<8x128xf32>
    %288 = arith.negf %287 : vector<8x128xf32>
    %289 = math.exp %288 : vector<8x128xf32>
    %cst_82 = arith.constant 1.000000e+00 : f32
    %290 = vector.broadcast %cst_82 : f32 to vector<8x128xf32>
    %291 = arith.addf %290, %289 : vector<8x128xf32>
    %292 = arith.divf %290, %291 : vector<8x128xf32>
    %293 = vector.extract_strided_slice %253 {offsets = [0, 128], sizes = [8, 128], strides = [1, 1]} : vector<8x384xf32> to vector<8x128xf32>
    %294 = vector.extract_strided_slice %258 {offsets = [0, 128], sizes = [8, 128], strides = [1, 1]} : vector<8x384xf32> to vector<8x128xf32>
    %295 = arith.addf %293, %294 : vector<8x128xf32>
    %296 = arith.negf %295 : vector<8x128xf32>
    %297 = math.exp %296 : vector<8x128xf32>
    %cst_83 = arith.constant 1.000000e+00 : f32
    %298 = vector.broadcast %cst_83 : f32 to vector<8x128xf32>
    %299 = arith.addf %298, %297 : vector<8x128xf32>
    %300 = arith.divf %298, %299 : vector<8x128xf32>
    %301 = vector.extract_strided_slice %253 {offsets = [0, 256], sizes = [8, 128], strides = [1, 1]} : vector<8x384xf32> to vector<8x128xf32>
    %302 = vector.extract_strided_slice %258 {offsets = [0, 256], sizes = [8, 128], strides = [1, 1]} : vector<8x384xf32> to vector<8x128xf32>
    %303 = arith.mulf %292, %302 : vector<8x128xf32>
    %304 = arith.addf %301, %303 : vector<8x128xf32>
    %305 = math.tanh %304 : vector<8x128xf32>
    %cst_84 = arith.constant 1.000000e+00 : f32
    %306 = vector.broadcast %cst_84 : f32 to vector<8x128xf32>
    %307 = arith.subf %306, %300 : vector<8x128xf32>
    %308 = arith.mulf %307, %305 : vector<8x128xf32>
    %309 = arith.mulf %300, %236 : vector<8x128xf32>
    %310 = arith.addf %308, %309 : vector<8x128xf32>
    %311 = arith.index_cast %c3_i32_72 : i32 to index
    %c0_85 = arith.constant 0 : index
    %c0_86 = arith.constant 0 : index
    %312 = vector.load %arg9[%311, %c0_85, %c0_86] : memref<4x8x128xf32, #tpu.memory_space<vmem>>, vector<1x8x128xf32>
    %313 = vector.shape_cast %312 : vector<1x8x128xf32> to vector<8x128xf32>
    %314 = vector.shape_cast %284 : vector<8x128xf32> to vector<1x8x128xf32>
    tpu.vector_store %arg9[%311, %c0_85, %c0_86], %314 {strides = array<i32>} : memref<4x8x128xf32, #tpu.memory_space<vmem>>, vector<1x8x128xf32>,
    %315 = arith.index_cast %245 : i32 to index
    %c0_87 = arith.constant 0 : index
    %c0_88 = arith.constant 0 : index
    %316 = vector.load %arg10[%315, %c0_87, %c0_88] : memref<4x8x128xf32, #tpu.memory_space<vmem>>, vector<1x8x128xf32>
    %317 = vector.shape_cast %316 : vector<1x8x128xf32> to vector<8x128xf32>
    %318 = vector.shape_cast %310 : vector<8x128xf32> to vector<1x8x128xf32>
    tpu.vector_store %arg10[%315, %c0_87, %c0_88], %318 {strides = array<i32>} : memref<4x8x128xf32, #tpu.memory_space<vmem>>, vector<1x8x128xf32>,
    %c4_i32 = arith.constant 4 : i32
    %c0_89 = arith.constant 0 : index
    %c0_90 = arith.constant 0 : index
    %319 = vector.load %arg11[%c0_89, %c0_90] : memref<8x128xf32, #tpu.memory_space<vmem>>, vector<8x128xf32>
    tpu.vector_store %arg11[%c0_89, %c0_90], %284 {strides = array<i32>} : memref<8x128xf32, #tpu.memory_space<vmem>>, vector<8x128xf32>,
    %c0_91 = arith.constant 0 : index
    %c0_92 = arith.constant 0 : index
    %320 = vector.load %arg12[%c0_91, %c0_92] : memref<8x128xf32, #tpu.memory_space<vmem>>, vector<8x128xf32>
    tpu.vector_store %arg12[%c0_91, %c0_92], %310 {strides = array<i32>} : memref<8x128xf32, #tpu.memory_space<vmem>>, vector<8x128xf32>,
    return
  }
  func.func @transform_0(%arg0: i32) -> (i32, i32) {
    %c0_i32 = arith.constant 0 : i32
    %c0_i32_0 = arith.constant 0 : i32
    return %arg0, %c0_i32 : i32, i32
  }
  func.func @transform_1(%arg0: i32) -> (i32, i32) {
    %c1_i32 = arith.constant 1 : i32
    %0 = arith.subi %c1_i32, %arg0 : i32
    %c0_i32 = arith.constant 0 : i32
    %c0_i32_0 = arith.constant 0 : i32
    return %0, %c0_i32 : i32, i32
  }
  func.func @transform_2(%arg0: i32) -> (i32, i32) {
    %c0_i32 = arith.constant 0 : i32
    %c0_i32_0 = arith.constant 0 : i32
    %c0_i32_1 = arith.constant 0 : i32
    return %c0_i32, %c0_i32_0 : i32, i32
  }
  func.func @transform_3(%arg0: i32) -> (i32, i32) {
    %c0_i32 = arith.constant 0 : i32
    %c0_i32_0 = arith.constant 0 : i32
    %c0_i32_1 = arith.constant 0 : i32
    return %c0_i32, %c0_i32_0 : i32, i32
  }
  func.func @transform_4(%arg0: i32) -> (i32, i32) {
    %c0_i32 = arith.constant 0 : i32
    %c0_i32_0 = arith.constant 0 : i32
    %c0_i32_1 = arith.constant 0 : i32
    return %c0_i32, %c0_i32_0 : i32, i32
  }
  func.func @transform_5(%arg0: i32) -> (i32, i32) {
    %c0_i32 = arith.constant 0 : i32
    %c0_i32_0 = arith.constant 0 : i32
    %c0_i32_1 = arith.constant 0 : i32
    return %c0_i32, %c0_i32_0 : i32, i32
  }
  func.func @transform_6(%arg0: i32) -> (i32, i32) {
    %c0_i32 = arith.constant 0 : i32
    %c0_i32_0 = arith.constant 0 : i32
    %c0_i32_1 = arith.constant 0 : i32
    return %c0_i32, %c0_i32_0 : i32, i32
  }
  func.func @transform_7(%arg0: i32) -> (i32, i32) {
    %c0_i32 = arith.constant 0 : i32
    %c0_i32_0 = arith.constant 0 : i32
    %c0_i32_1 = arith.constant 0 : i32
    return %c0_i32, %c0_i32_0 : i32, i32
  }
  func.func @transform_8(%arg0: i32) -> (i32, i32, i32) {
    %c0_i32 = arith.constant 0 : i32
    %c0_i32_0 = arith.constant 0 : i32
    %c0_i32_1 = arith.constant 0 : i32
    return %arg0, %c0_i32, %c0_i32_0 : i32, i32, i32
  }
  func.func @transform_9(%arg0: i32) -> (i32, i32, i32) {
    %c1_i32 = arith.constant 1 : i32
    %0 = arith.subi %c1_i32, %arg0 : i32
    %c0_i32 = arith.constant 0 : i32
    %c0_i32_0 = arith.constant 0 : i32
    %c0_i32_1 = arith.constant 0 : i32
    return %0, %c0_i32, %c0_i32_0 : i32, i32, i32
  }
  func.func @transform_10(%arg0: i32) -> (i32, i32) {
    %c0_i32 = arith.constant 0 : i32
    %c0_i32_0 = arith.constant 0 : i32
    %c0_i32_1 = arith.constant 0 : i32
    return %c0_i32, %c0_i32_0 : i32, i32
  }
  func.func @transform_11(%arg0: i32) -> (i32, i32) {
    %c0_i32 = arith.constant 0 : i32
    %c0_i32_0 = arith.constant 0 : i32
    %c0_i32_1 = arith.constant 0 : i32
    return %c0_i32, %c0_i32_0 : i32, i32
  }
}

</mosaic_0001>

<bundles_post_ra>
// kernel: tpu_custom_call.1
= control target key start
LH: loop header
LB: loop body
LE: loop exit
PB: predicated region body
PF: predicated region fallthrough
CT: control target
= control target key end

     0   :  { %s4937_s0 = inlined_call_operand.vmem [shape: f32[64,16], index: 0, kind: input, shape index: {}]   ;;  %s4938_s1 = inlined_call_operand.vmem [shape: f32[64,16], index: 1, kind: input, shape index: {}]   ;;  %s4939_s2 = inlined_call_operand.vmem [shape: f32[16,384], index: 2, kind: input, shape index: {}]   ;;  %s4940_s3 = inlined_call_operand.vmem [shape: f32[16,384], index: 3, kind: input, shape index: {}]   ;;  %s4941_s4 = inlined_call_operand.hbm [shape: f32[256,768], index: 4, kind: input, shape index: {}]   ;;  %s4942_s5 = inlined_call_operand.vmem [shape: f32[1,384], index: 5, kind: input, shape index: {}]   ;;  %s4943_s6 = inlined_call_operand.vmem [shape: f32[1,384], index: 6, kind: input, shape index: {}]   ;;  %s4944_s7 = inlined_call_operand.vmem [shape: f32[1,768], index: 7, kind: input, shape index: {}]   ;;  %s4945_s8 = inlined_call_operand.hbm [shape: f32[8,8,128], index: 8, kind: output, shape index: {0}]   ;;  %s4946_s9 = inlined_call_operand.hbm [shape: f32[8,8,128], index: 9, kind: output, shape index: {1}]   ;;  %s4947_s10 = inlined_call_operand.hbm [shape: f32[8,128], index: 10, kind: output, shape index: {2}]   ;;  %s4948_s11 = inlined_call_operand.hbm [shape: f32[8,128], index: 11, kind: output, shape index: {3}]  }
   0x1   :  { %5117 = sst [smem:[#allocation126_spill]] %s4941_s4 }
   0x2   :  { %17 = vsyncpa [#allocation5], 0 }
   0x3   :  { %18 = vsyncpa [#allocation6], 0 }
   0x4   :  { %20 = vsyncpa [#allocation6 + $0x1], 0 }
   0x5   :  { %21 = vsyncpa [#allocation9], 0 }
   0x6   :  { %23 = vsyncpa [#allocation9 + $0x1], 0 }
   0x7   :  { %24 = vsyncpa [#allocation12], 0  ;;  %s3777_s17 = smov 0   ;;  %s3779_s18 = smov 0  }
   0x8   :  { %s3781_s19 = smov 0   ;;  %s3783_s20 = smov 0  }
   0x9   :  { %s3785_s21 = smov 0   ;;  %s3787_s22 = smov 0  }
   0xa   :  { %s3789_s23 = smov 0  }
   0xb LB: > { %5118 = sst [smem:[#allocation18_spill]] %s3684_s18  ;;  %s3813_s24 = sadd.s32 4294967295, %s3704_s23   ;;  %s3704_s23 = sphi %s3789_s23, %s5408_s23   ;;  %s3700_s22 = sphi %s3787_s22, %s5413_s22   ;;  %s3696_s21 = sphi %s3785_s21, %s5415_s21   ;;  %s3692_s20 = sphi %s3783_s20, %s5414_s20   ;;  %s3688_s19 = sphi %s3781_s19, %s5411_s19   ;;  %s3684_s18 = sphi %s3779_s18, %s5410_s18   ;;  %s3680_s17 = sphi %s3777_s17, %s5409_s17  }
   0xc   : > { %5119 = sst [smem:[#allocation19_spill]] %s3688_s19  ;;  %s4949_s25 = sadd.s32 4294967294, %s3704_s23  }
   0xd   : > { %5120 = sst [smem:[#allocation20_spill]] %s3692_s20  ;;  %s3817_s26 = sadd.s32 1, %s3704_s23  }
   0xe   : > { %5121 = sst [smem:[#allocation21_spill]] %s3700_s22  ;;  %s217_s27 = sadd.s32 1, %s3700_s22 }
   0xf   : > { %5122 = sst [smem:[#allocation22_spill]] %s3817_s26  ;;  %s214_s28 = ssub.s32 %s3704_s23, %s3817_s26 }
  0x10   : > { %p227_p0 = scmp.ne.s32.totalorder %s3700_s22, %s3696_s21  ;;  %p215_p1 = scmp.eq.s32.totalorder %s214_s28, 0 }
  0x11   : > { %p4954_p2 = scmp.eq.s32.totalorder %s3813_s24, 1  ;;  %p233_p3 = scmp.ne.s32.totalorder %s3696_s21, %s3692_s20 }
  0x12   : > { %p3829_p4 = scmp.eq.s32.totalorder %s4949_s25, 1  ;;  %s240_s14 = ssub.s32 1, %s3704_s23 }
  0x13   : > { %s3834_s30 = scalar_select %p215_p1, %s3700_s22, %s217_s27  }
  0x14   : > { %p3838_p5 = por %p4954_p2, %p227_p0  ;;  %p3844_p6 = por %p3829_p4, %p233_p3 }
  0x15   : > { %5124 = sst [smem:[#allocation23_spill]] %s3834_s30  ;;  %s241_s15 = ssub.s32 1, %s3817_s26 }
  0x16   : > { %s5125_s12 = scalar_select %p3838_p5, 1, 0 }
  0x17   : > { %s5126_s13 = scalar_select %p3844_p6, 1, 0 }
  0x18   : > { %s242_s16 = ssub.s32 %s240_s14, %s241_s15  ;;  %s245_s28 = sadd.s32 1, %s3688_s19 }
  0x19   : > { %5127 = sst [smem:[#allocation24_spill]] %s5126_s13  ;;  %p243_p7 = scmp.eq.s32.totalorder %s242_s16, 0 }
  0x1a   : > { %p255_p8 = scmp.ne.s32.totalorder %s3688_s19, %s3684_s18  ;;  %p261_p9 = scmp.ne.s32.totalorder %s3684_s18, %s3680_s17 }
  0x1b   : > { %p2409_p10 = scmp.ge.s32.totalorder %s3704_s23, 1  ;;  %p311_p13 = scmp.lt.s32.totalorder %s3704_s23, 3 }
  0x1c   : > { %s3857_s27 = scalar_select %p243_p7, %s3688_s19, %s245_s28  }
  0x1d   : > { %p3861_p11 = por %p255_p8, %p4954_p2  ;;  %p3867_p12 = por %p261_p9, %p3829_p4 }
  0x1e   : > { %5128 = sst [smem:[#allocation25_spill]] %s3857_s27  ;;  %p4956_p1 = scmp.eq.s32.totalorder %s3813_s24, 0 }
  0x1f   : > { %s5129_s25 = scalar_select %p3861_p11, 1, 0 }
  0x20   : > { %s5130_s30 = scalar_select %p3867_p12, 1, 0 }
  0x21   : > { %p3874_p3 = pnand %p2409_p10, %p311_p13  ;;  %s3706_s17 = smov [#allocation4]  }
  0x22   : > { %5131 = sst [smem:[#allocation26_spill]] %s5130_s30  ;;  %s329_s15 = sshll.u32 %s3706_s17, 4  ;;  %s330_s15 = int_to_ptr.vmem [resolvable:$true] %s329_s15 }
  0x23   : > { %s5132_s14 = scalar_select %p3874_p3, 1, 0 }
  0x24   : > { %p3331_p7 = pneg %p3874_p3  ;;  %s5134_s4 = sld [smem:[#allocation126_spill]] }
  0x26   : > { %p3882_p8 = pnand %p4956_p1, %p3331_p7 }
  0x28   : > { %p3496_p9 = pneg %p3882_p8 }
  0x2a   : > { %s3494_s22 = scalar_lea.hbm %s5134_s4, 24576 }
  0x2b   : > { %p3495_p4 = scmp.ne.s32.totalorder %s5134_s4, %s3494_s22  ;;  %p3501_p7 = scmp.lt.u32.totalorder %s3494_s22, %s5134_s4 }
  0x2d   : > { %p3497_p10 = pnand %p3496_p9, %p3495_p4 }
  0x2f   : > { %p3498_p13 = pneg %p3497_p10 }
  0x31   : > { %p3503_p2 = pnand %p3501_p7, %p3498_p13 }
  0x33   : > { %3506 = shalt.err (!%p3503_p2)
}
  0x34   : > { %s3507_s30 = scalar_lea.vmem %s330_s15, 24576  ;;  %p3515_p6 = scmp.lt.s32.totalorder %s330_s15, %s330_s15 }
  0x35   : > { %p3508_p0 = scmp.ne.s32.totalorder %s330_s15, %s3507_s30  ;;  %p3516_p11 = scmp.lt.s32.totalorder %s3507_s30, %s3507_s30 }
  0x37   : > { %p3510_p1 = pnand %p3508_p0, %p3496_p9  ;;  %p3517_p5 = por %p3516_p11, %p3515_p6 }
  0x39   : > { %p3511_p12 = pneg %p3510_p1 }
  0x3b   : > { %p3518_p3 = pnand %p3517_p5, %p3511_p12 }
  0x3d   : > { %3521 = shalt.err (!%p3518_p3)
}
  0x3e   : > { %s3707_s19 = smov 768   ;;  %s3708_s27 = smov 48  }
  0x3f   : > { %3334 = dma.hbm_to_vmem [thread:$0]  (!%p3882_p8), %s5134_s4, 24576, %s330_s15, [#allocation5], %s3707_s19, %s3707_s19, %s3708_s27  }
  0x40   : > { %p5135_p4 = scmp.ne.s32.totalorder %s5132_s14, 0 }
  0x42   : > { %374 = sbr.rel (%p5135_p4) target bundleno = 1491 (0x5d3), region = 52 }
  0x49   : > { %p5136_p2 = scmp.eq.s32.totalorder %s3813_s24, 0 }
  0x4b   : > { %3659 = dma.done.wait (%p5136_p2), [#allocation5], 24576   ;;  %p5137_p0 = pmov %p5136_p2 }
  0x4c   : > { %s4962_s22 = sand.u32 1, %s3696_s21   ;;  %s418_s26 = sand.u32 1, %s3684_s18  }
  0x4d   : > { %3661 = vsyncadd (%p5137_p0), [#allocation5], 4294942720  ;;  %s2414_s30 = sshll.u32 %s4962_s22, 5  ;;  %s2415_s15 = sshll.u32 %s418_s26, 5 }
  0x4e   : > { %s2416_s29 = sshll.u32 %s3813_s24, 2  ;;  %s431_s14 = ssub.s32 1, %s3813_s24 }
  0x4f   : > { %p426_p5 = scmp.lt.s32.totalorder %s2416_s29, 7  ;;  %s2418_s17 = sshll.u32 %s431_s14, 2 }
  0x50   : > { %p433_p6 = scmp.lt.s32.totalorder %s2418_s17, 7  ;;  %s3926_s26 = scalar_lea.vmem [#allocation7], %s2414_s30 }
  0x51   : > { %s5417_s29 = smov (!%p426_p5, %s2416_s29), 7  ;;  %s3928_s20 = scalar_lea.vmem [#allocation8], %s2415_s15 }
  0x52   : > { %s5419_s17 = smov (!%p433_p6, %s2418_s17), 7  ;;  %s2417_s19 = sshll.u32 %s5417_s29, 3 }
  0x53   : > { %s3919_s28 = scalar_lea.vmem %s4937_s0, %s2417_s19  ;;  %s2419_s4 = sshll.u32 %s5419_s17, 3 }
  0x54   : > { %s3924_s22 = scalar_lea.vmem %s4938_s1, %s2419_s4  ;;  %p5138_p11 = scmp.ne.s32.totalorder %s3813_s24, 0 }
  0x55   : > { %v3709_v0 = vmov (!%p5138_p11), 0.0  }
  0x56   : > { %445 = sbr.rel (%p5138_p11) target bundleno = 93 (0x5d), region = 60  ;;  %446 = vst [vmem:[#allocation10] sm:$0xff] (!%p5138_p11), %v3709_v0  ;;  %447 = vst [vmem:[#allocation11] sm:$0xff] (!%p5138_p11), %v3709_v0 }
  0x5d PF: > { %v645_v1 = vld [vmem:[%s4939_s2 + $0x8] sm:$0xff]  ;;  %v648_v2 = vld [vmem:[%s4939_s2 + $0x20] sm:$0xff]  ;;  %v647_v5 = vld [vmem:[%s4939_s2 + $0x18] sm:$0xff]  ;;  %v3710_v6 = vmov 0.0   ;;  %vm667_vm0 = vcmask 130048   ;;  %s2471_s15 = sshll.u32 %s3813_s24, 9 }
  0x5e   : > { %v644_v3 = vld [vmem:[%s4939_s2] sm:$0xff]  ;;  %v2505_v4 = vpack.c.bf16 %v648_v2, %v645_v1  ;;  %744 = vmatprep.mubr.f32.mxu0 %v3710_v6  ;;  %762 = vmatprep.mubr.f32.mxu1 %v3710_v6  ;;  %v646_v8 = vld [vmem:[%s4939_s2 + $0x10] sm:$0xff]  ;;  %v649_v9 = vld [vmem:[%s4939_s2 + $0x28] sm:$0xff]  ;;  %s2224_s16 = sshll.u32 %s3926_s26, 4  ;;  %s4771_s17 = scalar_lea.hbm %s4945_s8, %s2471_s15  ;;  %s4773_s16 = int_to_ptr.vmem [resolvable:$true] %s2224_s16 }
  0x5f   : > { %v2507_v7 = vpack.c.bf16 %v647_v5, %v644_v3  ;;  %v2509_v10 = vpack.c.bf16 %v649_v9, %v646_v8  ;;  %v871_v11 = vld [vmem:[%s4940_s3 + $0x8] sm:$0xff]  ;;  %v874_v12 = vld [vmem:[%s4940_s3 + $0x20] sm:$0xff]  ;;  %v643_v14 = vld [vmem:[%s3919_s28 + $0x18] sm:$0xff]  ;;  %s5388_s27 = sand.u32 1, %s3696_s21   ;;  %p5389_p1 = scmp.ne.s32.totalorder %s5125_s12, 0 }
  0x60   : > { %2506 = vmatprep.subr.bf16.mxu0 %v2505_v4  ;;  %3289 = vmatprep.subr.bf16.mxu1 %v2505_v4  ;;  %v640_v13 = vld [vmem:[%s3919_s28] sm:$0xff]  ;;  %v872_v15 = vld [vmem:[%s4940_s3 + $0x10] sm:$0xff]  ;;  %v2513_v16 = vpack.c.bf16 %v874_v12, %v871_v11  ;;  %v873_v18 = vld [vmem:[%s4940_s3 + $0x18] sm:$0xff]  ;;  %s3711_s4 = smov [#allocation7]  }
  0x61   : > { %2508 = vmatpush1.bf16.msra.mxu0 %v2507_v7  ;;  %3290 = vmatpush1.bf16.msra.mxu1 %v2507_v7  ;;  %v870_v17 = vld [vmem:[%s4940_s3] sm:$0xff]  ;;  %v875_v19 = vld [vmem:[%s4940_s3 + $0x28] sm:$0xff]  ;;  %v455_v22 = vld [vmem:[#allocation4 + $0x38] sm:$0xff]  ;;  %s3526_s18 = sshll.u32 %s3711_s4, 4  ;;  %s3527_s18 = int_to_ptr.vmem [resolvable:$false] %s3526_s18 }
  0x62   : > { %2510 = vmatprep.subr.bf16.mxu1 %v2509_v10  ;;  %v2517_v20 = vpack.c.bf16 %v875_v19, %v872_v15  ;;  %v449_v21 = vld [vmem:[#allocation4 + $0x8] sm:$0xff]  ;;  %v451_v23 = vld [vmem:[#allocation4 + $0x18] sm:$0xff]  ;;  %v2515_v26 = vpack.c.bf16 %v873_v18, %v870_v17  ;;  %v642_v27 = vld [vmem:[%s3919_s28 + $0x10] sm:$0xff]  ;;  %s3528_s13 = scalar_lea.vmem %s3527_s18, 1024  ;;  %p3529_p9 = scmp.lt.s32.totalorder %s4773_s16, %s3527_s18 }
  0x63   : > { %v457_v24 = vld [vmem:[#allocation4 + $0x48] sm:$0xff]  ;;  %v3978_v28 = vpack.c.bf16 %v455_v22, %v449_v21  ;;  %v866_v30 = vld [vmem:[%s3924_s22] sm:$0xff]  ;;  %v454_v32 = vld [vmem:[#allocation4 + $0x30] sm:$0xff] }
  0x64   : > { %2421 = vmatmul.mubr.msk.f32.vlgmr.msra.gmra.mrb[0].mxu0 %vm667_vm0, %v640_v13  ;;  %2424 = vmatmul.mubr.msk.f32.vlgmr.msra.gmra.mrb[0].mxu1 %vm667_vm0, %v643_v14  ;;  %v641_v25 = vld [vmem:[%s3919_s28 + $0x8] sm:$0xff]  ;;  %v3980_v29 = vpack.c.bf16 %v457_v24, %v451_v23  ;;  %v448_v31 = vld [vmem:[#allocation4] sm:$0xff]  ;;  %v450_v33 = vld [vmem:[#allocation4 + $0x10] sm:$0xff]  ;;  %s3522_s28 = scalar_lea.vmem %s4773_s16, 512 }
  0x65   : > { %2512 = vmatpush3.bf16.msra.mxu1 %v2509_v10  ;;  %750 = vmatprep.mubr.f32.mxu0 %v3710_v6  ;;  %5139 = vst [vmem:[#allocation27_spill] sm:$0xff] %v3978_v28  ;;  %v456_v34 = vld [vmem:[#allocation4 + $0x40] sm:$0xff]  ;;  %v461_v35 = vld [vmem:[#allocation4 + $0x68] sm:$0xff]  ;;  %v467_v36 = vld [vmem:[#allocation4 + $0x98] sm:$0xff]  ;;  %v3994_v40 = vpack.c.bf16 %v454_v32, %v448_v31  ;;  %p3523_p12 = scmp.ne.s32.totalorder %s4773_s16, %s3522_s28  ;;  %p3530_p10 = scmp.lt.s32.totalorder %s3528_s13, %s3522_s28 }
  0x66   : > { %2489 = vmatprep.mubr.msk.f32.mxu1 %vm667_vm0, %v640_v13  ;;  %2514 = vmatprep.subr.bf16.mxu1 %v2513_v16  ;;  %5140 = vst [vmem:[#allocation28_spill] sm:$0xff] %v3980_v29  ;;  %v463_v37 = vld [vmem:[#allocation4 + $0x78] sm:$0xff]  ;;  %v469_v38 = vld [vmem:[#allocation4 + $0xa8] sm:$0xff]  ;;  %v3996_v41 = vpack.c.bf16 %v456_v34, %v450_v33  ;;  %v460_v42 = vld [vmem:[#allocation4 + $0x60] sm:$0xff]  ;;  %v3998_v44 = vpack.c.bf16 %v467_v36, %v461_v35 }
  0x67   : > { %2518 = vmatprep.subr.bf16.mxu0 %v2517_v20  ;;  %v867_v39 = vld [vmem:[%s3924_s22 + $0x8] sm:$0xff]  ;;  %5141 = vst [vmem:[#allocation29_spill] sm:$0xff] %v3994_v40  ;;  %v466_v43 = vld [vmem:[#allocation4 + $0x90] sm:$0xff]  ;;  %v4000_v45 = vpack.c.bf16 %v469_v38, %v463_v37  ;;  %v468_v47 = vld [vmem:[#allocation4 + $0xa0] sm:$0xff]  ;;  %p3524_p3 = pnand %p3523_p12, %p5389_p1  ;;  %p3531_p13 = por %p3530_p10, %p3529_p9 }
  0x68   : > { %2422 = vmatmul.mubr.msk.f32.gmra.mrb[2].mxu0 %vm667_vm0, %v641_v25  ;;  %2490 = vmatmul.mubr.msk.f32.vlgmr.msra.gmra.mrb[2].mxu1 %vm667_vm0, %v641_v25  ;;  %5142 = vst [vmem:[#allocation30_spill] sm:$0xff] %v3996_v41  ;;  %5143 = vst [vmem:[#allocation31_spill] sm:$0xff] %v3998_v44  ;;  %v462_v46 = vld [vmem:[#allocation4 + $0x70] sm:$0xff]  ;;  %v473_v48 = vld [vmem:[#allocation4 + $0xc8] sm:$0xff]  ;;  %v4006_v52 = vpack.c.bf16 %v466_v43, %v460_v42 }
  0x69   : > { %2516 = vmatpush1.bf16.msra.mxu1 %v2515_v26  ;;  %756 = vmatprep.mubr.f32.mxu0 %v3710_v6  ;;  %5144 = vst [vmem:[#allocation32_spill] sm:$0xff] %v4000_v45  ;;  %v479_v49 = vld [vmem:[#allocation4 + $0xf8] sm:$0xff]  ;;  %v481_v51 = vld [vmem:[#allocation4 + $0x108] sm:$0xff]  ;;  %v4008_v53 = vpack.c.bf16 %v468_v47, %v462_v46  ;;  %v472_v54 = vld [vmem:[#allocation4 + $0xc0] sm:$0xff]  ;;  %p3525_p8 = pneg %p3524_p3 }
  0x6a   : > { %2492 = vmatprep.mubr.msk.f32.mxu1 %vm667_vm0, %v642_v27  ;;  %2520 = vmatpush3.bf16.msra.mxu0 %v2517_v20  ;;  %v475_v50 = vld [vmem:[#allocation4 + $0xd8] sm:$0xff]  ;;  %5145 = vst [vmem:[#allocation33_spill] sm:$0xff] %v4006_v52  ;;  %v478_v55 = vld [vmem:[#allocation4 + $0xf0] sm:$0xff]  ;;  %v4012_v56 = vpack.c.bf16 %v479_v49, %v473_v48  ;;  %v480_v59 = vld [vmem:[#allocation4 + $0x100] sm:$0xff] }
  0x6b   : > { %2522 = vmatprep.subr.bf16.mxu0 %v3978_v28  ;;  %2586 = vmatprep.subr.bf16.mxu1 %v3980_v29  ;;  %5146 = vst [vmem:[#allocation34_spill] sm:$0xff] %v4008_v53  ;;  %v4014_v57 = vpack.c.bf16 %v481_v51, %v475_v50  ;;  %v474_v58 = vld [vmem:[#allocation4 + $0xd0] sm:$0xff]  ;;  %v485_v60 = vld [vmem:[#allocation4 + $0x128] sm:$0xff]  ;;  %v491_v61 = vld [vmem:[#allocation4 + $0x158] sm:$0xff]  ;;  %v4020_v0 = vpack.c.bf16 %v478_v55, %v472_v54  ;;  %p3532_p7 = pnand %p3531_p13, %p3525_p8 }
  0x6c   : > { %2423 = vmatmul.mubr.msk.f32.gmra.mrb[4].mxu0 %vm667_vm0, %v642_v27  ;;  %2493 = vmatmul.mubr.msk.f32.gmra.mrb[4].mxu1 %vm667_vm0, %v643_v14  ;;  %5147 = vst [vmem:[#allocation35_spill] sm:$0xff] %v4012_v56  ;;  %v487_v62 = vld [vmem:[#allocation4 + $0x138] sm:$0xff]  ;;  %v493_v63 = vld [vmem:[#allocation4 + $0x168] sm:$0xff]  ;;  %v4022_v1 = vpack.c.bf16 %v480_v59, %v474_v58  ;;  %v484_v2 = vld [vmem:[#allocation4 + $0x120] sm:$0xff]  ;;  %v4026_v4 = vpack.c.bf16 %v491_v61, %v485_v60 }
  0x6d   : > { %969 = vmatprep.mubr.f32.mxu1 %v3710_v6  ;;  %2499 = vmatprep.mubr.msk.f32.mxu0 %vm667_vm0, %v866_v30  ;;  %5148 = vst [vmem:[#allocation36_spill] sm:$0xff] %v4014_v57  ;;  %5149 = vst [vmem:[#allocation37_spill] sm:$0xff] %v4020_v0  ;;  %v490_v3 = vld [vmem:[#allocation4 + $0x150] sm:$0xff]  ;;  %v4028_v5 = vpack.c.bf16 %v493_v63, %v487_v62  ;;  %v492_v8 = vld [vmem:[#allocation4 + $0x160] sm:$0xff] }
  0x6e   : > { %5150 = vst [vmem:[#allocation38_spill] sm:$0xff] %v4022_v1  ;;  %5151 = vst [vmem:[#allocation39_spill] sm:$0xff] %v4026_v4  ;;  %v486_v7 = vld [vmem:[#allocation4 + $0x130] sm:$0xff]  ;;  %v497_v9 = vld [vmem:[#allocation4 + $0x188] sm:$0xff]  ;;  %v4033_v13 = vpack.c.bf16 %v490_v3, %v484_v2 }
  0x6f   : > { %5152 = vst [vmem:[#allocation40_spill] sm:$0xff] %v4028_v5  ;;  %v503_v10 = vld [vmem:[#allocation4 + $0x1b8] sm:$0xff]  ;;  %v505_v12 = vld [vmem:[#allocation4 + $0x1c8] sm:$0xff]  ;;  %v4035_v14 = vpack.c.bf16 %v492_v8, %v486_v7  ;;  %v496_v15 = vld [vmem:[#allocation4 + $0x180] sm:$0xff] }
  0x70   : > { %2429 = vmatmul.mubr.msk.f32.vlgmr.msra.gmra.mrb[6].mxu1 %vm667_vm0, %v866_v30  ;;  %2500 = vmatmul.mubr.msk.f32.vlgmr.msra.gmra.mrb[6].mxu0 %vm667_vm0, %v867_v39  ;;  %v499_v11 = vld [vmem:[#allocation4 + $0x198] sm:$0xff]  ;;  %5153 = vst [vmem:[#allocation41_spill] sm:$0xff] %v4033_v13  ;;  %v502_v16 = vld [vmem:[#allocation4 + $0x1b0] sm:$0xff]  ;;  %v4039_v17 = vpack.c.bf16 %v503_v10, %v497_v9  ;;  %v504_v20 = vld [vmem:[#allocation4 + $0x1c0] sm:$0xff] }
  0x71   : > { %2524 = vmatpush1.bf16.msra.mxu0 %v3994_v40  ;;  %2588 = vmatpush1.bf16.msra.mxu1 %v3996_v41  ;;  %5154 = vst [vmem:[#allocation42_spill] sm:$0xff] %v4035_v14  ;;  %v4041_v18 = vpack.c.bf16 %v505_v12, %v499_v11  ;;  %v498_v19 = vld [vmem:[#allocation4 + $0x190] sm:$0xff]  ;;  %v509_v21 = vld [vmem:[#allocation4 + $0x1e8] sm:$0xff]  ;;  %v515_v22 = vld [vmem:[#allocation4 + $0x218] sm:$0xff]  ;;  %v4045_v25 = vpack.c.bf16 %v502_v16, %v496_v15 }
  0x72   : > { %2526 = vmatprep.subr.bf16.mxu0 %v3998_v44  ;;  %2590 = vmatprep.subr.bf16.mxu1 %v4000_v45  ;;  %5155 = vst [vmem:[#allocation43_spill] sm:$0xff] %v4039_v17  ;;  %v511_v23 = vld [vmem:[#allocation4 + $0x1f8] sm:$0xff]  ;;  %v517_v24 = vld [vmem:[#allocation4 + $0x228] sm:$0xff]  ;;  %v4047_v26 = vpack.c.bf16 %v504_v20, %v498_v19  ;;  %v508_v27 = vld [vmem:[#allocation4 + $0x1e0] sm:$0xff]  ;;  %v4051_v31 = vpack.c.bf16 %v515_v22, %v509_v21 }
  0x73   : > { %975 = vmatprep.mubr.f32.mxu1 %v3710_v6  ;;  %5156 = vst [vmem:[#allocation44_spill] sm:$0xff] %v4041_v18  ;;  %5157 = vst [vmem:[#allocation45_spill] sm:$0xff] %v4045_v25  ;;  %v514_v30 = vld [vmem:[#allocation4 + $0x210] sm:$0xff]  ;;  %v4053_v32 = vpack.c.bf16 %v517_v24, %v511_v23  ;;  %v516_v34 = vld [vmem:[#allocation4 + $0x220] sm:$0xff] }
  0x74   : > { %2430 = vmatmul.mubr.msk.f32.gmra.mrb[8].mxu1 %vm667_vm0, %v867_v39  ;;  %5158 = vst [vmem:[#allocation46_spill] sm:$0xff] %v4047_v26  ;;  %5159 = vst [vmem:[#allocation47_spill] sm:$0xff] %v4051_v31  ;;  %v510_v33 = vld [vmem:[#allocation4 + $0x1f0] sm:$0xff]  ;;  %v521_v35 = vld [vmem:[#allocation4 + $0x248] sm:$0xff]  ;;  %v4057_v39 = vpack.c.bf16 %v514_v30, %v508_v27 }
  0x75   : > { %2528 = vmatpush1.bf16.msra.mxu0 %v4006_v52  ;;  %2592 = vmatpush1.bf16.msra.mxu1 %v4008_v53  ;;  %5160 = vst [vmem:[#allocation48_spill] sm:$0xff] %v4053_v32  ;;  %v527_v36 = vld [vmem:[#allocation4 + $0x278] sm:$0xff]  ;;  %v529_v38 = vld [vmem:[#allocation4 + $0x288] sm:$0xff]  ;;  %v4059_v42 = vpack.c.bf16 %v516_v34, %v510_v33  ;;  %v520_v43 = vld [vmem:[#allocation4 + $0x240] sm:$0xff] }
  0x76   : > { %2530 = vmatprep.subr.bf16.mxu0 %v4012_v56  ;;  %2594 = vmatprep.subr.bf16.mxu1 %v4014_v57  ;;  %v523_v37 = vld [vmem:[#allocation4 + $0x258] sm:$0xff]  ;;  %5161 = vst [vmem:[#allocation49_spill] sm:$0xff] %v4057_v39  ;;  %v526_v46 = vld [vmem:[#allocation4 + $0x270] sm:$0xff]  ;;  %v4063_v47 = vpack.c.bf16 %v527_v36, %v521_v35  ;;  %v528_v50 = vld [vmem:[#allocation4 + $0x280] sm:$0xff] }
  0x77   : > { %981 = vmatprep.mubr.f32.mxu1 %v3710_v6  ;;  %5162 = vst [vmem:[#allocation50_spill] sm:$0xff] %v4059_v42  ;;  %v4065_v48 = vpack.c.bf16 %v529_v38, %v523_v37  ;;  %v522_v49 = vld [vmem:[#allocation4 + $0x250] sm:$0xff]  ;;  %v533_v51 = vld [vmem:[#allocation4 + $0x2a8] sm:$0xff]  ;;  %v539_v54 = vld [vmem:[#allocation4 + $0x2d8] sm:$0xff]  ;;  %v4069_v59 = vpack.c.bf16 %v526_v46, %v520_v43 }
  0x78   : > { %5163 = vst [vmem:[#allocation51_spill] sm:$0xff] %v4063_v47  ;;  %v535_v55 = vld [vmem:[#allocation4 + $0x2b8] sm:$0xff]  ;;  %v541_v58 = vld [vmem:[#allocation4 + $0x2e8] sm:$0xff]  ;;  %v4071_v60 = vpack.c.bf16 %v528_v50, %v522_v49  ;;  %v532_v61 = vld [vmem:[#allocation4 + $0x2a0] sm:$0xff]  ;;  %v4075_v63 = vpack.c.bf16 %v539_v54, %v533_v51 }
  0x79   : > { %2532 = vmatpush1.bf16.msra.mxu0 %v4020_v0  ;;  %2596 = vmatpush1.bf16.msra.mxu1 %v4022_v1  ;;  %5164 = vst [vmem:[#allocation52_spill] sm:$0xff] %v4065_v48  ;;  %5165 = vst [vmem:[#allocation53_spill] sm:$0xff] %v4069_v59  ;;  %v538_v62 = vld [vmem:[#allocation4 + $0x2d0] sm:$0xff]  ;;  %v4077_v2 = vpack.c.bf16 %v541_v58, %v535_v55  ;;  %v540_v7 = vld [vmem:[#allocation4 + $0x2e0] sm:$0xff] }
  0x7a   : > { %2534 = vmatprep.subr.bf16.mxu0 %v4026_v4  ;;  %2598 = vmatprep.subr.bf16.mxu1 %v4028_v5  ;;  %5166 = vst [vmem:[#allocation54_spill] sm:$0xff] %v4071_v60  ;;  %5167 = vst [vmem:[#allocation55_spill] sm:$0xff] %v4075_v63  ;;  %v534_v3 = vld [vmem:[#allocation4 + $0x2b0] sm:$0xff]  ;;  %v545_v8 = vld [vmem:[#allocation4 + $0x308] sm:$0xff]  ;;  %v4082_v15 = vpack.c.bf16 %v538_v62, %v532_v61 }
  0x7b   : > { %5168 = vst [vmem:[#allocation56_spill] sm:$0xff] %v4077_v2  ;;  %v551_v9 = vld [vmem:[#allocation4 + $0x338] sm:$0xff]  ;;  %v553_v11 = vld [vmem:[#allocation4 + $0x348] sm:$0xff]  ;;  %v868_v12 = vld [vmem:[%s3924_s22 + $0x10] sm:$0xff]  ;;  %v4084_v16 = vpack.c.bf16 %v540_v7, %v534_v3 }
  0x7c   : > { %v547_v10 = vld [vmem:[#allocation4 + $0x318] sm:$0xff]  ;;  %5169 = vst [vmem:[#allocation57_spill] sm:$0xff] %v4082_v15  ;;  %v544_v19 = vld [vmem:[#allocation4 + $0x300] sm:$0xff]  ;;  %v550_v20 = vld [vmem:[#allocation4 + $0x330] sm:$0xff]  ;;  %v4088_v22 = vpack.c.bf16 %v551_v9, %v545_v8  ;;  %2431 = vmatmul.mubr.msk.f32.gmra.mrb[10].mxu1 %vm667_vm0, %v868_v12  ;;  %2502 = vmatprep.mubr.msk.f32.mxu0 %vm667_vm0, %v868_v12 }
  0x7d   : > { %2536 = vmatpush1.bf16.msra.mxu0 %v4033_v13  ;;  %2600 = vmatpush1.bf16.msra.mxu1 %v4035_v14  ;;  %5170 = vst [vmem:[#allocation58_spill] sm:$0xff] %v4084_v16  ;;  %v546_v21 = vld [vmem:[#allocation4 + $0x310] sm:$0xff]  ;;  %v4090_v23 = vpack.c.bf16 %v553_v11, %v547_v10  ;;  %v552_v24 = vld [vmem:[#allocation4 + $0x340] sm:$0xff]  ;;  %v557_v27 = vld [vmem:[#allocation4 + $0x368] sm:$0xff]  ;;  %v4099_v36 = vpack.c.bf16 %v550_v20, %v544_v19 }
  0x7e   : > { %2538 = vmatprep.subr.bf16.mxu0 %v4039_v17  ;;  %2602 = vmatprep.subr.bf16.mxu1 %v4041_v18  ;;  %5171 = vst [vmem:[#allocation59_spill] sm:$0xff] %v4088_v22  ;;  %v563_v30 = vld [vmem:[#allocation4 + $0x398] sm:$0xff]  ;;  %v565_v34 = vld [vmem:[#allocation4 + $0x3a8] sm:$0xff]  ;;  %v4101_v37 = vpack.c.bf16 %v552_v24, %v546_v21  ;;  %v556_v38 = vld [vmem:[#allocation4 + $0x360] sm:$0xff] }
  0x7f   : > { %5172 = vst [vmem:[#allocation60_spill] sm:$0xff] %v4090_v23  ;;  %v559_v33 = vld [vmem:[#allocation4 + $0x378] sm:$0xff]  ;;  %987 = vmatprep.mubr.f32.mxu1 %v3710_v6  ;;  %5173 = vst [vmem:[#allocation61_spill] sm:$0xff] %v4099_v36  ;;  %v562_v43 = vld [vmem:[#allocation4 + $0x390] sm:$0xff]  ;;  %v4105_v49 = vpack.c.bf16 %v563_v30, %v557_v27 }
  0x80   : > { %v869_v35 = vld [vmem:[%s3924_s22 + $0x18] sm:$0xff]  ;;  %5174 = vst [vmem:[#allocation62_spill] sm:$0xff] %v4101_v37  ;;  %v558_v46 = vld [vmem:[#allocation4 + $0x370] sm:$0xff]  ;;  %v4107_v6 = vpack.c.bf16 %v565_v34, %v559_v33  ;;  %v564_v50 = vld [vmem:[#allocation4 + $0x3a0] sm:$0xff]  ;;  %v4116_v62 = vpack.c.bf16 %v562_v43, %v556_v38  ;;  %s4778_s22 = scalar_lea.sflag [#allocation6], %s5388_s27 }
  0x81   : > { %2540 = vmatpush1.bf16.msra.mxu0 %v4045_v25  ;;  %2604 = vmatpush1.bf16.msra.mxu1 %v4047_v26  ;;  %5175 = vst [vmem:[#allocation63_spill] sm:$0xff] %v4105_v49  ;;  %v569_v51 = vld [vmem:[#allocation4 + $0x3c8] sm:$0xff]  ;;  %v575_v55 = vld [vmem:[#allocation4 + $0x3f8] sm:$0xff]  ;;  %v4118_v3 = vpack.c.bf16 %v564_v50, %v558_v46  ;;  %v568_v7 = vld [vmem:[#allocation4 + $0x3c0] sm:$0xff] }
  0x82   : > { %2542 = vmatprep.subr.bf16.mxu0 %v4051_v31  ;;  %2606 = vmatprep.subr.bf16.mxu1 %v4053_v32  ;;  %5176 = vst [vmem:[#allocation64_spill] sm:$0xff] %v4107_v6  ;;  %v4109_v54 = vld [vmem:[#allocation11] sm:$0xff]  ;;  %v571_v58 = vld [vmem:[#allocation4 + $0x3d8] sm:$0xff]  ;;  %5177 = vst [vmem:[#allocation65_spill] sm:$0xff] %v4116_v62  ;;  %v4122_v9 = vpack.c.bf16 %v575_v55, %v569_v51 }
  0x83   : > { %2503 = vmatmul.mubr.msk.f32.gmra.mrb[8].mxu0 %vm667_vm0, %v869_v35  ;;  %v577_v61 = vld [vmem:[#allocation4 + $0x408] sm:$0xff]  ;;  %2432 = vmatmul.mubr.msk.f32.gmra.mrb[12].mxu1 %vm667_vm0, %v869_v35  ;;  %5178 = vst [vmem:[#allocation66_spill] sm:$0xff] %v4118_v3  ;;  %v574_v8 = vld [vmem:[#allocation4 + $0x3f0] sm:$0xff]  ;;  %v576_v12 = vld [vmem:[#allocation4 + $0x400] sm:$0xff] }
  0x84   : > { %1201 = vmatprep.mubr.f32.mxu0 %v4109_v54  ;;  %1272 = vmatprep.mubr.f32.mxu1 %v4109_v54  ;;  %5179 = vst [vmem:[#allocation67_spill] sm:$0xff] %v4122_v9  ;;  %v4124_v10 = vpack.c.bf16 %v577_v61, %v571_v58  ;;  %v570_v11 = vld [vmem:[#allocation4 + $0x3d0] sm:$0xff]  ;;  %v581_v19 = vld [vmem:[#allocation4 + $0x428] sm:$0xff]  ;;  %v587_v20 = vld [vmem:[#allocation4 + $0x458] sm:$0xff]  ;;  %v4128_v27 = vpack.c.bf16 %v574_v8, %v568_v7 }
  0x85   : > { %2544 = vmatpush1.bf16.msra.mxu0 %v4057_v39  ;;  %2608 = vmatpush1.bf16.msra.mxu1 %v4059_v42  ;;  %v583_v21 = vld [vmem:[#allocation4 + $0x438] sm:$0xff]  ;;  %v589_v24 = vld [vmem:[#allocation4 + $0x468] sm:$0xff]  ;;  %v4130_v30 = vpack.c.bf16 %v576_v12, %v570_v11  ;;  %v580_v33 = vld [vmem:[#allocation4 + $0x420] sm:$0xff]  ;;  %v4134_v35 = vpack.c.bf16 %v587_v20, %v581_v19 }
  0x86   : > { %2546 = vmatprep.subr.bf16.mxu0 %v4063_v47  ;;  %2610 = vmatprep.subr.bf16.mxu1 %v4065_v48  ;;  %5180 = vst [vmem:[#allocation68_spill] sm:$0xff] %v4124_v10  ;;  %5181 = vst [vmem:[#allocation69_spill] sm:$0xff] %v4128_v27  ;;  %v586_v34 = vld [vmem:[#allocation4 + $0x450] sm:$0xff]  ;;  %v4136_v38 = vpack.c.bf16 %v589_v24, %v583_v21  ;;  %v588_v46 = vld [vmem:[#allocation4 + $0x460] sm:$0xff] }
  0x87   : > { %5182 = vst [vmem:[#allocation70_spill] sm:$0xff] %v4130_v30  ;;  %5183 = vst [vmem:[#allocation71_spill] sm:$0xff] %v4134_v35  ;;  %v582_v43 = vld [vmem:[#allocation4 + $0x430] sm:$0xff]  ;;  %v593_v50 = vld [vmem:[#allocation4 + $0x488] sm:$0xff]  ;;  %v4140_v61 = vpack.c.bf16 %v586_v34, %v580_v33 }
  0x88   : > { %5184 = vst [vmem:[#allocation72_spill] sm:$0xff] %v4136_v38  ;;  %v599_v51 = vld [vmem:[#allocation4 + $0x4b8] sm:$0xff]  ;;  %v601_v58 = vld [vmem:[#allocation4 + $0x4c8] sm:$0xff]  ;;  %v4142_v7 = vpack.c.bf16 %v588_v46, %v582_v43  ;;  %v592_v8 = vld [vmem:[#allocation4 + $0x480] sm:$0xff] }
  0x89   : > { %2548 = vmatpush1.bf16.msra.mxu0 %v4069_v59  ;;  %2612 = vmatpush1.bf16.msra.mxu1 %v4071_v60  ;;  %v595_v55 = vld [vmem:[#allocation4 + $0x498] sm:$0xff]  ;;  %5185 = vst [vmem:[#allocation73_spill] sm:$0xff] %v4140_v61  ;;  %v598_v11 = vld [vmem:[#allocation4 + $0x4b0] sm:$0xff]  ;;  %v4146_v12 = vpack.c.bf16 %v599_v51, %v593_v50  ;;  %v600_v21 = vld [vmem:[#allocation4 + $0x4c0] sm:$0xff] }
  0x8a   : > { %2550 = vmatprep.subr.bf16.mxu0 %v4075_v63  ;;  %2614 = vmatprep.subr.bf16.mxu1 %v4077_v2  ;;  %5186 = vst [vmem:[#allocation74_spill] sm:$0xff] %v4142_v7  ;;  %v4148_v19 = vpack.c.bf16 %v601_v58, %v595_v55  ;;  %v594_v20 = vld [vmem:[#allocation4 + $0x490] sm:$0xff]  ;;  %v605_v24 = vld [vmem:[#allocation4 + $0x4e8] sm:$0xff]  ;;  %v4152_v33 = vpack.c.bf16 %v598_v11, %v592_v8  ;;  %v604_v43 = vld [vmem:[#allocation4 + $0x4e0] sm:$0xff] }
  0x8b   : > { %5187 = vst [vmem:[#allocation75_spill] sm:$0xff] %v4146_v12  ;;  %v4154_v34 = vpack.c.bf16 %v600_v21, %v594_v20  ;;  %v610_v46 = vld [vmem:[#allocation4 + $0x510] sm:$0xff]  ;;  %v612_v58 = vld [vmem:[#allocation4 + $0x520] sm:$0xff]  ;;  %v459_v2 = vld [vmem:[#allocation4 + $0x58] sm:$0xff] }
  0x8c   : > { %5188 = vst [vmem:[#allocation76_spill] sm:$0xff] %v4148_v19  ;;  %5189 = vst [vmem:[#allocation77_spill] sm:$0xff] %v4152_v33  ;;  %v606_v55 = vld [vmem:[#allocation4 + $0x4f0] sm:$0xff]  ;;  %v4164_v8 = vpack.c.bf16 %v610_v46, %v604_v43  ;;  %v616_v20 = vld [vmem:[#allocation4 + $0x540] sm:$0xff] }
  0x8d   : > { %2552 = vmatpush1.bf16.msra.mxu0 %v4082_v15  ;;  %2616 = vmatpush1.bf16.msra.mxu1 %v4084_v16  ;;  %5190 = vst [vmem:[#allocation78_spill] sm:$0xff] %v4154_v34  ;;  %v4166_v11 = vpack.c.bf16 %v612_v58, %v606_v55  ;;  %v622_v21 = vld [vmem:[#allocation4 + $0x570] sm:$0xff]  ;;  %v631_v16 = vld [vmem:[#allocation4 + $0x5b8] sm:$0xff]  ;;  %v628_v55 = vld [vmem:[#allocation4 + $0x5a0] sm:$0xff] }
  0x8e   : > { %2554 = vmatprep.subr.bf16.mxu0 %v4088_v22  ;;  %2618 = vmatprep.subr.bf16.mxu1 %v4090_v23  ;;  %5193 = vst [vmem:[#allocation81_spill] sm:$0xff] %v4164_v8  ;;  %v635_v23 = vld [vmem:[#allocation4 + $0x5d8] sm:$0xff]  ;;  %v4176_v43 = vpack.c.bf16 %v622_v21, %v616_v20  ;;  %v636_v58 = vld [vmem:[#allocation4 + $0x5e0] sm:$0xff] }
  0x8f   : > { %5194 = vst [vmem:[#allocation82_spill] sm:$0xff] %v4166_v11 }
  0x90   : > { %5197 = vst [vmem:[#allocation85_spill] sm:$0xff] %v4176_v43 }
  0x91   : > { %2556 = vmatpush1.bf16.msra.mxu0 %v4099_v36  ;;  %2620 = vmatpush1.bf16.msra.mxu1 %v4101_v37  ;;  %v619_v37 = vld [vmem:[#allocation4 + $0x558] sm:$0xff] }
  0x92   : > { %2558 = vmatprep.subr.bf16.mxu0 %v4105_v49  ;;  %2622 = vmatprep.subr.bf16.mxu1 %v4107_v6  ;;  %v623_v6 = vld [vmem:[#allocation4 + $0x578] sm:$0xff] }
  0x95   : > { %2560 = vmatpush1.bf16.msra.mxu0 %v4116_v62  ;;  %2624 = vmatpush1.bf16.msra.mxu1 %v4118_v3  ;;  %v607_v3 = vld [vmem:[#allocation4 + $0x4f8] sm:$0xff] }
  0x96   : > { %2562 = vmatprep.subr.bf16.mxu0 %v4122_v9  ;;  %2626 = vmatprep.subr.bf16.mxu1 %v4124_v10  ;;  %v611_v10 = vld [vmem:[#allocation4 + $0x518] sm:$0xff] }
  0x97   : > { %v4158_v50 = vpack.c.bf16 %v611_v10, %v605_v24  ;;  %v624_v24 = vld [vmem:[#allocation4 + $0x580] sm:$0xff] }
  0x99   : > { %2564 = vmatpush1.bf16.msra.mxu0 %v4128_v27  ;;  %2628 = vmatpush1.bf16.msra.mxu1 %v4130_v30  ;;  %v613_v30 = vld [vmem:[#allocation4 + $0x528] sm:$0xff]  ;;  %5191 = vst [vmem:[#allocation79_spill] sm:$0xff] %v4158_v50 }
  0x9a   : > { %2566 = vmatprep.subr.bf16.mxu0 %v4134_v35  ;;  %2630 = vmatprep.subr.bf16.mxu1 %v4136_v38  ;;  %v4160_v51 = vpack.c.bf16 %v613_v30, %v607_v3  ;;  %v617_v38 = vld [vmem:[#allocation4 + $0x548] sm:$0xff]  ;;  %v618_v30 = vld [vmem:[#allocation4 + $0x550] sm:$0xff] }
  0x9b   : > { %v4170_v3 = vpack.c.bf16 %v623_v6, %v617_v38  ;;  %v4178_v46 = vpack.c.bf16 %v624_v24, %v618_v30  ;;  %v634_v38 = vld [vmem:[#allocation4 + $0x5d0] sm:$0xff]  ;;  %v471_v30 = vld [vmem:[#allocation4 + $0xb8] sm:$0xff]  ;;  %v4198_v24 = vld [vmem:[#allocation10] sm:$0xff] }
  0x9c   : > { %5192 = vst [vmem:[#allocation80_spill] sm:$0xff] %v4160_v51  ;;  %v4188_v20 = vpack.c.bf16 %v634_v38, %v628_v55 }
  0x9d   : > { %2568 = vmatpush1.bf16.msra.mxu0 %v4140_v61  ;;  %2632 = vmatpush1.bf16.msra.mxu1 %v4142_v7  ;;  %v625_v7 = vld [vmem:[#allocation4 + $0x588] sm:$0xff]  ;;  %5195 = vst [vmem:[#allocation83_spill] sm:$0xff] %v4170_v3  ;;  %5198 = vst [vmem:[#allocation86_spill] sm:$0xff] %v4178_v46 }
  0x9e   : > { %2570 = vmatprep.subr.bf16.mxu0 %v4146_v12  ;;  %2634 = vmatprep.subr.bf16.mxu1 %v4148_v19  ;;  %v4172_v10 = vpack.c.bf16 %v625_v7, %v619_v37  ;;  %v629_v19 = vld [vmem:[#allocation4 + $0x5a8] sm:$0xff]  ;;  %v630_v7 = vld [vmem:[#allocation4 + $0x5b0] sm:$0xff]  ;;  %5201 = vst [vmem:[#allocation89_spill] sm:$0xff] %v4188_v20 }
  0x9f   : > { %v4182_v37 = vpack.c.bf16 %v635_v23, %v629_v19  ;;  %v4190_v21 = vpack.c.bf16 %v636_v58, %v630_v7  ;;  %v458_v19 = vld [vmem:[#allocation4 + $0x50] sm:$0xff]  ;;  %v464_v7 = vld [vmem:[#allocation4 + $0x80] sm:$0xff] }
  0xa0   : > { %5196 = vst [vmem:[#allocation84_spill] sm:$0xff] %v4172_v10  ;;  %v470_v58 = vld [vmem:[#allocation4 + $0xb0] sm:$0xff] }
  0xa1   : > { %2572 = vmatpush1.bf16.msra.mxu0 %v4152_v33  ;;  %2636 = vmatpush1.bf16.msra.mxu1 %v4154_v34  ;;  %v637_v34 = vld [vmem:[#allocation4 + $0x5e8] sm:$0xff]  ;;  %5199 = vst [vmem:[#allocation87_spill] sm:$0xff] %v4182_v37  ;;  %5202 = vst [vmem:[#allocation90_spill] sm:$0xff] %v4190_v21 }
  0xa2   : > { %2574 = vmatprep.subr.bf16.mxu0 %v4158_v50  ;;  %2638 = vmatprep.subr.bf16.mxu1 %v4160_v51  ;;  %v4184_v6 = vpack.c.bf16 %v637_v34, %v631_v16  ;;  %v453_v51 = vld [vmem:[#allocation4 + $0x28] sm:$0xff]  ;;  %v452_v16 = vld [vmem:[#allocation4 + $0x20] sm:$0xff] }
  0xa3   : > { %v4194_v23 = vpack.c.bf16 %v459_v2, %v453_v51  ;;  %v465_v34 = vld [vmem:[#allocation4 + $0x88] sm:$0xff]  ;;  %v4200_v55 = vpack.c.bf16 %v458_v19, %v452_v16  ;;  %v483_v51 = vld [vmem:[#allocation4 + $0x118] sm:$0xff]  ;;  %v476_v19 = vld [vmem:[#allocation4 + $0xe0] sm:$0xff] }
  0xa4   : > { %5200 = vst [vmem:[#allocation88_spill] sm:$0xff] %v4184_v6  ;;  %v4203_v38 = vpack.c.bf16 %v471_v30, %v465_v34  ;;  %v477_v2 = vld [vmem:[#allocation4 + $0xe8] sm:$0xff]  ;;  %v482_v34 = vld [vmem:[#allocation4 + $0x110] sm:$0xff] }
  0xa5   : > { %2576 = vmatpush1.bf16.msra.mxu0 %v4164_v8  ;;  %2640 = vmatpush1.bf16.msra.mxu1 %v4166_v11  ;;  %5203 = vst [vmem:[#allocation91_spill] sm:$0xff] %v4194_v23  ;;  %v4213_v16 = vpack.c.bf16 %v483_v51, %v477_v2  ;;  %v489_v30 = vld [vmem:[#allocation4 + $0x148] sm:$0xff]  ;;  %v507_v51 = vld [vmem:[#allocation4 + $0x1d8] sm:$0xff] }
  0xa6   : > { %2578 = vmatprep.subr.bf16.mxu0 %v4170_v3  ;;  %2642 = vmatprep.subr.bf16.mxu1 %v4172_v10  ;;  %5204 = vst [vmem:[#allocation92_spill] sm:$0xff] %v4203_v38  ;;  %v501_v2 = vld [vmem:[#allocation4 + $0x1a8] sm:$0xff] }
  0xa9   : > { %2580 = vmatpush1.bf16.msra.mxu0 %v4176_v43  ;;  %2644 = vmatpush1.bf16.msra.mxu1 %v4178_v46 }
  0xaa   : > { %2582 = vmatprep.subr.bf16.mxu0 %v4182_v37  ;;  %2646 = vmatprep.subr.bf16.mxu1 %v4184_v6  ;;  %v4218_v6 = vpack.c.bf16 %v482_v34, %v476_v19  ;;  %v4229_v19 = vpack.c.bf16 %v507_v51, %v501_v2  ;;  %v500_v34 = vld [vmem:[#allocation4 + $0x1a0] sm:$0xff]  ;;  %v525_v2 = vld [vmem:[#allocation4 + $0x268] sm:$0xff]  ;;  %v531_v51 = vld [vmem:[#allocation4 + $0x298] sm:$0xff] }
  0xad   : > { %2584 = vmatpush1.bf16.msra.mxu0 %v4188_v20  ;;  %2648 = vmatpush1.bf16.msra.mxu1 %v4190_v21  ;;  %v4209_v21 = vpack.c.bf16 %v470_v58, %v464_v7  ;;  %v488_v58 = vld [vmem:[#allocation4 + $0x140] sm:$0xff] }
  0xae   : > { %2650 = vmatprep.subr.bf16.mxu1 %v4194_v23  ;;  %2714 = vmatprep.subr.bf16.mxu0 %v3978_v28  ;;  %v495_v28 = vld [vmem:[#allocation4 + $0x178] sm:$0xff] }
  0xaf   : > { %v4221_v7 = vpack.c.bf16 %v495_v28, %v489_v30  ;;  %v513_v28 = vld [vmem:[#allocation4 + $0x208] sm:$0xff]  ;;  %v519_v30 = vld [vmem:[#allocation4 + $0x238] sm:$0xff] }
  0xb0   : > { %1202 = vmatmul.mubr.f32.vlgmr.msra.gmra.mrb[0].mxu0 %v4198_v24  ;;  %1273 = vmatmul.mubr.f32.vlgmr.msra.gmra.mrb[14].mxu1 %v4198_v24 }
  0xb1   : > { %2652 = vmatpush1.bf16.msra.mxu1 %v4200_v55  ;;  %1343 = vmatprep.mubr.f32.mxu1 %v4109_v54 }
  0xb2   : > { %2654 = vmatprep.subr.bf16.mxu1 %v4203_v38  ;;  %2716 = vmatpush1.bf16.msra.mxu0 %v3994_v40  ;;  %v494_v38 = vld [vmem:[#allocation4 + $0x170] sm:$0xff] }
  0xb3   : > { %2718 = vmatprep.subr.bf16.mxu0 %v3998_v44  ;;  %v4226_v40 = vpack.c.bf16 %v494_v38, %v488_v58  ;;  %v506_v44 = vld [vmem:[#allocation4 + $0x1d0] sm:$0xff]  ;;  %v4237_v38 = vpack.c.bf16 %v519_v30, %v513_v28  ;;  %v512_v58 = vld [vmem:[#allocation4 + $0x200] sm:$0xff]  ;;  %v537_v28 = vld [vmem:[#allocation4 + $0x2c8] sm:$0xff] }
  0xb4   : > { %v543_v30 = vld [vmem:[#allocation4 + $0x2f8] sm:$0xff] }
  0xb5   : > { %2656 = vmatpush1.bf16.msra.mxu1 %v4209_v21 }
  0xb6   : > { %2658 = vmatprep.subr.bf16.mxu1 %v4213_v16  ;;  %2720 = vmatpush1.bf16.msra.mxu0 %v4006_v52  ;;  %v4234_v52 = vpack.c.bf16 %v506_v44, %v500_v34  ;;  %v4245_v44 = vpack.c.bf16 %v531_v51, %v525_v2  ;;  %v524_v34 = vld [vmem:[#allocation4 + $0x260] sm:$0xff]  ;;  %v549_v2 = vld [vmem:[#allocation4 + $0x328] sm:$0xff]  ;;  %v555_v51 = vld [vmem:[#allocation4 + $0x358] sm:$0xff] }
  0xb7   : > { %2722 = vmatprep.subr.bf16.mxu0 %v4012_v56  ;;  %v518_v56 = vld [vmem:[#allocation4 + $0x230] sm:$0xff] }
  0xb9   : > { %2660 = vmatpush1.bf16.msra.mxu1 %v4218_v6 }
  0xba   : > { %2662 = vmatprep.subr.bf16.mxu1 %v4221_v7  ;;  %2724 = vmatpush1.bf16.msra.mxu0 %v4020_v0  ;;  %v4242_v0 = vpack.c.bf16 %v518_v56, %v512_v58  ;;  %v4253_v56 = vpack.c.bf16 %v543_v30, %v537_v28  ;;  %v536_v58 = vld [vmem:[#allocation4 + $0x2c0] sm:$0xff]  ;;  %v561_v28 = vld [vmem:[#allocation4 + $0x388] sm:$0xff]  ;;  %v567_v30 = vld [vmem:[#allocation4 + $0x3b8] sm:$0xff] }
  0xbb   : > { %2726 = vmatprep.subr.bf16.mxu0 %v4026_v4  ;;  %v530_v4 = vld [vmem:[#allocation4 + $0x290] sm:$0xff] }
  0xbd   : > { %2664 = vmatpush1.bf16.msra.mxu1 %v4226_v40 }
  0xbe   : > { %2666 = vmatprep.subr.bf16.mxu1 %v4229_v19  ;;  %2728 = vmatpush1.bf16.msra.mxu0 %v4033_v13  ;;  %v4250_v13 = vpack.c.bf16 %v530_v4, %v524_v34  ;;  %v4261_v4 = vpack.c.bf16 %v555_v51, %v549_v2  ;;  %v548_v34 = vld [vmem:[#allocation4 + $0x320] sm:$0xff]  ;;  %v573_v2 = vld [vmem:[#allocation4 + $0x3e8] sm:$0xff]  ;;  %v579_v51 = vld [vmem:[#allocation4 + $0x418] sm:$0xff] }
  0xbf   : > { %2730 = vmatprep.subr.bf16.mxu0 %v4039_v17  ;;  %v542_v17 = vld [vmem:[#allocation4 + $0x2f0] sm:$0xff] }
  0xc1   : > { %2668 = vmatpush1.bf16.msra.mxu1 %v4234_v52 }
  0xc2   : > { %2670 = vmatprep.subr.bf16.mxu1 %v4237_v38  ;;  %2732 = vmatpush1.bf16.msra.mxu0 %v4045_v25  ;;  %v4258_v25 = vpack.c.bf16 %v542_v17, %v536_v58  ;;  %v4269_v17 = vpack.c.bf16 %v567_v30, %v561_v28  ;;  %v560_v58 = vld [vmem:[#allocation4 + $0x380] sm:$0xff]  ;;  %v585_v28 = vld [vmem:[#allocation4 + $0x448] sm:$0xff]  ;;  %v591_v30 = vld [vmem:[#allocation4 + $0x478] sm:$0xff] }
  0xc3   : > { %2734 = vmatprep.subr.bf16.mxu0 %v4051_v31  ;;  %v554_v31 = vld [vmem:[#allocation4 + $0x350] sm:$0xff] }
  0xc5   : > { %2672 = vmatpush1.bf16.msra.mxu1 %v4242_v0 }
  0xc6   : > { %2674 = vmatprep.subr.bf16.mxu1 %v4245_v44  ;;  %2736 = vmatpush1.bf16.msra.mxu0 %v4057_v39  ;;  %v4266_v39 = vpack.c.bf16 %v554_v31, %v548_v34  ;;  %v4277_v31 = vpack.c.bf16 %v579_v51, %v573_v2  ;;  %v572_v34 = vld [vmem:[#allocation4 + $0x3e0] sm:$0xff]  ;;  %v597_v2 = vld [vmem:[#allocation4 + $0x4a8] sm:$0xff]  ;;  %v603_v51 = vld [vmem:[#allocation4 + $0x4d8] sm:$0xff] }
  0xc7   : > { %2738 = vmatprep.subr.bf16.mxu0 %v4063_v47  ;;  %v566_v47 = vld [vmem:[#allocation4 + $0x3b0] sm:$0xff] }
  0xc8   : > { %5206 = vst [vmem:[#allocation94_spill] sm:$0xff] %v4277_v31 }
  0xc9   : > { %2676 = vmatpush1.bf16.msra.mxu1 %v4250_v13 }
  0xca   : > { %2678 = vmatprep.subr.bf16.mxu1 %v4253_v56  ;;  %2740 = vmatpush1.bf16.msra.mxu0 %v4069_v59  ;;  %v4274_v59 = vpack.c.bf16 %v566_v47, %v560_v58  ;;  %v4285_v47 = vpack.c.bf16 %v591_v30, %v585_v28  ;;  %v584_v58 = vld [vmem:[#allocation4 + $0x440] sm:$0xff]  ;;  %v609_v28 = vld [vmem:[#allocation4 + $0x508] sm:$0xff]  ;;  %v615_v30 = vld [vmem:[#allocation4 + $0x538] sm:$0xff] }
  0xcb   : > { %2742 = vmatprep.subr.bf16.mxu0 %v4075_v63  ;;  %v578_v63 = vld [vmem:[#allocation4 + $0x410] sm:$0xff] }
  0xcc   : > { %5205 = vst [vmem:[#allocation93_spill] sm:$0xff] %v4274_v59  ;;  %5208 = vst [vmem:[#allocation96_spill] sm:$0xff] %v4285_v47 }
  0xcd   : > { %2680 = vmatpush1.bf16.msra.mxu1 %v4258_v25 }
  0xce   : > { %2682 = vmatprep.subr.bf16.mxu1 %v4261_v4  ;;  %2744 = vmatpush1.bf16.msra.mxu0 %v4082_v15  ;;  %v4282_v15 = vpack.c.bf16 %v578_v63, %v572_v34  ;;  %v4293_v63 = vpack.c.bf16 %v603_v51, %v597_v2  ;;  %v596_v34 = vld [vmem:[#allocation4 + $0x4a0] sm:$0xff]  ;;  %v621_v2 = vld [vmem:[#allocation4 + $0x568] sm:$0xff]  ;;  %v627_v51 = vld [vmem:[#allocation4 + $0x598] sm:$0xff] }
  0xcf   : > { %2746 = vmatprep.subr.bf16.mxu0 %v4088_v22  ;;  %v590_v22 = vld [vmem:[#allocation4 + $0x470] sm:$0xff] }
  0xd0   : > { %5207 = vst [vmem:[#allocation95_spill] sm:$0xff] %v4282_v15  ;;  %5210 = vst [vmem:[#allocation98_spill] sm:$0xff] %v4293_v63 }
  0xd1   : > { %2684 = vmatpush1.bf16.msra.mxu1 %v4266_v39 }
  0xd2   : > { %2686 = vmatprep.subr.bf16.mxu1 %v4269_v17  ;;  %2748 = vmatpush1.bf16.msra.mxu0 %v4099_v36  ;;  %v4290_v36 = vpack.c.bf16 %v590_v22, %v584_v58  ;;  %v4301_v22 = vpack.c.bf16 %v615_v30, %v609_v28  ;;  %v608_v58 = vld [vmem:[#allocation4 + $0x500] sm:$0xff]  ;;  %v633_v28 = vld [vmem:[#allocation4 + $0x5c8] sm:$0xff]  ;;  %v639_v30 = vld [vmem:[#allocation4 + $0x5f8] sm:$0xff] }
  0xd3   : > { %2750 = vmatprep.subr.bf16.mxu0 %v4105_v49  ;;  %v602_v49 = vld [vmem:[#allocation4 + $0x4d0] sm:$0xff] }
  0xd4   : > { %5209 = vst [vmem:[#allocation97_spill] sm:$0xff] %v4290_v36  ;;  %5212 = vst [vmem:[#allocation100_spill] sm:$0xff] %v4301_v22 }
  0xd5   : > { %2688 = vmatpush1.bf16.msra.mxu1 %v4274_v59 }
  0xd6   : > { %2690 = vmatprep.subr.bf16.mxu1 %v4277_v31  ;;  %2752 = vmatpush1.bf16.msra.mxu0 %v4116_v62  ;;  %v4298_v62 = vpack.c.bf16 %v602_v49, %v596_v34  ;;  %v4309_v49 = vpack.c.bf16 %v627_v51, %v621_v2  ;;  %v620_v34 = vld [vmem:[#allocation4 + $0x560] sm:$0xff]  ;;  %v5220_v51 = vld [vmem:[#allocation60_spill] sm:$0xff] }
  0xd7   : > { %2754 = vmatprep.subr.bf16.mxu0 %v4122_v9  ;;  %v614_v9 = vld [vmem:[#allocation4 + $0x530] sm:$0xff] }
  0xd8   : > { %5211 = vst [vmem:[#allocation99_spill] sm:$0xff] %v4298_v62  ;;  %5214 = vst [vmem:[#allocation102_spill] sm:$0xff] %v4309_v49 }
  0xd9   : > { %2692 = vmatpush1.bf16.msra.mxu1 %v4282_v15 }
  0xda   : > { %2694 = vmatprep.subr.bf16.mxu1 %v4285_v47  ;;  %2756 = vmatpush1.bf16.msra.mxu0 %v4128_v27  ;;  %v4306_v27 = vpack.c.bf16 %v614_v9, %v608_v58  ;;  %v4317_v9 = vpack.c.bf16 %v639_v30, %v633_v28  ;;  %v632_v58 = vld [vmem:[#allocation4 + $0x5c0] sm:$0xff]  ;;  %v5222_v28 = vld [vmem:[#allocation64_spill] sm:$0xff]  ;;  %v5223_v30 = vld [vmem:[#allocation66_spill] sm:$0xff] }
  0xdb   : > { %2758 = vmatprep.subr.bf16.mxu0 %v4134_v35  ;;  %v626_v35 = vld [vmem:[#allocation4 + $0x590] sm:$0xff] }
  0xdc   : > { %5213 = vst [vmem:[#allocation101_spill] sm:$0xff] %v4306_v27  ;;  %5216 = vst [vmem:[#allocation104_spill] sm:$0xff] %v4317_v9 }
  0xdd   : > { %2696 = vmatpush1.bf16.msra.mxu1 %v4290_v36 }
  0xde   : > { %2698 = vmatprep.subr.bf16.mxu1 %v4293_v63  ;;  %2760 = vmatpush1.bf16.msra.mxu0 %v4140_v61  ;;  %v4314_v61 = vpack.c.bf16 %v626_v35, %v620_v34  ;;  %v5218_v35 = vld [vmem:[#allocation56_spill] sm:$0xff]  ;;  %v5221_v34 = vld [vmem:[#allocation62_spill] sm:$0xff] }
  0xdf   : > { %2762 = vmatprep.subr.bf16.mxu0 %v4146_v12  ;;  %v638_v12 = vld [vmem:[#allocation4 + $0x5f0] sm:$0xff] }
  0xe0   : > { %5215 = vst [vmem:[#allocation103_spill] sm:$0xff] %v4314_v61  ;;  %v4322_v2 = vpack.c.bf16 %v638_v12, %v632_v58  ;;  %v5219_v12 = vld [vmem:[#allocation58_spill] sm:$0xff]  ;;  %v5224_v58 = vld [vmem:[#allocation68_spill] sm:$0xff] }
  0xe1   : > { %2700 = vmatpush1.bf16.msra.mxu1 %v4298_v62 }
  0xe2   : > { %2702 = vmatprep.subr.bf16.mxu1 %v4301_v22  ;;  %2764 = vmatpush1.bf16.msra.mxu0 %v4152_v33  ;;  %5217 = vst [vmem:[#allocation105_spill] sm:$0xff] %v4322_v2  ;;  %v5231_v33 = vld [vmem:[#allocation88_spill] sm:$0xff] }
  0xe3   : > { %2766 = vmatprep.subr.bf16.mxu0 %v4158_v50  ;;  %v5230_v50 = vld [vmem:[#allocation80_spill] sm:$0xff] }
  0xe5   : > { %2704 = vmatpush1.bf16.msra.mxu1 %v4306_v27 }
  0xe6   : > { %2706 = vmatprep.subr.bf16.mxu1 %v4309_v49  ;;  %2768 = vmatpush1.bf16.msra.mxu0 %v4164_v8  ;;  %v5229_v8 = vld [vmem:[#allocation78_spill] sm:$0xff] }
  0xe7   : > { %2770 = vmatprep.subr.bf16.mxu0 %v4170_v3  ;;  %v5228_v3 = vld [vmem:[#allocation76_spill] sm:$0xff] }
  0xe9   : > { %2708 = vmatpush1.bf16.msra.mxu1 %v4314_v61 }
  0xea   : > { %2710 = vmatprep.subr.bf16.mxu1 %v4317_v9  ;;  %2772 = vmatpush1.bf16.msra.mxu0 %v4176_v43  ;;  %v5227_v43 = vld [vmem:[#allocation74_spill] sm:$0xff] }
  0xeb   : > { %2774 = vmatprep.subr.bf16.mxu0 %v4182_v37  ;;  %v5226_v37 = vld [vmem:[#allocation72_spill] sm:$0xff] }
  0xed   : > { %2712 = vmatpush1.bf16.msra.mxu1 %v4322_v2  ;;  %v652_v2 = vlaneseq }
  0xee   : > { %2778 = vmatprep.subr.bf16.mxu1 %v3980_v29  ;;  %2776 = vmatpush1.bf16.msra.mxu0 %v4188_v20  ;;  %v5225_v20 = vld [vmem:[#allocation70_spill] sm:$0xff] }
  0xef   : > { %2842 = vmatprep.subr.bf16.mxu0 %v4194_v23  ;;  %v5232_v23 = vld [vmem:[#allocation90_spill] sm:$0xff]  ;;  %v4364_v9 = vshrl.u32 %v652_v2, 7 }
  0xf0   : > { %1344 = vmatmul.mubr.f32.vlgmr.msra.gmra.mrb[16].mxu1 %v4198_v24 }
  0xf1   : > { %2780 = vmatpush1.bf16.msra.mxu1 %v3996_v41  ;;  %v4367_v61 = vsub.s32 2, %v4364_v9  ;;  %v654_v27 = vsub.s32 0, %v4364_v9 }
  0xf2   : > { %2782 = vmatprep.subr.bf16.mxu1 %v4000_v45 }
  0xf5   : > { %2784 = vmatpush1.bf16.msra.mxu1 %v4008_v53 }
  0xf6   : > { %2786 = vmatprep.subr.bf16.mxu1 %v4014_v57 }
  0xf9   : > { %2788 = vmatpush1.bf16.msra.mxu1 %v4022_v1 }
  0xfa   : > { %2790 = vmatprep.subr.bf16.mxu1 %v4028_v5 }
  0xfd   : > { %2792 = vmatpush1.bf16.msra.mxu1 %v4035_v14 }
  0xfe   : > { %2794 = vmatprep.subr.bf16.mxu1 %v4041_v18 }
 0x101   : > { %2796 = vmatpush1.bf16.msra.mxu1 %v4047_v26 }
 0x102   : > { %2798 = vmatprep.subr.bf16.mxu1 %v4053_v32 }
 0x105   : > { %2800 = vmatpush1.bf16.msra.mxu1 %v4059_v42 }
 0x106   : > { %2802 = vmatprep.subr.bf16.mxu1 %v4065_v48 }
 0x109   : > { %2804 = vmatpush1.bf16.msra.mxu1 %v4071_v60 }
 0x10a   : > { %2806 = vmatprep.subr.bf16.mxu1 %v5218_v35 }
 0x10d   : > { %2808 = vmatpush1.bf16.msra.mxu1 %v5219_v12 }
 0x10e   : > { %2810 = vmatprep.subr.bf16.mxu1 %v5220_v51 }
 0x111   : > { %2812 = vmatpush1.bf16.msra.mxu1 %v5221_v34 }
 0x112   : > { %2814 = vmatprep.subr.bf16.mxu1 %v5222_v28 }
 0x115   : > { %2816 = vmatpush1.bf16.msra.mxu1 %v5223_v30 }
 0x116   : > { %2818 = vmatprep.subr.bf16.mxu1 %v5224_v58 }
 0x119   : > { %2820 = vmatpush1.bf16.msra.mxu1 %v5225_v20 }
 0x11a   : > { %2822 = vmatprep.subr.bf16.mxu1 %v5226_v37 }
 0x11d   : > { %2824 = vmatpush1.bf16.msra.mxu1 %v5227_v43 }
 0x11e   : > { %2826 = vmatprep.subr.bf16.mxu1 %v5228_v3 }
 0x121   : > { %2828 = vmatpush1.bf16.msra.mxu1 %v5229_v8 }
 0x122   : > { %2830 = vmatprep.subr.bf16.mxu1 %v5230_v50  ;;  %v658_v50 = vsub.s32 1, %v4364_v9 }
 0x125   : > { %2832 = vmatpush1.bf16.msra.mxu1 %v4166_v11  ;;  %v650_v11 = vld [vmem:[%s4942_s5] sm:$0x7] }
 0x126   : > { %2834 = vmatprep.subr.bf16.mxu1 %v4172_v10 }
 0x129   : > { %2836 = vmatpush1.bf16.msra.mxu1 %v4178_v46  ;;  %v4375_v46 = vrot.slane %v650_v11, %v4367_v61 }
 0x12a   : > { %2838 = vmatprep.subr.bf16.mxu1 %v5231_v33 }
 0x12d   : > { %2840 = vmatpush1.bf16.msra.mxu1 %v5232_v23 }
 0x12e   : > { %2970 = vmatprep.subr.bf16.mxu1 %v3980_v29  ;;  %v876_v29 = vld [vmem:[%s4943_s6] sm:$0x7] }
 0x12f   : > { %v881_v62 = vrot.slane %v876_v29, %v654_v27 }
 0x137   : > { %v4372_v49 = vpop.f32.mrb[0].mxu1 }
 0x138   : > { %5233 = vst [vmem:[#allocation106_spill] sm:$0xff] %v4372_v49  ;;  %v4377_v33 = vpop.f32.mrb[1].mxu1 }
 0x139   : > { %5234 = vst [vmem:[#allocation107_spill] sm:$0xff] %v4377_v33  ;;  %v4391_v33 = vrot.slane %v876_v29, %v4367_v61 }
 0x13b   : > { %v2491_v23 = vpop.f32.mrb[2].mxu1 }
 0x13c   : > { %v4380_v10 = vadd.f32 %v2491_v23, %v4375_v46  ;;  %v835_v2 = vpop.f32.mrb[3].mxu1 }
 0x13e   : > { %5235 = vst [vmem:[#allocation108_spill] sm:$0xff] %v4380_v10  ;;  %v4396_v10 = vrot.slane %v876_v29, %v658_v50 }
 0x13f   : > { %v2494_v8 = vpop.f32.mrb[4].mxu1 }
 0x140   : > { %v4388_v49 = vadd.f32 %v2494_v8, %v4375_v46  ;;  %v845_v22 = vpop.f32.mrb[5].mxu1 }
 0x141   : > { %v4394_v23 = vadd.f32 %v845_v22, %v4375_v46 }
 0x142   : > { %5236 = vst [vmem:[#allocation109_spill] sm:$0xff] %v4388_v49 }
 0x143   : > { %5237 = vst [vmem:[#allocation110_spill] sm:$0xff] %v4394_v23  ;;  %v971_v3 = vpop.f32.mrb[6].mxu1  ;;  %v2501_v43 = vpop.f32.mrb[6].mxu0 }
 0x144   : > { %v4398_v63 = vadd.f32 %v971_v3, %v881_v62  ;;  %v973_v36 = vpop.f32.mrb[7].mxu1  ;;  %v4401_v37 = vadd.f32 %v2501_v43, %v4391_v33  ;;  %v1060_v8 = vpop.f32.mrb[7].mxu0 }
 0x145   : > { %v4404_v49 = vadd.f32 %v973_v36, %v4396_v10  ;;  %v4407_v20 = vadd.f32 %v1060_v8, %v4391_v33 }
 0x146   : > { %5238 = vst [vmem:[#allocation111_spill] sm:$0xff] %v4398_v63  ;;  %5239 = vst [vmem:[#allocation112_spill] sm:$0xff] %v4401_v37 }
 0x147   : > { %5240 = vst [vmem:[#allocation113_spill] sm:$0xff] %v4404_v49  ;;  %5241 = vst [vmem:[#allocation114_spill] sm:$0xff] %v4407_v20  ;;  %v977_v47 = vpop.f32.mrb[8].mxu1  ;;  %v1107_v49 = vsub.s32 3, %v4364_v9 }
 0x148   : > { %v4409_v22 = vadd.f32 %v977_v47, %v881_v62  ;;  %v979_v29 = vpop.f32.mrb[9].mxu1 }
 0x149   : > { %v4412_v23 = vadd.f32 %v979_v29, %v4396_v10  ;;  %v1091_v29 = vld [vmem:[%s4944_s7] sm:$0x3f] }
 0x14a   : > { %5242 = vst [vmem:[#allocation115_spill] sm:$0xff] %v4409_v22  ;;  %v4436_v22 = vrot.slane %v650_v11, %v658_v50 }
 0x14b   : > { %5243 = vst [vmem:[#allocation116_spill] sm:$0xff] %v4412_v23  ;;  %v4430_v23 = vrot.slane %v1091_v29, %v654_v27 }
 0x14c   : > { %5250 = vst [vmem:[#allocation123_spill] sm:$0xff] %v4436_v22 }
 0x14d   : > { %5248 = vst [vmem:[#allocation121_spill] sm:$0xff] %v4430_v23 }
 0x14f   : > { %v983_v3 = vpop.f32.mrb[10].mxu1 }
 0x150   : > { %v4414_v63 = vadd.f32 %v983_v3, %v881_v62  ;;  %v985_v15 = vpop.f32.mrb[11].mxu1  ;;  %v4428_v3 = vrot.slane %v650_v11, %v654_v27 }
 0x151   : > { %v4419_v37 = vadd.f32 %v985_v15, %v4396_v10 }
 0x152   : > { %5244 = vst [vmem:[#allocation117_spill] sm:$0xff] %v4414_v63  ;;  %5247 = vst [vmem:[#allocation120_spill] sm:$0xff] %v4428_v3  ;;  %v4434_v15 = vadd.f32 %v4430_v23, %v4428_v3 }
 0x153   : > { %5245 = vst [vmem:[#allocation118_spill] sm:$0xff] %v4419_v37 }
 0x154   : > { %5249 = vst [vmem:[#allocation122_spill] sm:$0xff] %v4434_v15 }
 0x156   : > { %v4416_v43 = vpop.f32.mrb[8].mxu0  ;;  %v989_v20 = vpop.f32.mrb[12].mxu1 }
 0x157   : > { %v1070_v36 = vpop.f32.mrb[9].mxu0  ;;  %v991_v47 = vpop.f32.mrb[13].mxu1  ;;  %v990_v59 = vadd.f32 %v989_v20, %v881_v62 }
 0x158   : > { %v4422_v8 = vadd.f32 %v1070_v36, %v4391_v33  ;;  %v4438_v36 = vrot.slane %v1091_v29, %v658_v50 }
 0x15a   : > { %5246 = vst [vmem:[#allocation119_spill] sm:$0xff] %v4422_v8  ;;  %5251 = vst [vmem:[#allocation124_spill] sm:$0xff] %v4438_v36  ;;  %v4440_v8 = vrot.slane %v1091_v29, %v1107_v49  ;;  %v4444_v37 = vadd.f32 %v4438_v36, %v4436_v22  ;;  %v4450_v22 = vrot.slane %v1091_v29, %v4367_v61 }
 0x15c   : > { %5252 = vst [vmem:[#allocation125_spill] sm:$0xff] %v4444_v37 }
 0x183   : > { %v1203_v63 = vpop.f32.mrb[0].mxu0  ;;  %v1274_v58 = vpop.f32.mrb[14].mxu1 }
 0x184   : > { %v3292_v30 = vadd.f32 %v4434_v15, %v1203_v63  ;;  %v1205_v27 = vpop.f32.mrb[1].mxu0  ;;  %v1276_v31 = vpop.f32.mrb[15].mxu1  ;;  %v1275_v62 = vadd.f32 %v1274_v58, %v4450_v22 }
 0x185   : > { %v1277_v23 = vadd.f32 %v1276_v31, %v4440_v8  ;;  %v3294_v11 = vadd.f32 %v4444_v37, %v1205_v27  ;;  %v836_v31 = vadd.f32 %v835_v2, %v4375_v46  ;;  %v1111_v46 = vsub.s32 4, %v4364_v9 }
 0x186   : > { %v2437_v3 = vmul.f32 -1.442695, %v3292_v30  ;;  %v1115_v2 = vsub.s32 5, %v4364_v9 }
 0x187   : > { %v1371_v50 = vadd.f32 %v1277_v23, %v990_v59  ;;  %v2438_v49 = vmul.f32 -1.442695, %v3294_v11 }
 0x188   : > { %3414 = vpow2.f32 %v2437_v3 }
 0x189   : > { %3416 = vpow2.f32 %v2438_v49  ;;  %v2439_v23 = vmul.f32 -1.442695, %v1371_v50  ;;  %v4461_v49 = vrot.slane %v1091_v29, %v1111_v46  ;;  %v4463_v50 = vrot.slane %v1091_v29, %v1115_v2  ;;  %v5256_v46 = vld [vmem:[#allocation93_spill] sm:$0xff]  ;;  %v5257_v2 = vld [vmem:[#allocation94_spill] sm:$0xff] }
 0x192   : > { %v3415_v28 = vpop.eup %3414 }
 0x193   : > { %v1354_v34 = vadd.f32 1.0, %v3415_v28  ;;  %v3417_v36 = vpop.eup %3416 }
 0x194   : > { %v1361_v63 = vadd.f32 1.0, %v3417_v36 }
 0x195   : > { %3418 = vrcp.f32 %v1354_v34 }
 0x196   : > { %3420 = vrcp.f32 %v1361_v63 }
 0x19f   : > { %v3419_v20 = vpop.eup %3418 }
 0x1a0   : > { %v1364_v30 = vmul.f32 %v3419_v20, %v1275_v62  ;;  %v3421_v3 = vpop.eup %3420  ;;  %v992_v62 = vadd.f32 %v991_v47, %v4396_v10 }
 0x1a1   : > { %v1367_v28 = vsub.f32 1.0, %v3421_v3  ;;  %v1369_v61 = vmul.f32 %v3421_v3, %v4198_v24 }
 0x1a2   : > { %v1365_v59 = vadd.f32 %v1364_v30, %v836_v31 }
 0x1a4   : > { %3422 = vtanh.f32 %v1365_v59 }
 0x1a5   : > { %3424 = vpow2.f32 %v2439_v23  ;;  %v1076_v23 = vadd.f32 %v4416_v43, %v4391_v33  ;;  %v5253_v33 = vld [vmem:[#allocation92_spill] sm:$0xff] }
 0x1a6   : > { %v5255_v43 = vld [vmem:[#allocation64_spill] sm:$0xff] }
 0x1ae   : > { %v3423_v34 = vpop.eup %3422 }
 0x1af   : > { %v1368_v27 = vmul.f32 %v3423_v34, %v1367_v28  ;;  %v3425_v58 = vpop.eup %3424 }
 0x1b0   : > { %v1375_v36 = vadd.f32 1.0, %v3425_v58 }
 0x1b1   : > { %v4455_v11 = vadd.f32 %v1369_v61, %v1368_v27 }
 0x1b2   : > { %3426 = vrcp.f32 %v1375_v36 }
 0x1b3   : > { %1392 = vst [vmem:[%s3926_s26] sm:$0xff] %v4455_v11 }
 0x1bc   : > { %v3427_v30 = vpop.eup %3426 }
 0x1c3   : > { %v1345_v63 = vpop.f32.mrb[16].mxu1 }
 0x1c4   : > { %v1346_v24 = vadd.f32 %v1345_v63, %v4461_v49  ;;  %v1347_v20 = vpop.f32.mrb[17].mxu1  ;;  %v5258_v63 = vld [vmem:[#allocation66_spill] sm:$0xff] }
 0x1c5   : > { %v1348_v31 = vadd.f32 %v1347_v20, %v4463_v50  ;;  %v5261_v20 = vld [vmem:[#allocation96_spill] sm:$0xff] }
 0x1c6   : > { %v1378_v59 = vadd.f32 %v1346_v24, %v992_v62  ;;  %v5259_v62 = vld [vmem:[#allocation68_spill] sm:$0xff]  ;;  %v5260_v24 = vld [vmem:[#allocation95_spill] sm:$0xff] }
 0x1c7   : > { %v1385_v3 = vmul.f32 %v3427_v30, %v1348_v31  ;;  %v5262_v31 = vld [vmem:[#allocation70_spill] sm:$0xff]  ;;  %v5263_v30 = vld [vmem:[#allocation72_spill] sm:$0xff] }
 0x1c8   : > { %v2440_v9 = vmul.f32 -1.442695, %v1378_v59  ;;  %v5264_v59 = vld [vmem:[#allocation97_spill] sm:$0xff] }
 0x1c9   : > { %v1386_v28 = vadd.f32 %v1385_v3, %v1076_v23  ;;  %v5265_v23 = vld [vmem:[#allocation98_spill] sm:$0xff] }
 0x1ca   : > { %3428 = vpow2.f32 %v2440_v9  ;;  %v5266_v3 = vld [vmem:[#allocation74_spill] sm:$0xff]  ;;  %v5267_v9 = vld [vmem:[#allocation76_spill] sm:$0xff] }
 0x1d4   : > { %v3429_v29 = vpop.eup %3428 }
 0x1d5   : > { %v1382_v34 = vadd.f32 1.0, %v3429_v29  ;;  %v5269_v29 = vld [vmem:[#allocation100_spill] sm:$0xff] }
 0x1d7   : > { %3430 = vrcp.f32 %v1382_v34  ;;  %v5270_v34 = vld [vmem:[#allocation78_spill] sm:$0xff] }
 0x1d8   : > { %3432 = vtanh.f32 %v1386_v28  ;;  %v5268_v28 = vld [vmem:[#allocation99_spill] sm:$0xff] }
 0x1e1   : > { %v3431_v10 = vpop.eup %3430 }
 0x1e2   : > { %v1388_v47 = vsub.f32 1.0, %v3431_v10  ;;  %v3433_v27 = vpop.eup %3432  ;;  %v1390_v58 = vmul.f32 %v3431_v10, %v4109_v54  ;;  %v5254_v54 = vld [vmem:[#allocation62_spill] sm:$0xff]  ;;  %v5271_v10 = vld [vmem:[#allocation80_spill] sm:$0xff] }
 0x1e4   : > { %v1389_v61 = vmul.f32 %v3433_v27, %v1388_v47  ;;  %v5272_v47 = vld [vmem:[#allocation101_spill] sm:$0xff]  ;;  %v5273_v27 = vld [vmem:[#allocation102_spill] sm:$0xff] }
 0x1e6   : > { %v4471_v36 = vadd.f32 %v1390_v58, %v1389_v61  ;;  %v5274_v61 = vld [vmem:[#allocation82_spill] sm:$0xff]  ;;  %v5275_v58 = vld [vmem:[#allocation84_spill] sm:$0xff] }
 0x1e8   : > { %1471 = vmatprep.mubr.f32.mxu0 %v4471_v36  ;;  %2441 = vst [vmem:[%s3928_s20 + $0x18] sm:$0xff] %v4471_v36  ;;  %1542 = vmatprep.mubr.f32.mxu1 %v4471_v36 }
 0x1e9   : > { %1472 = vmatmul.mubr.f32.vlgmr.msra.gmra.mrb[2].mxu0 %v4455_v11  ;;  %1543 = vmatmul.mubr.f32.vlgmr.msra.gmra.mrb[18].mxu1 %v4455_v11 }
 0x1ea   : > { %2844 = vmatpush1.bf16.msra.mxu0 %v4200_v55  ;;  %1613 = vmatprep.mubr.f32.mxu0 %v4471_v36 }
 0x1eb   : > { %2846 = vmatprep.subr.bf16.mxu0 %v5253_v33  ;;  %2972 = vmatpush1.bf16.msra.mxu1 %v3996_v41  ;;  %v5306_v41 = vld [vmem:[#allocation73_spill] sm:$0xff] }
 0x1ec   : > { %2974 = vmatprep.subr.bf16.mxu1 %v4000_v45  ;;  %v5305_v45 = vld [vmem:[#allocation71_spill] sm:$0xff] }
 0x1ee   : > { %2848 = vmatpush1.bf16.msra.mxu0 %v4209_v21 }
 0x1ef   : > { %2850 = vmatprep.subr.bf16.mxu0 %v4213_v16  ;;  %2976 = vmatpush1.bf16.msra.mxu1 %v4008_v53  ;;  %v5304_v53 = vld [vmem:[#allocation69_spill] sm:$0xff] }
 0x1f0   : > { %2978 = vmatprep.subr.bf16.mxu1 %v4014_v57  ;;  %v5303_v57 = vld [vmem:[#allocation67_spill] sm:$0xff] }
 0x1f2   : > { %2852 = vmatpush1.bf16.msra.mxu0 %v4218_v6 }
 0x1f3   : > { %2854 = vmatprep.subr.bf16.mxu0 %v4221_v7  ;;  %2980 = vmatpush1.bf16.msra.mxu1 %v4022_v1  ;;  %v5302_v1 = vld [vmem:[#allocation65_spill] sm:$0xff] }
 0x1f4   : > { %2982 = vmatprep.subr.bf16.mxu1 %v4028_v5  ;;  %v5301_v5 = vld [vmem:[#allocation63_spill] sm:$0xff] }
 0x1f6   : > { %2856 = vmatpush1.bf16.msra.mxu0 %v4226_v40 }
 0x1f7   : > { %2858 = vmatprep.subr.bf16.mxu0 %v4229_v19  ;;  %2984 = vmatpush1.bf16.msra.mxu1 %v4035_v14  ;;  %v5300_v14 = vld [vmem:[#allocation61_spill] sm:$0xff] }
 0x1f8   : > { %2986 = vmatprep.subr.bf16.mxu1 %v4041_v18  ;;  %v5299_v18 = vld [vmem:[#allocation59_spill] sm:$0xff] }
 0x1fa   : > { %2860 = vmatpush1.bf16.msra.mxu0 %v4234_v52 }
 0x1fb   : > { %2862 = vmatprep.subr.bf16.mxu0 %v4237_v38  ;;  %2988 = vmatpush1.bf16.msra.mxu1 %v4047_v26  ;;  %v5298_v26 = vld [vmem:[#allocation57_spill] sm:$0xff] }
 0x1fc   : > { %2990 = vmatprep.subr.bf16.mxu1 %v4053_v32  ;;  %v5297_v32 = vld [vmem:[#allocation55_spill] sm:$0xff] }
 0x1fe   : > { %2864 = vmatpush1.bf16.msra.mxu0 %v4242_v0 }
 0x1ff   : > { %2866 = vmatprep.subr.bf16.mxu0 %v4245_v44  ;;  %2992 = vmatpush1.bf16.msra.mxu1 %v4059_v42  ;;  %v5296_v42 = vld [vmem:[#allocation53_spill] sm:$0xff] }
 0x200   : > { %2994 = vmatprep.subr.bf16.mxu1 %v4065_v48  ;;  %v5295_v48 = vld [vmem:[#allocation51_spill] sm:$0xff] }
 0x202   : > { %2868 = vmatpush1.bf16.msra.mxu0 %v4250_v13 }
 0x203   : > { %2870 = vmatprep.subr.bf16.mxu0 %v4253_v56  ;;  %2996 = vmatpush1.bf16.msra.mxu1 %v4071_v60  ;;  %v5294_v60 = vld [vmem:[#allocation49_spill] sm:$0xff] }
 0x204   : > { %2998 = vmatprep.subr.bf16.mxu1 %v5218_v35  ;;  %v5293_v35 = vld [vmem:[#allocation47_spill] sm:$0xff] }
 0x206   : > { %2872 = vmatpush1.bf16.msra.mxu0 %v4258_v25 }
 0x207   : > { %2874 = vmatprep.subr.bf16.mxu0 %v4261_v4  ;;  %3000 = vmatpush1.bf16.msra.mxu1 %v5219_v12  ;;  %v5291_v12 = vld [vmem:[#allocation43_spill] sm:$0xff] }
 0x208   : > { %3002 = vmatprep.subr.bf16.mxu1 %v5220_v51  ;;  %v5290_v51 = vld [vmem:[#allocation41_spill] sm:$0xff] }
 0x20a   : > { %2876 = vmatpush1.bf16.msra.mxu0 %v4266_v39 }
 0x20b   : > { %2878 = vmatprep.subr.bf16.mxu0 %v4269_v17  ;;  %3004 = vmatpush1.bf16.msra.mxu1 %v5254_v54  ;;  %v5287_v54 = vld [vmem:[#allocation35_spill] sm:$0xff] }
 0x20c   : > { %3006 = vmatprep.subr.bf16.mxu1 %v5255_v43  ;;  %v5286_v43 = vld [vmem:[#allocation33_spill] sm:$0xff] }
 0x20e   : > { %2880 = vmatpush1.bf16.msra.mxu0 %v5256_v46 }
 0x20f   : > { %2882 = vmatprep.subr.bf16.mxu0 %v5257_v2  ;;  %3008 = vmatpush1.bf16.msra.mxu1 %v5258_v63  ;;  %v5283_v63 = vld [vmem:[#allocation91_spill] sm:$0xff] }
 0x210   : > { %3010 = vmatprep.subr.bf16.mxu1 %v5259_v62  ;;  %v5280_v62 = vld [vmem:[#allocation105_spill] sm:$0xff] }
 0x212   : > { %2884 = vmatpush1.bf16.msra.mxu0 %v5260_v24 }
 0x213   : > { %2886 = vmatprep.subr.bf16.mxu0 %v5261_v20  ;;  %3012 = vmatpush1.bf16.msra.mxu1 %v5262_v31  ;;  %v5279_v31 = vld [vmem:[#allocation88_spill] sm:$0xff] }
 0x214   : > { %3014 = vmatprep.subr.bf16.mxu1 %v5263_v30  ;;  %v5276_v30 = vld [vmem:[#allocation103_spill] sm:$0xff] }
 0x216   : > { %2888 = vmatpush1.bf16.msra.mxu0 %v5264_v59 }
 0x217   : > { %2890 = vmatprep.subr.bf16.mxu0 %v5265_v23  ;;  %3016 = vmatpush1.bf16.msra.mxu1 %v5266_v3  ;;  %v5277_v3 = vld [vmem:[#allocation104_spill] sm:$0xff] }
 0x218   : > { %3018 = vmatprep.subr.bf16.mxu1 %v5267_v9  ;;  %v5278_v9 = vld [vmem:[#allocation86_spill] sm:$0xff] }
 0x21a   : > { %2892 = vmatpush1.bf16.msra.mxu0 %v5268_v28  ;;  %v5314_v28 = vld [vmem:[#allocation89_spill] sm:$0xff] }
 0x21b   : > { %2894 = vmatprep.subr.bf16.mxu0 %v5269_v29  ;;  %3020 = vmatpush1.bf16.msra.mxu1 %v5270_v34  ;;  %v5281_v34 = vld [vmem:[#allocation27_spill] sm:$0xff] }
 0x21c   : > { %3022 = vmatprep.subr.bf16.mxu1 %v5271_v10  ;;  %v5282_v10 = vld [vmem:[#allocation90_spill] sm:$0xff]  ;;  %v5313_v29 = vld [vmem:[#allocation87_spill] sm:$0xff] }
 0x21e   : > { %2896 = vmatpush1.bf16.msra.mxu0 %v5272_v47  ;;  %v5312_v47 = vld [vmem:[#allocation85_spill] sm:$0xff] }
 0x21f   : > { %2898 = vmatprep.subr.bf16.mxu0 %v5273_v27  ;;  %3024 = vmatpush1.bf16.msra.mxu1 %v5274_v61  ;;  %v5284_v61 = vld [vmem:[#allocation29_spill] sm:$0xff]  ;;  %v5311_v27 = vld [vmem:[#allocation83_spill] sm:$0xff] }
 0x220   : > { %3026 = vmatprep.subr.bf16.mxu1 %v5275_v58  ;;  %v5285_v58 = vld [vmem:[#allocation31_spill] sm:$0xff] }
 0x222   : > { %2900 = vmatpush1.bf16.msra.mxu0 %v5276_v30  ;;  %v5310_v30 = vld [vmem:[#allocation81_spill] sm:$0xff] }
 0x223   : > { %2902 = vmatprep.subr.bf16.mxu0 %v5277_v3  ;;  %3028 = vmatpush1.bf16.msra.mxu1 %v5278_v9  ;;  %v5288_v9 = vld [vmem:[#allocation37_spill] sm:$0xff]  ;;  %v5309_v3 = vld [vmem:[#allocation79_spill] sm:$0xff] }
 0x224   : > { %3030 = vmatprep.subr.bf16.mxu1 %v5279_v31  ;;  %v5289_v31 = vld [vmem:[#allocation39_spill] sm:$0xff] }
 0x226   : > { %2904 = vmatpush1.bf16.msra.mxu0 %v5280_v62  ;;  %v5308_v62 = vld [vmem:[#allocation77_spill] sm:$0xff] }
 0x227   : > { %2906 = vmatprep.subr.bf16.mxu0 %v5281_v34  ;;  %3032 = vmatpush1.bf16.msra.mxu1 %v5282_v10  ;;  %v5292_v10 = vld [vmem:[#allocation45_spill] sm:$0xff] }
 0x228   : > { %3034 = vmatprep.subr.bf16.mxu1 %v5283_v63  ;;  %v5307_v63 = vld [vmem:[#allocation75_spill] sm:$0xff] }
 0x229   : > { %1614 = vmatmul.mubr.f32.vlgmr.msra.gmra.mrb[10].mxu0 %v4455_v11 }
 0x22a   : > { %2908 = vmatpush1.bf16.msra.mxu0 %v5284_v61 }
 0x22b   : > { %2910 = vmatprep.subr.bf16.mxu0 %v5285_v58 }
 0x22e   : > { %2912 = vmatpush1.bf16.msra.mxu0 %v5286_v43 }
 0x22f   : > { %2914 = vmatprep.subr.bf16.mxu0 %v5287_v54 }
 0x232   : > { %2916 = vmatpush1.bf16.msra.mxu0 %v5288_v9 }
 0x233   : > { %2918 = vmatprep.subr.bf16.mxu0 %v5289_v31 }
 0x236   : > { %2920 = vmatpush1.bf16.msra.mxu0 %v5290_v51 }
 0x237   : > { %2922 = vmatprep.subr.bf16.mxu0 %v5291_v12 }
 0x23a   : > { %2924 = vmatpush1.bf16.msra.mxu0 %v5292_v10 }
 0x23b   : > { %2926 = vmatprep.subr.bf16.mxu0 %v5293_v35 }
 0x23e   : > { %2928 = vmatpush1.bf16.msra.mxu0 %v5294_v60 }
 0x23f   : > { %2930 = vmatprep.subr.bf16.mxu0 %v5295_v48 }
 0x242   : > { %2932 = vmatpush1.bf16.msra.mxu0 %v5296_v42 }
 0x243   : > { %2934 = vmatprep.subr.bf16.mxu0 %v5297_v32 }
 0x246   : > { %2936 = vmatpush1.bf16.msra.mxu0 %v5298_v26 }
 0x247   : > { %2938 = vmatprep.subr.bf16.mxu0 %v5299_v18 }
 0x24a   : > { %2940 = vmatpush1.bf16.msra.mxu0 %v5300_v14 }
 0x24b   : > { %2942 = vmatprep.subr.bf16.mxu0 %v5301_v5 }
 0x24e   : > { %2944 = vmatpush1.bf16.msra.mxu0 %v5302_v1 }
 0x24f   : > { %2946 = vmatprep.subr.bf16.mxu0 %v5303_v57 }
 0x252   : > { %2948 = vmatpush1.bf16.msra.mxu0 %v5304_v53 }
 0x253   : > { %2950 = vmatprep.subr.bf16.mxu0 %v5305_v45 }
 0x256   : > { %2952 = vmatpush1.bf16.msra.mxu0 %v5306_v41 }
 0x257   : > { %2954 = vmatprep.subr.bf16.mxu0 %v5307_v63 }
 0x25a   : > { %2956 = vmatpush1.bf16.msra.mxu0 %v5308_v62 }
 0x25b   : > { %2958 = vmatprep.subr.bf16.mxu0 %v5309_v3 }
 0x25e   : > { %2960 = vmatpush1.bf16.msra.mxu0 %v5310_v30 }
 0x25f   : > { %2962 = vmatprep.subr.bf16.mxu0 %v5311_v27  ;;  %v5315_v27 = vld [vmem:[#allocation117_spill] sm:$0xff] }
 0x262   : > { %2964 = vmatpush1.bf16.msra.mxu0 %v5312_v47 }
 0x263   : > { %2966 = vmatprep.subr.bf16.mxu0 %v5313_v29 }
 0x266   : > { %2968 = vmatpush1.bf16.msra.mxu0 %v5314_v28 }
 0x267   : > { %3098 = vmatprep.subr.bf16.mxu0 %v5281_v34 }
 0x2bc   : > { %v1473_v23 = vpop.f32.mrb[2].mxu0  ;;  %v1544_v41 = vpop.f32.mrb[18].mxu1 }
 0x2bd   : > { %v3296_v63 = vadd.f32 %v4434_v15, %v1473_v23  ;;  %v1475_v59 = vpop.f32.mrb[3].mxu0  ;;  %v1546_v62 = vpop.f32.mrb[19].mxu1  ;;  %v1545_v23 = vadd.f32 %v1544_v41, %v4450_v22 }
 0x2be   : > { %v1547_v3 = vadd.f32 %v1546_v62, %v4440_v8  ;;  %v3298_v30 = vadd.f32 %v4444_v37, %v1475_v59  ;;  %v5316_v62 = vld [vmem:[#allocation108_spill] sm:$0xff] }
 0x2bf   : > { %v2442_v45 = vmul.f32 -1.442695, %v3296_v63 }
 0x2c0   : > { %v1641_v53 = vadd.f32 %v1547_v3, %v5315_v27  ;;  %v2443_v47 = vmul.f32 -1.442695, %v3298_v30 }
 0x2c1   : > { %3434 = vpow2.f32 %v2442_v45 }
 0x2c2   : > { %3436 = vpow2.f32 %v2443_v47  ;;  %v2444_v59 = vmul.f32 -1.442695, %v1641_v53 }
 0x2cb   : > { %v3435_v29 = vpop.eup %3434 }
 0x2cc   : > { %v1624_v28 = vadd.f32 1.0, %v3435_v29  ;;  %v3437_v34 = vpop.eup %3436 }
 0x2cd   : > { %v1631_v20 = vadd.f32 1.0, %v3437_v34  ;;  %v5317_v34 = vld [vmem:[#allocation118_spill] sm:$0xff] }
 0x2ce   : > { %3438 = vrcp.f32 %v1624_v28 }
 0x2cf   : > { %3440 = vrcp.f32 %v1631_v20 }
 0x2d8   : > { %v3439_v15 = vpop.eup %3438 }
 0x2d9   : > { %v1634_v24 = vmul.f32 %v3439_v15, %v1545_v23  ;;  %v3441_v37 = vpop.eup %3440 }
 0x2da   : > { %v1637_v45 = vsub.f32 1.0, %v3441_v37  ;;  %v1639_v29 = vmul.f32 %v3441_v37, %v4455_v11  ;;  %v5318_v37 = vld [vmem:[#allocation119_spill] sm:$0xff] }
 0x2db   : > { %v1635_v63 = vadd.f32 %v1634_v24, %v5316_v62 }
 0x2dd   : > { %3442 = vtanh.f32 %v1635_v63 }
 0x2de   : > { %3444 = vpow2.f32 %v2444_v59 }
 0x2e7   : > { %v3443_v30 = vpop.eup %3442 }
 0x2e8   : > { %v1638_v3 = vmul.f32 %v3443_v30, %v1637_v45  ;;  %v3445_v47 = vpop.eup %3444 }
 0x2e9   : > { %v1645_v41 = vadd.f32 1.0, %v3445_v47 }
 0x2ea   : > { %v4584_v28 = vadd.f32 %v1639_v29, %v1638_v3 }
 0x2eb   : > { %3446 = vrcp.f32 %v1645_v41 }
 0x2ec   : > { %2446 = vst [vmem:[%s3926_s26 + $0x8] sm:$0xff] %v4584_v28 }
 0x2f5   : > { %v3447_v27 = vpop.eup %3446 }
 0x2fc   : > { %v1615_v15 = vpop.f32.mrb[10].mxu0 }
 0x2fd   : > { %v1616_v20 = vadd.f32 %v1615_v15, %v4461_v49  ;;  %v1617_v24 = vpop.f32.mrb[11].mxu0 }
 0x2fe   : > { %v1618_v53 = vadd.f32 %v1617_v24, %v4463_v50  ;;  %v5341_v24 = vld [vmem:[#allocation89_spill] sm:$0xff] }
 0x2ff   : > { %v1648_v23 = vadd.f32 %v1616_v20, %v5317_v34  ;;  %v5340_v20 = vld [vmem:[#allocation28_spill] sm:$0xff] }
 0x300   : > { %v1655_v62 = vmul.f32 %v3447_v27, %v1618_v53  ;;  %v5342_v53 = vld [vmem:[#allocation91_spill] sm:$0xff]  ;;  %v5343_v27 = vld [vmem:[#allocation30_spill] sm:$0xff]  ;;  %v5344_v34 = vld [vmem:[#allocation32_spill] sm:$0xff] }
 0x301   : > { %v2445_v63 = vmul.f32 -1.442695, %v1648_v23  ;;  %v5345_v23 = vld [vmem:[#allocation34_spill] sm:$0xff] }
 0x302   : > { %v1656_v11 = vadd.f32 %v1655_v62, %v5318_v37  ;;  %v5346_v62 = vld [vmem:[#allocation36_spill] sm:$0xff] }
 0x303   : > { %3448 = vpow2.f32 %v2445_v63  ;;  %v5347_v63 = vld [vmem:[#allocation38_spill] sm:$0xff]  ;;  %v5348_v37 = vld [vmem:[#allocation40_spill] sm:$0xff] }
 0x30d   : > { %v3449_v59 = vpop.eup %3448 }
 0x30e   : > { %v1652_v45 = vadd.f32 1.0, %v3449_v59  ;;  %v5350_v59 = vld [vmem:[#allocation44_spill] sm:$0xff] }
 0x310   : > { %3450 = vrcp.f32 %v1652_v45  ;;  %v5351_v45 = vld [vmem:[#allocation46_spill] sm:$0xff] }
 0x311   : > { %3452 = vtanh.f32 %v1656_v11  ;;  %v5349_v11 = vld [vmem:[#allocation42_spill] sm:$0xff] }
 0x31a   : > { %v3451_v30 = vpop.eup %3450 }
 0x31b   : > { %v1658_v3 = vsub.f32 1.0, %v3451_v30  ;;  %v3453_v29 = vpop.eup %3452  ;;  %v1660_v41 = vmul.f32 %v3451_v30, %v4471_v36  ;;  %v5332_v36 = vld [vmem:[#allocation102_spill] sm:$0xff]  ;;  %v5352_v30 = vld [vmem:[#allocation48_spill] sm:$0xff] }
 0x31d   : > { %v1659_v47 = vmul.f32 %v3453_v29, %v1658_v3  ;;  %v5353_v3 = vld [vmem:[#allocation50_spill] sm:$0xff]  ;;  %v5354_v29 = vld [vmem:[#allocation52_spill] sm:$0xff] }
 0x31f   : > { %v4593_v15 = vadd.f32 %v1660_v41, %v1659_v47  ;;  %v5355_v47 = vld [vmem:[#allocation54_spill] sm:$0xff]  ;;  %v5356_v41 = vld [vmem:[#allocation56_spill] sm:$0xff] }
 0x321   : > { %1740 = vmatprep.mubr.f32.mxu0 %v4593_v15  ;;  %2447 = vst [vmem:[%s3928_s20 + $0x10] sm:$0xff] %v4593_v15  ;;  %1811 = vmatprep.mubr.f32.mxu1 %v4593_v15 }
 0x322   : > { %1741 = vmatmul.mubr.f32.vlgmr.msra.gmra.mrb[4].mxu0 %v4584_v28  ;;  %1812 = vmatmul.mubr.f32.vlgmr.msra.gmra.mrb[20].mxu1 %v4584_v28 }
 0x323   : > { %3036 = vmatpush1.bf16.msra.mxu1 %v4200_v55  ;;  %1882 = vmatprep.mubr.f32.mxu1 %v4593_v15 }
 0x324   : > { %3038 = vmatprep.subr.bf16.mxu1 %v5253_v33  ;;  %3100 = vmatpush1.bf16.msra.mxu0 %v5284_v61  ;;  %v5338_v61 = vld [vmem:[#allocation87_spill] sm:$0xff] }
 0x325   : > { %3102 = vmatprep.subr.bf16.mxu0 %v5285_v58  ;;  %v5339_v58 = vld [vmem:[#allocation105_spill] sm:$0xff] }
 0x327   : > { %3040 = vmatpush1.bf16.msra.mxu1 %v4209_v21 }
 0x328   : > { %3042 = vmatprep.subr.bf16.mxu1 %v4213_v16  ;;  %3104 = vmatpush1.bf16.msra.mxu0 %v5286_v43  ;;  %v5334_v43 = vld [vmem:[#allocation83_spill] sm:$0xff] }
 0x329   : > { %3106 = vmatprep.subr.bf16.mxu0 %v5287_v54  ;;  %v5333_v54 = vld [vmem:[#allocation81_spill] sm:$0xff] }
 0x32b   : > { %3044 = vmatpush1.bf16.msra.mxu1 %v4218_v6 }
 0x32c   : > { %3046 = vmatprep.subr.bf16.mxu1 %v4221_v7  ;;  %3108 = vmatpush1.bf16.msra.mxu0 %v5288_v9  ;;  %v5336_v9 = vld [vmem:[#allocation104_spill] sm:$0xff] }
 0x32d   : > { %3110 = vmatprep.subr.bf16.mxu0 %v5289_v31  ;;  %v5335_v31 = vld [vmem:[#allocation103_spill] sm:$0xff] }
 0x32f   : > { %3048 = vmatpush1.bf16.msra.mxu1 %v4226_v40 }
 0x330   : > { %3050 = vmatprep.subr.bf16.mxu1 %v4229_v19  ;;  %3112 = vmatpush1.bf16.msra.mxu0 %v5290_v51  ;;  %v5331_v51 = vld [vmem:[#allocation101_spill] sm:$0xff] }
 0x331   : > { %3114 = vmatprep.subr.bf16.mxu0 %v5291_v12  ;;  %v5330_v12 = vld [vmem:[#allocation79_spill] sm:$0xff] }
 0x333   : > { %3052 = vmatpush1.bf16.msra.mxu1 %v4234_v52 }
 0x334   : > { %3054 = vmatprep.subr.bf16.mxu1 %v4237_v38  ;;  %3116 = vmatpush1.bf16.msra.mxu0 %v5292_v10  ;;  %v5337_v10 = vld [vmem:[#allocation85_spill] sm:$0xff] }
 0x335   : > { %3118 = vmatprep.subr.bf16.mxu0 %v5293_v35  ;;  %v5327_v35 = vld [vmem:[#allocation99_spill] sm:$0xff] }
 0x337   : > { %3056 = vmatpush1.bf16.msra.mxu1 %v4242_v0 }
 0x338   : > { %3058 = vmatprep.subr.bf16.mxu1 %v4245_v44  ;;  %3120 = vmatpush1.bf16.msra.mxu0 %v5294_v60  ;;  %v5326_v60 = vld [vmem:[#allocation75_spill] sm:$0xff] }
 0x339   : > { %3122 = vmatprep.subr.bf16.mxu0 %v5295_v48  ;;  %v5323_v48 = vld [vmem:[#allocation97_spill] sm:$0xff] }
 0x33b   : > { %3060 = vmatpush1.bf16.msra.mxu1 %v4250_v13 }
 0x33c   : > { %3062 = vmatprep.subr.bf16.mxu1 %v4253_v56  ;;  %3124 = vmatpush1.bf16.msra.mxu0 %v5296_v42  ;;  %v5322_v42 = vld [vmem:[#allocation71_spill] sm:$0xff] }
 0x33d   : > { %3126 = vmatprep.subr.bf16.mxu0 %v5297_v32  ;;  %v5319_v32 = vld [vmem:[#allocation95_spill] sm:$0xff] }
 0x33f   : > { %3064 = vmatpush1.bf16.msra.mxu1 %v4258_v25 }
 0x340   : > { %3066 = vmatprep.subr.bf16.mxu1 %v4261_v4  ;;  %3128 = vmatpush1.bf16.msra.mxu0 %v5298_v26  ;;  %v5320_v26 = vld [vmem:[#allocation96_spill] sm:$0xff] }
 0x341   : > { %3130 = vmatprep.subr.bf16.mxu0 %v5299_v18  ;;  %v5321_v18 = vld [vmem:[#allocation69_spill] sm:$0xff] }
 0x343   : > { %3068 = vmatpush1.bf16.msra.mxu1 %v4266_v39 }
 0x344   : > { %3070 = vmatprep.subr.bf16.mxu1 %v4269_v17  ;;  %3132 = vmatpush1.bf16.msra.mxu0 %v5300_v14  ;;  %v5324_v14 = vld [vmem:[#allocation98_spill] sm:$0xff] }
 0x345   : > { %3134 = vmatprep.subr.bf16.mxu0 %v5301_v5  ;;  %v5325_v5 = vld [vmem:[#allocation73_spill] sm:$0xff] }
 0x347   : > { %3072 = vmatpush1.bf16.msra.mxu1 %v5256_v46 }
 0x348   : > { %3074 = vmatprep.subr.bf16.mxu1 %v5257_v2  ;;  %3136 = vmatpush1.bf16.msra.mxu0 %v5302_v1  ;;  %v5328_v1 = vld [vmem:[#allocation100_spill] sm:$0xff] }
 0x349   : > { %3138 = vmatprep.subr.bf16.mxu0 %v5303_v57  ;;  %v5329_v57 = vld [vmem:[#allocation77_spill] sm:$0xff] }
 0x34b   : > { %3076 = vmatpush1.bf16.msra.mxu1 %v5319_v32 }
 0x34c   : > { %3078 = vmatprep.subr.bf16.mxu1 %v5320_v26  ;;  %3140 = vmatpush1.bf16.msra.mxu0 %v5321_v18  ;;  %v5357_v18 = vld [vmem:[#allocation58_spill] sm:$0xff] }
 0x34d   : > { %3142 = vmatprep.subr.bf16.mxu0 %v5322_v42  ;;  %v5358_v42 = vld [vmem:[#allocation60_spill] sm:$0xff] }
 0x34f   : > { %3080 = vmatpush1.bf16.msra.mxu1 %v5323_v48 }
 0x350   : > { %3082 = vmatprep.subr.bf16.mxu1 %v5324_v14  ;;  %3144 = vmatpush1.bf16.msra.mxu0 %v5325_v5  ;;  %v5359_v5 = vld [vmem:[#allocation62_spill] sm:$0xff] }
 0x351   : > { %3146 = vmatprep.subr.bf16.mxu0 %v5326_v60  ;;  %v5360_v60 = vld [vmem:[#allocation64_spill] sm:$0xff] }
 0x353   : > { %3084 = vmatpush1.bf16.msra.mxu1 %v5327_v35 }
 0x354   : > { %3086 = vmatprep.subr.bf16.mxu1 %v5328_v1  ;;  %3148 = vmatpush1.bf16.msra.mxu0 %v5329_v57  ;;  %v5361_v57 = vld [vmem:[#allocation66_spill] sm:$0xff] }
 0x355   : > { %3150 = vmatprep.subr.bf16.mxu0 %v5330_v12  ;;  %v5362_v12 = vld [vmem:[#allocation68_spill] sm:$0xff] }
 0x357   : > { %3088 = vmatpush1.bf16.msra.mxu1 %v5331_v51 }
 0x358   : > { %3090 = vmatprep.subr.bf16.mxu1 %v5332_v36  ;;  %3152 = vmatpush1.bf16.msra.mxu0 %v5333_v54  ;;  %v5363_v54 = vld [vmem:[#allocation70_spill] sm:$0xff] }
 0x359   : > { %3154 = vmatprep.subr.bf16.mxu0 %v5334_v43  ;;  %v5364_v43 = vld [vmem:[#allocation72_spill] sm:$0xff] }
 0x35b   : > { %3092 = vmatpush1.bf16.msra.mxu1 %v5335_v31 }
 0x35c   : > { %3094 = vmatprep.subr.bf16.mxu1 %v5336_v9  ;;  %3156 = vmatpush1.bf16.msra.mxu0 %v5337_v10  ;;  %v5365_v10 = vld [vmem:[#allocation74_spill] sm:$0xff] }
 0x35d   : > { %3158 = vmatprep.subr.bf16.mxu0 %v5338_v61  ;;  %v5366_v61 = vld [vmem:[#allocation76_spill] sm:$0xff] }
 0x35f   : > { %3096 = vmatpush1.bf16.msra.mxu1 %v5339_v58 }
 0x360   : > { %3162 = vmatprep.subr.bf16.mxu1 %v5340_v20  ;;  %3160 = vmatpush1.bf16.msra.mxu0 %v5341_v24  ;;  %v5367_v20 = vld [vmem:[#allocation78_spill] sm:$0xff]  ;;  %v5368_v24 = vld [vmem:[#allocation80_spill] sm:$0xff] }
 0x361   : > { %3226 = vmatprep.subr.bf16.mxu0 %v5342_v53  ;;  %v5369_v53 = vld [vmem:[#allocation82_spill] sm:$0xff] }
 0x362   : > { %1883 = vmatmul.mubr.f32.vlgmr.msra.gmra.mrb[22].mxu1 %v4584_v28 }
 0x363   : > { %3164 = vmatpush1.bf16.msra.mxu1 %v5343_v27  ;;  %v5370_v27 = vld [vmem:[#allocation84_spill] sm:$0xff] }
 0x364   : > { %3166 = vmatprep.subr.bf16.mxu1 %v5344_v34  ;;  %v5371_v34 = vld [vmem:[#allocation86_spill] sm:$0xff] }
 0x367   : > { %3168 = vmatpush1.bf16.msra.mxu1 %v5345_v23  ;;  %v5372_v23 = vld [vmem:[#allocation88_spill] sm:$0xff] }
 0x368   : > { %3170 = vmatprep.subr.bf16.mxu1 %v5346_v62  ;;  %v5373_v62 = vld [vmem:[#allocation90_spill] sm:$0xff] }
 0x36b   : > { %3172 = vmatpush1.bf16.msra.mxu1 %v5347_v63 }
 0x36c   : > { %3174 = vmatprep.subr.bf16.mxu1 %v5348_v37 }
 0x36f   : > { %3176 = vmatpush1.bf16.msra.mxu1 %v5349_v11  ;;  %v5374_v11 = vld [vmem:[#allocation122_spill] sm:$0xff] }
 0x370   : > { %3178 = vmatprep.subr.bf16.mxu1 %v5350_v59 }
 0x373   : > { %3180 = vmatpush1.bf16.msra.mxu1 %v5351_v45 }
 0x374   : > { %3182 = vmatprep.subr.bf16.mxu1 %v5352_v30 }
 0x377   : > { %3184 = vmatpush1.bf16.msra.mxu1 %v5353_v3 }
 0x378   : > { %3186 = vmatprep.subr.bf16.mxu1 %v5354_v29 }
 0x37b   : > { %3188 = vmatpush1.bf16.msra.mxu1 %v5355_v47  ;;  %v5375_v47 = vld [vmem:[#allocation125_spill] sm:$0xff] }
 0x37c   : > { %3190 = vmatprep.subr.bf16.mxu1 %v5356_v41 }
 0x37f   : > { %3192 = vmatpush1.bf16.msra.mxu1 %v5357_v18  ;;  %v5376_v18 = vld [vmem:[#allocation115_spill] sm:$0xff] }
 0x380   : > { %3194 = vmatprep.subr.bf16.mxu1 %v5358_v42 }
 0x383   : > { %3196 = vmatpush1.bf16.msra.mxu1 %v5359_v5 }
 0x384   : > { %3198 = vmatprep.subr.bf16.mxu1 %v5360_v60 }
 0x387   : > { %3200 = vmatpush1.bf16.msra.mxu1 %v5361_v57 }
 0x388   : > { %3202 = vmatprep.subr.bf16.mxu1 %v5362_v12 }
 0x38b   : > { %3204 = vmatpush1.bf16.msra.mxu1 %v5363_v54 }
 0x38c   : > { %3206 = vmatprep.subr.bf16.mxu1 %v5364_v43 }
 0x38f   : > { %3208 = vmatpush1.bf16.msra.mxu1 %v5365_v10 }
 0x390   : > { %3210 = vmatprep.subr.bf16.mxu1 %v5366_v61 }
 0x393   : > { %3212 = vmatpush1.bf16.msra.mxu1 %v5367_v20  ;;  %v5377_v20 = vld [vmem:[#allocation110_spill] sm:$0xff] }
 0x394   : > { %3214 = vmatprep.subr.bf16.mxu1 %v5368_v24 }
 0x397   : > { %3216 = vmatpush1.bf16.msra.mxu1 %v5369_v53 }
 0x398   : > { %3218 = vmatprep.subr.bf16.mxu1 %v5370_v27 }
 0x39b   : > { %3220 = vmatpush1.bf16.msra.mxu1 %v5371_v34 }
 0x39c   : > { %3222 = vmatprep.subr.bf16.mxu1 %v5372_v23 }
 0x39f   : > { %3224 = vmatpush1.bf16.msra.mxu1 %v5373_v62 }
 0x3f5   : > { %v1742_v63 = vpop.f32.mrb[4].mxu0  ;;  %v1813_v37 = vpop.f32.mrb[20].mxu1 }
 0x3f6   : > { %v3300_v59 = vadd.f32 %v5374_v11, %v1742_v63  ;;  %v1744_v45 = vpop.f32.mrb[5].mxu0  ;;  %v1815_v30 = vpop.f32.mrb[21].mxu1  ;;  %v1814_v43 = vadd.f32 %v1813_v37, %v4450_v22 }
 0x3f7   : > { %v1816_v3 = vadd.f32 %v1815_v30, %v4440_v8  ;;  %v3302_v41 = vadd.f32 %v5375_v47, %v1744_v45 }
 0x3f8   : > { %v2448_v29 = vmul.f32 -1.442695, %v3300_v59 }
 0x3f9   : > { %v1910_v42 = vadd.f32 %v1816_v3, %v5376_v18  ;;  %v2449_v5 = vmul.f32 -1.442695, %v3302_v41  ;;  %v5378_v41 = vld [vmem:[#allocation116_spill] sm:$0xff] }
 0x3fa   : > { %3454 = vpow2.f32 %v2448_v29 }
 0x3fb   : > { %3456 = vpow2.f32 %v2449_v5  ;;  %v2450_v53 = vmul.f32 -1.442695, %v1910_v42 }
 0x404   : > { %v3455_v60 = vpop.eup %3454 }
 0x405   : > { %v1893_v57 = vadd.f32 1.0, %v3455_v60  ;;  %v3457_v12 = vpop.eup %3456 }
 0x406   : > { %v1900_v54 = vadd.f32 1.0, %v3457_v12 }
 0x407   : > { %3458 = vrcp.f32 %v1893_v57 }
 0x408   : > { %3460 = vrcp.f32 %v1900_v54 }
 0x411   : > { %v3459_v10 = vpop.eup %3458 }
 0x412   : > { %v1903_v61 = vmul.f32 %v3459_v10, %v1814_v43  ;;  %v3461_v27 = vpop.eup %3460 }
 0x413   : > { %v1906_v34 = vsub.f32 1.0, %v3461_v27  ;;  %v1908_v63 = vmul.f32 %v3461_v27, %v4584_v28  ;;  %v5379_v28 = vld [vmem:[#allocation112_spill] sm:$0xff] }
 0x414   : > { %v1904_v24 = vadd.f32 %v1903_v61, %v5377_v20 }
 0x416   : > { %3462 = vtanh.f32 %v1904_v24 }
 0x417   : > { %3464 = vpow2.f32 %v2450_v53 }
 0x420   : > { %v3463_v23 = vpop.eup %3462 }
 0x421   : > { %v1907_v62 = vmul.f32 %v3463_v23, %v1906_v34  ;;  %v3465_v59 = vpop.eup %3464 }
 0x422   : > { %v1914_v37 = vadd.f32 1.0, %v3465_v59 }
 0x423   : > { %v4705_v11 = vadd.f32 %v1908_v63, %v1907_v62 }
 0x424   : > { %3466 = vrcp.f32 %v1914_v37 }
 0x425   : > { %2452 = vst [vmem:[%s3926_s26 + $0x10] sm:$0xff] %v4705_v11 }
 0x42e   : > { %v3467_v47 = vpop.eup %3466 }
 0x435   : > { %v1884_v45 = vpop.f32.mrb[22].mxu1 }
 0x436   : > { %v1885_v30 = vadd.f32 %v1884_v45, %v4461_v49  ;;  %v1886_v3 = vpop.f32.mrb[23].mxu1 }
 0x437   : > { %v1887_v29 = vadd.f32 %v1886_v3, %v4463_v50 }
 0x438   : > { %v1917_v18 = vadd.f32 %v1885_v30, %v5378_v41 }
 0x439   : > { %v1924_v42 = vmul.f32 %v3467_v47, %v1887_v29 }
 0x43a   : > { %v2451_v5 = vmul.f32 -1.442695, %v1917_v18 }
 0x43b   : > { %v1925_v60 = vadd.f32 %v1924_v42, %v5379_v28 }
 0x43c   : > { %3468 = vpow2.f32 %v2451_v5 }
 0x446   : > { %v3469_v57 = vpop.eup %3468 }
 0x447   : > { %v1921_v12 = vadd.f32 1.0, %v3469_v57 }
 0x449   : > { %3470 = vrcp.f32 %v1921_v12 }
 0x44a   : > { %3472 = vtanh.f32 %v1925_v60 }
 0x453   : > { %v3471_v54 = vpop.eup %3470 }
 0x454   : > { %v1927_v43 = vsub.f32 1.0, %v3471_v54  ;;  %v3473_v10 = vpop.eup %3472  ;;  %v1929_v20 = vmul.f32 %v3471_v54, %v4593_v15 }
 0x456   : > { %v1928_v61 = vmul.f32 %v3473_v10, %v1927_v43 }
 0x458   : > { %v4714_v24 = vadd.f32 %v1929_v20, %v1928_v61 }
 0x45a   : > { %2009 = vmatprep.mubr.f32.mxu0 %v4714_v24  ;;  %2453 = vst [vmem:[%s3928_s20 + $0x8] sm:$0xff] %v4714_v24  ;;  %2080 = vmatprep.mubr.f32.mxu1 %v4714_v24 }
 0x45b   : > { %2010 = vmatmul.mubr.f32.vlgmr.msra.gmra.mrb[12].mxu0 %v4705_v11  ;;  %2081 = vmatmul.mubr.f32.vlgmr.msra.gmra.mrb[24].mxu1 %v4705_v11 }
 0x45c   : > { %3228 = vmatpush1.bf16.msra.mxu0 %v4200_v55  ;;  %2151 = vmatprep.mubr.f32.mxu0 %v4714_v24 }
 0x45d   : > { %3230 = vmatprep.subr.bf16.mxu0 %v5253_v33 }
 0x460   : > { %3232 = vmatpush1.bf16.msra.mxu0 %v4209_v21 }
 0x461   : > { %3234 = vmatprep.subr.bf16.mxu0 %v4213_v16 }
 0x464   : > { %3236 = vmatpush1.bf16.msra.mxu0 %v4218_v6  ;;  %v5384_v6 = vld [vmem:[#allocation121_spill] sm:$0xff] }
 0x465   : > { %3238 = vmatprep.subr.bf16.mxu0 %v4221_v7  ;;  %v5385_v7 = vld [vmem:[#allocation124_spill] sm:$0xff] }
 0x468   : > { %3240 = vmatpush1.bf16.msra.mxu0 %v4226_v40  ;;  %v5380_v40 = vld [vmem:[#allocation120_spill] sm:$0xff] }
 0x469   : > { %3242 = vmatprep.subr.bf16.mxu0 %v4229_v19 }
 0x46c   : > { %3244 = vmatpush1.bf16.msra.mxu0 %v4234_v52  ;;  %v5381_v52 = vld [vmem:[#allocation106_spill] sm:$0xff] }
 0x46d   : > { %3246 = vmatprep.subr.bf16.mxu0 %v4237_v38 }
 0x470   : > { %3248 = vmatpush1.bf16.msra.mxu0 %v4242_v0  ;;  %v765_v0 = vadd.f32 %v5381_v52, %v5380_v40 }
 0x471   : > { %3250 = vmatprep.subr.bf16.mxu0 %v4245_v44 }
 0x472   : > { %v3304_v21 = vadd.f32 %v5384_v6, %v765_v0 }
 0x474   : > { %3252 = vmatpush1.bf16.msra.mxu0 %v4250_v13  ;;  %v5382_v13 = vld [vmem:[#allocation123_spill] sm:$0xff] }
 0x475   : > { %3254 = vmatprep.subr.bf16.mxu0 %v4253_v56 }
 0x478   : > { %3256 = vmatpush1.bf16.msra.mxu0 %v4258_v25  ;;  %v5383_v25 = vld [vmem:[#allocation107_spill] sm:$0xff] }
 0x479   : > { %3258 = vmatprep.subr.bf16.mxu0 %v4261_v4 }
 0x47c   : > { %3260 = vmatpush1.bf16.msra.mxu0 %v4266_v39  ;;  %v767_v39 = vadd.f32 %v5383_v25, %v5382_v13 }
 0x47d   : > { %3262 = vmatprep.subr.bf16.mxu0 %v4269_v17 }
 0x47e   : > { %v3307_v19 = vadd.f32 %v5385_v7, %v767_v39 }
 0x480   : > { %3264 = vmatpush1.bf16.msra.mxu0 %v5256_v46  ;;  %v5386_v46 = vld [vmem:[#allocation111_spill] sm:$0xff] }
 0x481   : > { %3266 = vmatprep.subr.bf16.mxu0 %v5257_v2 }
 0x484   : > { %3268 = vmatpush1.bf16.msra.mxu0 %v5319_v32 }
 0x485   : > { %3270 = vmatprep.subr.bf16.mxu0 %v5320_v26 }
 0x488   : > { %3272 = vmatpush1.bf16.msra.mxu0 %v5323_v48 }
 0x489   : > { %3274 = vmatprep.subr.bf16.mxu0 %v5324_v14 }
 0x48c   : > { %3276 = vmatpush1.bf16.msra.mxu0 %v5327_v35 }
 0x48d   : > { %3278 = vmatprep.subr.bf16.mxu0 %v5328_v1 }
 0x490   : > { %3280 = vmatpush1.bf16.msra.mxu0 %v5331_v51 }
 0x491   : > { %3282 = vmatprep.subr.bf16.mxu0 %v5332_v36 }
 0x494   : > { %3284 = vmatpush1.bf16.msra.mxu0 %v5335_v31 }
 0x495   : > { %3286 = vmatprep.subr.bf16.mxu0 %v5336_v9 }
 0x498   : > { %3288 = vmatpush1.bf16.msra.mxu0 %v5339_v58 }
 0x49b   : > { %2152 = vmatmul.mubr.f32.vlgmr.msra.gmra.mrb[14].mxu0 %v4705_v11 }
 0x52e   : > { %v2011_v55 = vpop.f32.mrb[12].mxu0  ;;  %v2082_v16 = vpop.f32.mrb[24].mxu1 }
 0x52f   : > { %v3305_v38 = vadd.f32 %v3304_v21, %v2011_v55  ;;  %v2013_v44 = vpop.f32.mrb[13].mxu0  ;;  %v2084_v56 = vpop.f32.mrb[25].mxu1  ;;  %v2083_v35 = vadd.f32 %v2082_v16, %v4450_v22 }
 0x530   : > { %v3308_v4 = vadd.f32 %v3307_v19, %v2013_v44  ;;  %v2085_v17 = vadd.f32 %v2084_v56, %v4440_v8  ;;  %v5387_v8 = vld [vmem:[#allocation109_spill] sm:$0xff] }
 0x531   : > { %v2454_v33 = vmul.f32 -1.442695, %v3305_v38 }
 0x532   : > { %v2179_v2 = vadd.f32 %v2085_v17, %v5386_v46  ;;  %v2455_v15 = vmul.f32 -1.442695, %v3308_v4 }
 0x533   : > { %3474 = vpow2.f32 %v2454_v33 }
 0x534   : > { %3476 = vpow2.f32 %v2455_v15  ;;  %v2456_v31 = vmul.f32 -1.442695, %v2179_v2 }
 0x53d   : > { %v3475_v32 = vpop.eup %3474 }
 0x53e   : > { %v2162_v26 = vadd.f32 1.0, %v3475_v32  ;;  %v3477_v48 = vpop.eup %3476 }
 0x53f   : > { %v2169_v14 = vadd.f32 1.0, %v3477_v48 }
 0x540   : > { %3478 = vrcp.f32 %v2162_v26 }
 0x541   : > { %3480 = vrcp.f32 %v2169_v14 }
 0x54a   : > { %v3479_v1 = vpop.eup %3478 }
 0x54b   : > { %v2172_v51 = vmul.f32 %v3479_v1, %v2083_v35  ;;  %v3481_v9 = vpop.eup %3480 }
 0x54c   : > { %v2175_v58 = vsub.f32 1.0, %v3481_v9  ;;  %v2177_v34 = vmul.f32 %v3481_v9, %v4705_v11 }
 0x54d   : > { %v2173_v36 = vadd.f32 %v2172_v51, %v5387_v8 }
 0x54f   : > { %3482 = vtanh.f32 %v2173_v36 }
 0x550   : > { %3484 = vpow2.f32 %v2456_v31 }
 0x559   : > { %v3483_v53 = vpop.eup %3482 }
 0x55a   : > { %v2176_v27 = vmul.f32 %v3483_v53, %v2175_v58 }
 0x55c   : > { %v2178_v22 = vadd.f32 %v2177_v34, %v2176_v27 }
 0x55e   : > { %2458 = vst [vmem:[%s3926_s26 + $0x18] sm:$0xff] %v2178_v22  ;;  %2203 = vst [vmem:[#allocation10] sm:$0xff] %v2178_v22 }
 0x55f   : > { %3535 = shalt.err (!%p3532_p7)
}
 0x560   : > { %s3536_s26 = scalar_lea.hbm %s4771_s17, 512  ;;  %s3540_s29 = scalar_lea.hbm %s4945_s8, 1024 }
 0x561   : > { %p3537_p4 = scmp.ne.s32.totalorder %s4771_s17, %s3536_s26  ;;  %p3541_p5 = scmp.lt.u32.totalorder %s4771_s17, %s4945_s8 }
 0x562   : > { %p3542_p6 = scmp.lt.u32.totalorder %s3540_s29, %s3536_s26  ;;  %p3544_p12 = scmp.lt.u32.totalorder %s3536_s26, %s4771_s17 }
 0x563   : > { %p3538_p2 = pnand %p3537_p4, %p5389_p1 }
 0x564   : > { %p3543_p11 = por %p3542_p6, %p3541_p5 }
 0x565   : > { %p3539_p0 = pneg %p3538_p2 }
 0x566   : > { %p3545_p3 = por %p3544_p12, %p3543_p11 }
 0x568   : > { %p3546_p8 = pnand %p3545_p3, %p3539_p0 }
 0x56a   : > { %3549 = shalt.err (!%p3546_p8)
}
 0x56b   : > { %s3712_s28 = smov 128   ;;  %s3713_s4 = smov 8   ;;  %v3485_v23 = vpop.eup %3484  ;;  %v5390_v30 = vld [vmem:[#allocation113_spill] sm:$0xff]  ;;  %v5391_v41 = vld [vmem:[#allocation114_spill] sm:$0xff] }
 0x56c   : > { %3319 = dma.vmem_to_hbm [thread:$0]  (%p5389_p1), %s4773_s16, 512, %s4771_s17, %s4778_s22, %s3712_s28, %s3712_s28, %s3713_s4   ;;  %v2183_v62 = vadd.f32 1.0, %v3485_v23 }
 0x56d   : > { %s2210_s12 = sand.u32 1, %s3813_s24   ;;  %s2472_s16 = sshll.u32 %s431_s14, 9 }
 0x56e   : > { %3486 = vrcp.f32 %v2183_v62  ;;  %v2153_v63 = vpop.f32.mrb[14].mxu0  ;;  %s2241_s17 = sshll.u32 %s3928_s20, 4  ;;  %s3714_s22 = smov [#allocation10]   ;;  %s4819_s17 = int_to_ptr.vmem [resolvable:$true] %s2241_s17 }
 0x56f   : > { %v2154_v11 = vadd.f32 %v2153_v63, %v4461_v49  ;;  %v2155_v59 = vpop.f32.mrb[15].mxu0  ;;  %s2255_s18 = sshll.u32 %s3714_s22, 4  ;;  %s3715_s13 = smov [#allocation11]   ;;  %s4821_s18 = int_to_ptr.vmem [resolvable:$true] %s2255_s18 }
 0x570   : > { %v2156_v37 = vadd.f32 %v2155_v59, %v4463_v50  ;;  %s2266_s26 = sshll.u32 %s3715_s13, 4  ;;  %s4817_s29 = scalar_lea.hbm %s4946_s9, %s2472_s16  ;;  %s4824_s26 = int_to_ptr.vmem [resolvable:$true] %s2266_s26 }
 0x571   : > { %v2186_v3 = vadd.f32 %v2154_v11, %v5390_v30  ;;  %s4826_s14 = scalar_lea.sflag [#allocation9], %s2210_s12  ;;  %s3550_s19 = scalar_lea.vmem %s4819_s17, 512 }
 0x572   : > { %p3551_p1 = scmp.ne.s32.totalorder %s4819_s17, %s3550_s19  ;;  %p5392_p9 = scmp.ne.s32.totalorder %s5129_s25, 0 }
 0x573   : > { %v2457_v47 = vmul.f32 -1.442695, %v2186_v3  ;;  %s3716_s27 = smov [#allocation8]  }
 0x574   : > { %p3552_p10 = pnand %p3551_p1, %p5392_p9  ;;  %s3554_s16 = sshll.u32 %s3716_s27, 4  ;;  %s3555_s16 = int_to_ptr.vmem [resolvable:$false] %s3554_s16 }
 0x575   : > { %3488 = vpow2.f32 %v2457_v47  ;;  %s3556_s22 = scalar_lea.vmem %s3555_s16, 1024  ;;  %p3557_p7 = scmp.lt.s32.totalorder %s4819_s17, %s3555_s16 }
 0x576   : > { %p3553_p13 = pneg %p3552_p10  ;;  %p3558_p4 = scmp.lt.s32.totalorder %s3556_s22, %s3550_s19 }
 0x578   : > { %v3487_v45 = vpop.eup %3486  ;;  %p3559_p2 = por %p3558_p4, %p3557_p7 }
 0x579   : > { %v2193_v29 = vmul.f32 %v3487_v45, %v2156_v37 }
 0x57a   : > { %p3560_p0 = pnand %p3559_p2, %p3553_p13 }
 0x57b   : > { %v2194_v18 = vadd.f32 %v2193_v29, %v5391_v41 }
 0x57f   : > { %v3489_v42 = vpop.eup %3488 }
 0x580   : > { %v2190_v5 = vadd.f32 1.0, %v3489_v42 }
 0x582   : > { %3490 = vrcp.f32 %v2190_v5 }
 0x583   : > { %3492 = vtanh.f32 %v2194_v18 }
 0x58c   : > { %v3491_v28 = vpop.eup %3490 }
 0x58d   : > { %v2196_v49 = vsub.f32 1.0, %v3491_v28  ;;  %v3493_v60 = vpop.eup %3492  ;;  %v2198_v50 = vmul.f32 %v3491_v28, %v4714_v24 }
 0x58f   : > { %v2197_v57 = vmul.f32 %v3493_v60, %v2196_v49 }
 0x591   : > { %v2199_v12 = vadd.f32 %v2198_v50, %v2197_v57 }
 0x593   : > { %2202 = vst [vmem:[%s3928_s20] sm:$0xff] %v2199_v12  ;;  %2204 = vst [vmem:[#allocation11] sm:$0xff] %v2199_v12 }
 0x594   : > { %3563 = shalt.err (!%p3560_p0)
}
 0x595   : > { %s3564_s20 = scalar_lea.hbm %s4817_s29, 512  ;;  %s3568_s30 = scalar_lea.hbm %s4946_s9, 1024 }
 0x596   : > { %p3565_p5 = scmp.ne.s32.totalorder %s4817_s29, %s3564_s20  ;;  %p3569_p12 = scmp.lt.u32.totalorder %s4817_s29, %s4946_s9 }
 0x597   : > { %p3570_p3 = scmp.lt.u32.totalorder %s3568_s30, %s3564_s20  ;;  %p3572_p1 = scmp.lt.u32.totalorder %s3564_s20, %s4817_s29 }
 0x598   : > { %p3566_p6 = pnand %p3565_p5, %p5392_p9 }
 0x599   : > { %p3571_p8 = por %p3570_p3, %p3569_p12 }
 0x59a   : > { %p3567_p11 = pneg %p3566_p6 }
 0x59b   : > { %p3573_p10 = por %p3572_p1, %p3571_p8 }
 0x59d   : > { %p3574_p13 = pnand %p3573_p10, %p3567_p11 }
 0x59f   : > { %3577 = shalt.err (!%p3574_p13)
}
 0x5a0   : > { %3320 = dma.vmem_to_hbm [thread:$0]  (%p5392_p9), %s4819_s17, 512, %s4817_s29, %s4826_s14, %s3712_s28, %s3712_s28, %s3713_s4  }
 0x5a1   : > { %s3578_s19 = scalar_lea.vmem %s4821_s18, 128  ;;  %p5393_p4 = scmp.eq.s32.totalorder %s3813_s24, 1 }
 0x5a2   : > { %p3579_p7 = scmp.ne.s32.totalorder %s4821_s18, %s3578_s19  ;;  %p3585_p5 = scmp.lt.s32.totalorder %s4821_s18, %s4821_s18 }
 0x5a3   : > { %p3586_p6 = scmp.lt.s32.totalorder %s3578_s19, %s3578_s19 }
 0x5a4   : > { %p3580_p2 = pnand %p3579_p7, %p5393_p4 }
 0x5a5   : > { %p3587_p11 = por %p3586_p6, %p3585_p5 }
 0x5a6   : > { %p3581_p0 = pneg %p3580_p2 }
 0x5a8   : > { %p3588_p12 = pnand %p3587_p11, %p3581_p0 }
 0x5aa   : > { %3591 = shalt.err (!%p3588_p12)
}
 0x5ab   : > { %s3592_s22 = scalar_lea.hbm %s4947_s10, 128  ;;  %p5394_p3 = pmov %p5393_p4 }
 0x5ac   : > { %p3593_p9 = scmp.ne.s32.totalorder %s4947_s10, %s3592_s22  ;;  %p3598_p10 = scmp.lt.u32.totalorder %s3592_s22, %s4947_s10 }
 0x5ae   : > { %p3594_p8 = pnand %p3593_p9, %p5394_p3 }
 0x5b0   : > { %p3595_p1 = pneg %p3594_p8 }
 0x5b2   : > { %p3600_p13 = pnand %p3598_p10, %p3595_p1 }
 0x5b4   : > { %3603 = shalt.err (!%p3600_p13)
}
 0x5b5   : > { %p5395_p7 = pmov %p5394_p3  ;;  %s3604_s14 = scalar_lea.vmem %s4824_s26, 128 }
 0x5b6   : > { %p3605_p4 = scmp.ne.s32.totalorder %s4824_s26, %s3604_s14  ;;  %p5396_p2 = pmov %p5394_p3 }
 0x5b7   : > { %3322 = dma.vmem_to_hbm [thread:$0]  (%p5395_p7), %s4821_s18, 128, %s4947_s10, [#allocation9]  }
 0x5b8   : > { %p3606_p0 = pnand %p3605_p4, %p5396_p2  ;;  %p3611_p6 = scmp.lt.s32.totalorder %s4824_s26, %s4824_s26 }
 0x5b9   : > { %p3612_p11 = scmp.lt.s32.totalorder %s3604_s14, %s3604_s14 }
 0x5ba   : > { %p3607_p5 = pneg %p3606_p0 }
 0x5bb   : > { %p3613_p12 = por %p3612_p11, %p3611_p6 }
 0x5bd   : > { %p3614_p9 = pnand %p3613_p12, %p3607_p5 }
 0x5bf   : > { %3617 = shalt.err (!%p3614_p9)
}
 0x5c0   : > { %s3618_s15 = scalar_lea.hbm %s4948_s11, 128  ;;  %p5397_p8 = pmov %p5396_p2 }
 0x5c1   : > { %p3619_p3 = scmp.ne.s32.totalorder %s4948_s11, %s3618_s15  ;;  %p3624_p13 = scmp.lt.u32.totalorder %s3618_s15, %s4948_s11 }
 0x5c3   : > { %p3620_p1 = pnand %p3619_p3, %p5397_p8 }
 0x5c5   : > { %p3621_p10 = pneg %p3620_p1 }
 0x5c7   : > { %p3626_p7 = pnand %p3624_p13, %p3621_p10 }
 0x5c9   : > { %3629 = shalt.err (!%p3626_p7)
}
 0x5ca   : > { %p5398_p4 = pmov %p5396_p2 }
 0x5cc   : > { %3324 = dma.vmem_to_hbm [thread:$0]  (%p5398_p4), %s4824_s26, 128, %s4948_s11, [#allocation12]  }
 0x5cd   : > { %3663 = dma.done.wait (%p5396_p2), [#allocation9], 128   ;;  %p5399_p0 = pmov %p5396_p2 }
 0x5cf   : > { %3665 = vsyncadd (%p5399_p0), [#allocation9], 4294967168  ;;  %p5400_p5 = pmov %p5399_p0 }
 0x5d0   : > { %p5401_p6 = pmov %p5399_p0 }
 0x5d1   : > { %3667 = dma.done.wait (%p5400_p5), [#allocation12], 128  }
 0x5d2   : > { %3669 = vsyncadd (%p5401_p6), [#allocation12], 4294967168 }
 0x5d3 PF: > { %s5402_s20 = sld [smem:[#allocation20_spill]]  ;;  %s5403_s12 = sld [smem:[#allocation24_spill]] }
 0x5d4   : > { %p3348_p11 = scmp.ge.s32.totalorder %s3704_s23, 2 }
 0x5d9   : > { %s2286_s28 = sand.u32 1, %s5402_s20   ;;  %p5404_p12 = scmp.ne.s32.totalorder %s5403_s12, 0 }
 0x5da   : > { %s2287_s26 = scalar_lea.sflag [#allocation6], %s2286_s28 }
 0x5db   : > { %p3336_p9 = pnand %p3348_p11, %p5404_p12 }
 0x5dd   : > { %3671 = dma.done.wait (!%p3336_p9), %s2287_s26, 512  }
 0x5de   : > { %3673 = vsyncadd (!%p3336_p9), %s2287_s26, 4294966784  ;;  %s5405_s4 = sadd.s32 4294967294, %s3704_s23   ;;  %s5406_s17 = sld [smem:[#allocation26_spill]] }
 0x5df   : > { %s2295_s29 = sand.u32 1, %s5405_s4  }
 0x5e0   : > { %s2296_s14 = scalar_lea.sflag [#allocation9], %s2295_s29 }
 0x5e4   : > { %p5407_p3 = scmp.ne.s32.totalorder %s5406_s17, 0 }
 0x5e6   : > { %p3339_p8 = pnand %p3348_p11, %p5407_p3 }
 0x5e8   : > { %3675 = dma.done.wait (!%p3339_p8), %s2296_s14, 512  }
 0x5e9   : > { %3677 = vsyncadd (!%p3339_p8), %s2296_s14, 4294966784  ;;  %s5408_s23 = sld [smem:[#allocation22_spill]]  ;;  %s5409_s17 = sld [smem:[#allocation18_spill]] }
 0x5ea   : > { %s5410_s18 = sld [smem:[#allocation19_spill]]  ;;  %s5411_s19 = sld [smem:[#allocation25_spill]] }
 0x5eb   : > { %s5412_s24 = sld [smem:[#allocation21_spill]]  ;;  %s5413_s22 = sld [smem:[#allocation23_spill]] }
 0x5ec   : > { %s5414_s20 = smov %s3696_s21 }
 0x5ef   : > { %p27_p1 = scmp.ge.s32.totalorder %s5408_s23, 4  }
 0x5f1   : > { %s5415_s21 = smov %s5412_s24  ;;  %29 = sbr.rel (!%p27_p1) target bundleno = 11 (0xb), region = 146 }
 0x5f8   :  { %2301 = vsyncpa [#allocation5], 1 }
 0x5f9   :  { %2303 = vsyncpa [#allocation5 + $0x1], 1 }
 0x5fa   :  { %2304 = vsyncpa [#allocation6], 1 }
 0x5fb   :  { %2306 = vsyncpa [#allocation6 + $0x1], 1 }
 0x5fc   :  { %2307 = vsyncpa [#allocation9], 1 }
 0x5fd   :  { %2309 = vsyncpa [#allocation9 + $0x1], 1 }
 0x5fe   :  { %2310 = vsyncpa [#allocation12], 1 }

</bundles_post_ra>
